<compile_context>
chip_gen: v7x
topology: tpu7x:2x2x1
jax: 0.10.0
libtpu: 0.0.40
codegen_flags: <defaults>
</compile_context>

<pallas_src>
import functools

import jax
import jax.numpy as jnp
from jax.experimental import pallas as pl
from jax.experimental.pallas import tpu as pltpu

_OUT_LANES = 128  # lane-dense output width for the final Linear(2H -> 1)


def _round_up(x, m):
    return (x + m - 1) // m * m


# --------------------------------------------------------------------------------------
# Kernel
# --------------------------------------------------------------------------------------
def _three_inputs_kernel(te_ref, fe_ref, cat_ref,
                         wt0_ref, wt1_ref, wf10_ref, wf11_ref, wf20_ref, wf21_ref,
                         wc_ref, wd1t_ref, wd1f_ref, wd1c_ref, wd2_ref, b_ref,
                         out_ref, *, l1p, l2p, nt_valid, nf_valid, use_xlu_roll):
    f32, bf16 = jnp.float32, jnp.bfloat16
    tb = out_ref.shape[0]
    b_all = b_ref[...]                                   # (8, >=128) packed f32 biases

    def shift_up(x):
        # out[r] = x[r+1] (cyclic); wrapped / cross-sample rows are masked in the pooling.
        if use_xlu_roll:
            return pltpu.roll(x, shift=x.shape[0] - 1, axis=0)
        return jnp.concatenate([x[1:, :], x[:1, :]], axis=0)

    def conv_k2_relu(x, w0_ref, w1_ref, bias_row):
        # Conv1d(k=2) channels-last: two lane-aligned tap matmuls + row shift of tap1.
        c_out = w0_ref.shape[1]
        tap0 = jnp.dot(x, w0_ref[...], preferred_element_type=f32)
        tap1 = jnp.dot(x, w1_ref[...], preferred_element_type=f32)
        return jnp.maximum(tap0 + shift_up(tap1) + bias_row[:, :c_out], 0.0)

    def masked_mean(y, length, n_valid):
        # AdaptiveAvgPool1d(1): mean over the n_valid leading conv rows of each sample
        # (also zeroes padded / cross-sample rows). Scale applied in f32 after the sum.
        c = y.shape[1]
        y3 = y.reshape(tb, length, c)
        t = jax.lax.broadcasted_iota(jnp.int32, (tb, length, c), 1)
        y3 = jnp.where(t < n_valid, y3, 0.0)
        return jnp.sum(y3, axis=1) * (1.0 / n_valid)

    # ---- title branch: conv(k=2) -> ReLU -> masked mean --------------------------------
    yt = conv_k2_relu(te_ref[...], wt0_ref, wt1_ref, b_all[0:1])     # (tb*l1p, 2H)
    title_feat = masked_mean(yt, l1p, nt_valid)                      # (tb, 2H) f32

    # ---- full branch: conv1 -> ReLU -> conv2 -> ReLU -> masked mean --------------------
    y1 = conv_k2_relu(fe_ref[...], wf10_ref, wf11_ref, b_all[1:2])   # (tb*l2p, 3H)
    y2 = conv_k2_relu(y1.astype(bf16), wf20_ref, wf21_ref, b_all[2:3])  # (tb*l2p, H)
    full_feat = masked_mean(y2, l2p, nf_valid)                       # (tb, H)

    # ---- category branch: Linear -> ReLU -----------------------------------------------
    c_c = wc_ref.shape[1]
    cat_feat = jnp.maximum(
        jnp.dot(cat_ref[...], wc_ref[...], preferred_element_type=f32)
        + b_all[3:4, :c_c], 0.0)                                     # (tb, cat_features)

    # ---- inter_dense: split-row matmul over [title | full | category] -> ReLU -> out ---
    c_d = wd1t_ref.shape[1]
    h = (jnp.dot(title_feat.astype(bf16), wd1t_ref[...], preferred_element_type=f32)
         + jnp.dot(full_feat.astype(bf16), wd1f_ref[...], preferred_element_type=f32)
         + jnp.dot(cat_feat.astype(bf16), wd1c_ref[...], preferred_element_type=f32)
         + b_all[4:5, :c_d])
    h = jnp.maximum(h, 0.0)
    # Final Linear(2H -> 1), zero-padded to 128 output lanes (unmasked lane-dense store).
    out_ref[...] = (jnp.dot(h.astype(bf16), wd2_ref[...], preferred_element_type=f32)
                    + b_all[5:6, :out_ref.shape[1]])


# --------------------------------------------------------------------------------------
# Parameters
# --------------------------------------------------------------------------------------
def init_params(key, n_tokens, n_cat_features, concat_number_of_features, hid_size=64):
    """PyTorch-layout parameters (independent PRNG key per tensor)."""
    hid = hid_size
    cat_f = concat_number_of_features - 3 * hid
    assert cat_f > 0
    ks = jax.random.split(key, 14)

    def w(k, shape, scale=0.05):
        return (scale * jax.random.normal(k, shape)).astype(jnp.float32)

    return dict(
        title_emb=w(ks[0], (n_tokens, hid), 0.1),
        full_emb=w(ks[1], (n_tokens, hid), 0.1),
        title_conv_w=w(ks[2], (2 * hid, hid, 2)), title_conv_b=w(ks[3], (2 * hid,), 0.01),
        full_conv1_w=w(ks[4], (3 * hid, hid, 2)), full_conv1_b=w(ks[5], (3 * hid,), 0.01),
        full_conv2_w=w(ks[6], (hid, 3 * hid, 2)), full_conv2_b=w(ks[7], (hid,), 0.01),
        cat_w=w(ks[8], (cat_f, n_cat_features)), cat_b=w(ks[9], (cat_f,), 0.01),
        dense1_w=w(ks[10], (2 * hid, concat_number_of_features)),
        dense1_b=w(ks[11], (2 * hid,), 0.01),
        dense2_w=w(ks[12], (1, 2 * hid)), dense2_b=w(ks[13], (1,), 0.01),
    )


def prepare_params(params):
    """PyTorch-layout params -> kernel layout (called ONCE, outside the jit path)."""
    f32, bf16 = jnp.float32, jnp.bfloat16
    hid = params['title_emb'].shape[1]
    cat_f = params['cat_w'].shape[0]

    def tap(w, k):          # Conv1d weight (Cout, Cin, 2) -> (Cin, Cout) for tap k
        return w[:, :, k].T.astype(bf16)

    wd1 = params['dense1_w'].T                                     # (3H + cat_f, 2H)
    wd2 = jnp.zeros((2 * hid, _OUT_LANES), f32).at[:, :1].set(params['dense2_w'].T)

    bw = _round_up(max(3 * hid, cat_f, _OUT_LANES), 128)
    b_all = jnp.zeros((8, bw), f32)
    b_all = b_all.at[0, :2 * hid].set(params['title_conv_b'])
    b_all = b_all.at[1, :3 * hid].set(params['full_conv1_b'])
    b_all = b_all.at[2, :hid].set(params['full_conv2_b'])
    b_all = b_all.at[3, :cat_f].set(params['cat_b'])
    b_all = b_all.at[4, :2 * hid].set(params['dense1_b'])
    b_all = b_all.at[5, :1].set(params['dense2_b'])

    return dict(
        title_emb=params['title_emb'].astype(bf16),                # bf16 tables: half the
        full_emb=params['full_emb'].astype(bf16),                  # dominant HBM stream
        wt0=tap(params['title_conv_w'], 0), wt1=tap(params['title_conv_w'], 1),
        wf10=tap(params['full_conv1_w'], 0), wf11=tap(params['full_conv1_w'], 1),
        wf20=tap(params['full_conv2_w'], 0), wf21=tap(params['full_conv2_w'], 1),
        wc=params['cat_w'].T.astype(bf16),
        wd1t=wd1[:2 * hid, :].astype(bf16),
        wd1f=wd1[2 * hid:3 * hid, :].astype(bf16),
        wd1c=wd1[3 * hid:, :].astype(bf16),
        wd2=wd2.astype(bf16),
        b_all=b_all,
    )


# --------------------------------------------------------------------------------------
# Tiling heuristics
# --------------------------------------------------------------------------------------
def _vmem_budget_bytes():
    try:
        kind = jax.devices()[0].device_kind.lower()
    except Exception:
        kind = ""
    if "v7" in kind:
        return 48 * 1024 * 1024      # v7x: 64 MiB physical VMEM per TensorCore
    return 96 * 1024 * 1024          # v5e / v6e: 128 MiB physical VMEM


def _choose_batch_tile(b, batch_tile, l1p, l2p, hid, n_cat, const_bytes, budget):
    # Multiple of 16 (bf16 sublane tile); >=2 grid steps when the batch allows it so the
    # "parallel" axis can shard across v7x's two TensorCores.
    tb = max(16, min(_round_up(batch_tile, 16), _round_up(-(-b // 2), 16)))

    def est(t):
        in_b = 2 * 2 * t * (l1p * hid + l2p * hid + n_cat)           # double-buffered bf16
        out_b = 2 * 4 * t * _OUT_LANES
        tmp_b = 4 * t * (3 * l1p * 2 * hid + 3 * l2p * 3 * hid + 4 * l2p * hid)  # f32 temps
        return in_b + out_b + tmp_b + const_bytes

    while tb > 16 and est(tb) > budget:
        tb = max(16, _round_up(tb // 2, 16))
    return tb


# --------------------------------------------------------------------------------------
# Wrapper
# --------------------------------------------------------------------------------------
@functools.partial(jax.jit,
                   static_argnames=("batch_tile", "use_xlu_roll", "single_buffer_consts"))
def three_inputs_net(input1, input2, input3, prep, *,
                     batch_tile=128, use_xlu_roll=True, single_buffer_consts=True):
    """Forward pass of ThreeInputsNet.

    input1: (B, L1) int title ids; input2: (B, L2) int full-text ids;
    input3: (B, n_cat_features) float category features; prep: prepare_params(...) dict.
    Returns (B, 1) float32.
    """
    bf16 = jnp.bfloat16
    b, l1 = input1.shape
    _, l2 = input2.shape
    n_cat = input3.shape[1]
    hid = prep['title_emb'].shape[1]

    l1p = _round_up(l1, 8)            # pad lengths to 8 so in-kernel reshapes are clean
    l2p = _round_up(l2, 8)
    nt_valid = l1 - 1                 # title conv output length
    nf_valid = l2 - 2                 # full conv2 output length

    const_keys = ('wt0', 'wt1', 'wf10', 'wf11', 'wf20', 'wf21',
                  'wc', 'wd1t', 'wd1f', 'wd1c', 'wd2', 'b_all')
    const_args = [prep[k] for k in const_keys]
    const_bytes = sum(a.size * a.dtype.itemsize for a in const_args)

    budget = _vmem_budget_bytes()
    tb = _choose_batch_tile(b, batch_tile, l1p, l2p, hid, n_cat, const_bytes, budget)
    bp = _round_up(b, tb)

    # Pad batch + length with token id 0 / zeros; padded rows are masked in the kernel.
    ids1 = jnp.pad(input1, ((0, bp - b), (0, l1p - l1)))
    ids2 = jnp.pad(input2, ((0, bp - b), (0, l2p - l2)))
    cat = jnp.pad(input3, ((0, bp - b), (0, 0))).astype(bf16)

    # Embedding gathers (data-dependent) stay in XLA; tables are bf16 and there is NO
    # im2col duplication - the kernel consumes the raw flattened rows.
    te = prep['title_emb'][ids1].reshape(bp * l1p, hid)
    fe = prep['full_emb'][ids2].reshape(bp * l2p, hid)

    if single_buffer_consts:
        const_specs = [pl.BlockSpec(a.shape, lambda i: (0, 0),
                                    pipeline_mode=pl.Buffered(1)) for a in const_args]
    else:
        const_specs = [pl.BlockSpec(a.shape, lambda i: (0, 0)) for a in const_args]

    kernel = functools.partial(_three_inputs_kernel, l1p=l1p, l2p=l2p,
                               nt_valid=nt_valid, nf_valid=nf_valid,
                               use_xlu_roll=use_xlu_roll)
    out = pl.pallas_call(
        kernel,
        out_shape=jax.ShapeDtypeStruct((bp, _OUT_LANES), jnp.float32),
        grid=(bp // tb,),
        in_specs=(
            [pl.BlockSpec((tb * l1p, hid), lambda i: (i, 0)),
             pl.BlockSpec((tb * l2p, hid), lambda i: (i, 0)),
             pl.BlockSpec((tb, n_cat), lambda i: (i, 0))]
            + const_specs
        ),
        out_specs=pl.BlockSpec((tb, _OUT_LANES), lambda i: (i, 0)),
        compiler_params=pltpu.CompilerParams(
            dimension_semantics=("parallel",),       # v7x: shard batch steps over both TCs
            vmem_limit_bytes=budget,
        ),
    )(te, fe, cat, *const_args)
    return out[:b, :1]


# --------------------------------------------------------------------------------------
# Pure-JAX reference (matches the PyTorch module) + roll feature probe
# --------------------------------------------------------------------------------------
def three_inputs_net_reference(input1, input2, input3, params):
    def conv1d_k2(x, w, b):            # x: (B, L, Cin) channels-last, w: (Cout, Cin, 2)
        return (jnp.einsum('blc,oc->blo', x[:, :-1, :], w[:, :, 0])
                + jnp.einsum('blc,oc->blo', x[:, 1:, :], w[:, :, 1]) + b)

    te = params['title_emb'][input1]
    fe = params['full_emb'][input2]
    title = jnp.mean(jax.nn.relu(
        conv1d_k2(te, params['title_conv_w'], params['title_conv_b'])), axis=1)
    f = jax.nn.relu(conv1d_k2(fe, params['full_conv1_w'], params['full_conv1_b']))
    f = jax.nn.relu(conv1d_k2(f, params['full_conv2_w'], params['full_conv2_b']))
    full = jnp.mean(f, axis=1)
    cat = jax.nn.relu(input3 @ params['cat_w'].T + params['cat_b'])
    concat = jnp.concatenate([title, full, cat], axis=1)
    h = jax.nn.relu(concat @ params['dense1_w'].T + params['dense1_b'])
    return h @ params['dense2_w'].T + params['dense2_b']


def _xlu_roll_available():
    """Probe that pltpu.roll lowers on this backend and matches jnp.roll semantics."""
    x = jnp.arange(16 * 128, dtype=jnp.int32).reshape(16, 128)

    def k(x_ref, o_ref):
        o_ref[...] = pltpu.roll(x_ref[...], shift=15, axis=0)

    try:
        y = pl.pallas_call(k, out_shape=jax.ShapeDtypeStruct(x.shape, x.dtype))(x)
        return bool(jnp.array_equal(y, jnp.roll(x, 15, axis=0)))
    except Exception:
        return False


# --------------------------------------------------------------------------------------
if __name__ == "__main__":
    key = jax.random.PRNGKey(0)
    B, H = 2, 32
    L1, L2 = 8, 10
    n_tokens = 50
    n_cat_features = 16
    concat_number_of_features = 3 * H + 16        # -> cat_features = 16

    kparam, k1, k2, k3 = jax.random.split(key, 4)
    params = init_params(kparam, n_tokens, n_cat_features, concat_number_of_features, H)
    prep = prepare_params(params)                 # weight packing hoisted out of jit path

    input1 = jax.random.randint(k1, (B, L1), 0, n_tokens)                   # title ids
    input2 = jax.random.randint(k2, (B, L2), 0, n_tokens)                   # full-text ids
    input3 = jax.random.normal(k3, (B, n_cat_features), dtype=jnp.float32)  # category feats

    ref = three_inputs_net_reference(input1, input2, input3, params)

    def run(use_roll, buf1):
        out = jax.block_until_ready(
            three_inputs_net(input1, input2, input3, prep,
                             use_xlu_roll=use_roll, single_buffer_consts=buf1))
        assert out.shape == (B, 1) and out.dtype == jnp.float32
        assert float(jnp.max(jnp.abs(out - ref))) < 2e-2   # bf16-matmul/emb tolerance
        return out

    use_roll = _xlu_roll_available()
    out, last_err = None, None
    # Graceful degradation: single-buffered consts + XLU roll -> default buffering ->
    # slice-based row shift.  Correctness is asserted inside run() before accepting.
    for cfg in [(use_roll, True), (use_roll, False), (False, False)]:
        try:
            out = run(*cfg)
            break
        except Exception as e:
            last_err = e
    if out is None:
        raise last_err
    print("KERNEL_OK")
</pallas_src>

<mosaic_0001>
module attributes {stable_mosaic.version = 11 : i64} {
  func.func @k(%arg0: memref<16x128xi32, #tpu.memory_space<vmem>>, %arg1: memref<16x128xi32, #tpu.memory_space<vmem>>) attributes {dimension_semantics = [], scalar_prefetch = 0 : i64, scratch_operands = 0 : i64, tpu.core_type = #tpu.core_type<tc>} {
    %c0 = arith.constant 0 : index
    %c0_0 = arith.constant 0 : index
    %0 = vector.load %arg0[%c0, %c0_0] : memref<16x128xi32, #tpu.memory_space<vmem>>, vector<16x128xi32>
    %c15_i32 = arith.constant 15 : i32
    %1 = tpu.dynamic_rotate %0 by %c15_i32 dim 0 : vector<16x128xi32>, i32 -> vector<16x128xi32>
    %c0_1 = arith.constant 0 : index
    %c0_2 = arith.constant 0 : index
    %2 = vector.load %arg1[%c0_1, %c0_2] : memref<16x128xi32, #tpu.memory_space<vmem>>, vector<16x128xi32>
    tpu.vector_store %arg1[%c0_1, %c0_2], %1 {strides = array<i32>} : memref<16x128xi32, #tpu.memory_space<vmem>>, vector<16x128xi32>,
    return
  }
}

module attributes {stable_mosaic.version = 11 : i64} {
  func.func @_three_inputs_kernel(%arg0: i32, %arg1: memref<128x32xbf16, #tpu.memory_space<vmem>>, %arg2: memref<256x32xbf16, #tpu.memory_space<vmem>>, %arg3: memref<16x16xbf16, #tpu.memory_space<vmem>>, %arg4: memref<32x64xbf16, #tpu.memory_space<vmem>>, %arg5: memref<32x64xbf16, #tpu.memory_space<vmem>>, %arg6: memref<32x96xbf16, #tpu.memory_space<vmem>>, %arg7: memref<32x96xbf16, #tpu.memory_space<vmem>>, %arg8: memref<96x32xbf16, #tpu.memory_space<vmem>>, %arg9: memref<96x32xbf16, #tpu.memory_space<vmem>>, %arg10: memref<16x16xbf16, #tpu.memory_space<vmem>>, %arg11: memref<64x64xbf16, #tpu.memory_space<vmem>>, %arg12: memref<32x64xbf16, #tpu.memory_space<vmem>>, %arg13: memref<16x64xbf16, #tpu.memory_space<vmem>>, %arg14: memref<64x128xbf16, #tpu.memory_space<vmem>>, %arg15: memref<8x128xf32, #tpu.memory_space<vmem>>, %arg16: memref<16x128xf32, #tpu.memory_space<vmem>>) attributes {dimension_semantics = [#tpu.dimension_semantics<parallel>], iteration_bounds = array<i64: 1>, scalar_prefetch = 0 : i64, scratch_operands = 0 : i64, tpu.core_type = #tpu.core_type<tc>, window_params = [{transform_indices = @transform_0, window_bounds = array<i64: 128, 32>}, {transform_indices = @transform_1, window_bounds = array<i64: 256, 32>}, {transform_indices = @transform_2, window_bounds = array<i64: 16, 16>}, {pipeline_mode = #tpu.pipeline_mode<synchronous>, transform_indices = @transform_3, window_bounds = array<i64: 32, 64>}, {pipeline_mode = #tpu.pipeline_mode<synchronous>, transform_indices = @transform_4, window_bounds = array<i64: 32, 64>}, {pipeline_mode = #tpu.pipeline_mode<synchronous>, transform_indices = @transform_5, window_bounds = array<i64: 32, 96>}, {pipeline_mode = #tpu.pipeline_mode<synchronous>, transform_indices = @transform_6, window_bounds = array<i64: 32, 96>}, {pipeline_mode = #tpu.pipeline_mode<synchronous>, transform_indices = @transform_7, window_bounds = array<i64: 96, 32>}, {pipeline_mode = #tpu.pipeline_mode<synchronous>, transform_indices = @transform_8, window_bounds = array<i64: 96, 32>}, {pipeline_mode = #tpu.pipeline_mode<synchronous>, transform_indices = @transform_9, window_bounds = array<i64: 16, 16>}, {pipeline_mode = #tpu.pipeline_mode<synchronous>, transform_indices = @transform_10, window_bounds = array<i64: 64, 64>}, {pipeline_mode = #tpu.pipeline_mode<synchronous>, transform_indices = @transform_11, window_bounds = array<i64: 32, 64>}, {pipeline_mode = #tpu.pipeline_mode<synchronous>, transform_indices = @transform_12, window_bounds = array<i64: 16, 64>}, {pipeline_mode = #tpu.pipeline_mode<synchronous>, transform_indices = @transform_13, window_bounds = array<i64: 64, 128>}, {pipeline_mode = #tpu.pipeline_mode<synchronous>, transform_indices = @transform_14, window_bounds = array<i64: 8, 128>}, {transform_indices = @transform_15, window_bounds = array<i64: 16, 128>}]} {
    %c0 = arith.constant 0 : index
    %c0_0 = arith.constant 0 : index
    %0 = vector.load %arg15[%c0, %c0_0] : memref<8x128xf32, #tpu.memory_space<vmem>>, vector<8x128xf32>
    %c0_1 = arith.constant 0 : index
    %c0_2 = arith.constant 0 : index
    %1 = vector.load %arg1[%c0_1, %c0_2] : memref<128x32xbf16, #tpu.memory_space<vmem>>, vector<128x32xbf16>
    %2 = vector.extract_strided_slice %0 {offsets = [0, 0], sizes = [1, 128], strides = [1, 1]} : vector<8x128xf32> to vector<1x128xf32>
    %c0_3 = arith.constant 0 : index
    %c0_4 = arith.constant 0 : index
    %3 = vector.load %arg4[%c0_3, %c0_4] : memref<32x64xbf16, #tpu.memory_space<vmem>>, vector<32x64xbf16>
    %cst = arith.constant dense<0.000000e+00> : vector<128x64xf32>
    %4 = tpu.matmul %1, %3, %cst {dimension_numbers = #tpu.dot_dimension_numbers<[1], [0], [0], [1], [0, 0, 1, 1], [], []>} : vector<128x32xbf16>, vector<32x64xbf16>, vector<128x64xf32> -> vector<128x64xf32>
    %c0_5 = arith.constant 0 : index
    %c0_6 = arith.constant 0 : index
    %5 = vector.load %arg5[%c0_5, %c0_6] : memref<32x64xbf16, #tpu.memory_space<vmem>>, vector<32x64xbf16>
    %cst_7 = arith.constant dense<0.000000e+00> : vector<128x64xf32>
    %6 = tpu.matmul %1, %5, %cst_7 {dimension_numbers = #tpu.dot_dimension_numbers<[1], [0], [0], [1], [0, 0, 1, 1], [], []>} : vector<128x32xbf16>, vector<32x64xbf16>, vector<128x64xf32> -> vector<128x64xf32>
    %7 = vector.extract_strided_slice %6 {offsets = [1, 0], sizes = [127, 64], strides = [1, 1]} : vector<128x64xf32> to vector<127x64xf32>
    %8 = vector.extract_strided_slice %6 {offsets = [0, 0], sizes = [1, 64], strides = [1, 1]} : vector<128x64xf32> to vector<1x64xf32>
    %9 = tpu.concatenate %7, %8 in 0 : vector<127x64xf32>, vector<1x64xf32> -> vector<128x64xf32>
    %10 = arith.addf %4, %9 : vector<128x64xf32>
    %11 = vector.extract_strided_slice %2 {offsets = [0, 0], sizes = [1, 64], strides = [1, 1]} : vector<1x128xf32> to vector<1x64xf32>
    %12 = vector.broadcast %11 : vector<1x64xf32> to vector<128x64xf32>
    %13 = arith.addf %10, %12 : vector<128x64xf32>
    %cst_8 = arith.constant 0.000000e+00 : f32
    %14 = vector.broadcast %cst_8 : f32 to vector<128x64xf32>
    %15 = arith.maximumf %13, %14 : vector<128x64xf32>
    %16 = vector.shape_cast %15 : vector<128x64xf32> to vector<16x8x64xf32>
    %17 = tpu.iota {dimensions = array<i32: 1>} : vector<16x8x64xi32>
    %c7_i32 = arith.constant 7 : i32
    %18 = vector.broadcast %c7_i32 : i32 to vector<16x8x64xi32>
    %19 = arith.cmpi slt, %17, %18 : vector<16x8x64xi32>
    %cst_9 = arith.constant 0.000000e+00 : f32
    %20 = vector.broadcast %cst_9 : f32 to vector<16x8x64xf32>
    %21 = arith.select %19, %16, %20 : vector<16x8x64xi1>, vector<16x8x64xf32>
    %cst_10 = arith.constant dense<0.000000e+00> : vector<16x64xf32>
    %22 = vector.multi_reduction <add>, %21, %cst_10 [1] : vector<16x8x64xf32> to vector<16x64xf32>
    %cst_11 = arith.constant 0.142857149 : f32
    %23 = vector.broadcast %cst_11 : f32 to vector<16x64xf32>
    %24 = arith.mulf %22, %23 : vector<16x64xf32>
    %c0_12 = arith.constant 0 : index
    %c0_13 = arith.constant 0 : index
    %25 = vector.load %arg2[%c0_12, %c0_13] : memref<256x32xbf16, #tpu.memory_space<vmem>>, vector<256x32xbf16>
    %26 = vector.extract_strided_slice %0 {offsets = [1, 0], sizes = [1, 128], strides = [1, 1]} : vector<8x128xf32> to vector<1x128xf32>
    %c0_14 = arith.constant 0 : index
    %c0_15 = arith.constant 0 : index
    %27 = vector.load %arg6[%c0_14, %c0_15] : memref<32x96xbf16, #tpu.memory_space<vmem>>, vector<32x96xbf16>
    %cst_16 = arith.constant dense<0.000000e+00> : vector<256x96xf32>
    %28 = tpu.matmul %25, %27, %cst_16 {dimension_numbers = #tpu.dot_dimension_numbers<[1], [0], [0], [1], [0, 0, 1, 1], [], []>} : vector<256x32xbf16>, vector<32x96xbf16>, vector<256x96xf32> -> vector<256x96xf32>
    %c0_17 = arith.constant 0 : index
    %c0_18 = arith.constant 0 : index
    %29 = vector.load %arg7[%c0_17, %c0_18] : memref<32x96xbf16, #tpu.memory_space<vmem>>, vector<32x96xbf16>
    %cst_19 = arith.constant dense<0.000000e+00> : vector<256x96xf32>
    %30 = tpu.matmul %25, %29, %cst_19 {dimension_numbers = #tpu.dot_dimension_numbers<[1], [0], [0], [1], [0, 0, 1, 1], [], []>} : vector<256x32xbf16>, vector<32x96xbf16>, vector<256x96xf32> -> vector<256x96xf32>
    %31 = vector.extract_strided_slice %30 {offsets = [1, 0], sizes = [255, 96], strides = [1, 1]} : vector<256x96xf32> to vector<255x96xf32>
    %32 = vector.extract_strided_slice %30 {offsets = [0, 0], sizes = [1, 96], strides = [1, 1]} : vector<256x96xf32> to vector<1x96xf32>
    %33 = tpu.concatenate %31, %32 in 0 : vector<255x96xf32>, vector<1x96xf32> -> vector<256x96xf32>
    %34 = arith.addf %28, %33 : vector<256x96xf32>
    %35 = vector.extract_strided_slice %26 {offsets = [0, 0], sizes = [1, 96], strides = [1, 1]} : vector<1x128xf32> to vector<1x96xf32>
    %36 = vector.broadcast %35 : vector<1x96xf32> to vector<256x96xf32>
    %37 = arith.addf %34, %36 : vector<256x96xf32>
    %cst_20 = arith.constant 0.000000e+00 : f32
    %38 = vector.broadcast %cst_20 : f32 to vector<256x96xf32>
    %39 = arith.maximumf %37, %38 : vector<256x96xf32>
    %40 = arith.truncf %39 : vector<256x96xf32> to vector<256x96xbf16>
    %41 = vector.extract_strided_slice %0 {offsets = [2, 0], sizes = [1, 128], strides = [1, 1]} : vector<8x128xf32> to vector<1x128xf32>
    %c0_21 = arith.constant 0 : index
    %c0_22 = arith.constant 0 : index
    %42 = vector.load %arg8[%c0_21, %c0_22] : memref<96x32xbf16, #tpu.memory_space<vmem>>, vector<96x32xbf16>
    %cst_23 = arith.constant dense<0.000000e+00> : vector<256x32xf32>
    %43 = tpu.matmul %40, %42, %cst_23 {dimension_numbers = #tpu.dot_dimension_numbers<[1], [0], [0], [1], [0, 0, 1, 1], [], []>} : vector<256x96xbf16>, vector<96x32xbf16>, vector<256x32xf32> -> vector<256x32xf32>
    %c0_24 = arith.constant 0 : index
    %c0_25 = arith.constant 0 : index
    %44 = vector.load %arg9[%c0_24, %c0_25] : memref<96x32xbf16, #tpu.memory_space<vmem>>, vector<96x32xbf16>
    %cst_26 = arith.constant dense<0.000000e+00> : vector<256x32xf32>
    %45 = tpu.matmul %40, %44, %cst_26 {dimension_numbers = #tpu.dot_dimension_numbers<[1], [0], [0], [1], [0, 0, 1, 1], [], []>} : vector<256x96xbf16>, vector<96x32xbf16>, vector<256x32xf32> -> vector<256x32xf32>
    %46 = vector.extract_strided_slice %45 {offsets = [1, 0], sizes = [255, 32], strides = [1, 1]} : vector<256x32xf32> to vector<255x32xf32>
    %47 = vector.extract_strided_slice %45 {offsets = [0, 0], sizes = [1, 32], strides = [1, 1]} : vector<256x32xf32> to vector<1x32xf32>
    %48 = tpu.concatenate %46, %47 in 0 : vector<255x32xf32>, vector<1x32xf32> -> vector<256x32xf32>
    %49 = arith.addf %43, %48 : vector<256x32xf32>
    %50 = vector.extract_strided_slice %41 {offsets = [0, 0], sizes = [1, 32], strides = [1, 1]} : vector<1x128xf32> to vector<1x32xf32>
    %51 = vector.broadcast %50 : vector<1x32xf32> to vector<256x32xf32>
    %52 = arith.addf %49, %51 : vector<256x32xf32>
    %cst_27 = arith.constant 0.000000e+00 : f32
    %53 = vector.broadcast %cst_27 : f32 to vector<256x32xf32>
    %54 = arith.maximumf %52, %53 : vector<256x32xf32>
    %55 = vector.shape_cast %54 : vector<256x32xf32> to vector<16x16x32xf32>
    %56 = tpu.iota {dimensions = array<i32: 1>} : vector<16x16x32xi32>
    %c8_i32 = arith.constant 8 : i32
    %57 = vector.broadcast %c8_i32 : i32 to vector<16x16x32xi32>
    %58 = arith.cmpi slt, %56, %57 : vector<16x16x32xi32>
    %cst_28 = arith.constant 0.000000e+00 : f32
    %59 = vector.broadcast %cst_28 : f32 to vector<16x16x32xf32>
    %60 = arith.select %58, %55, %59 : vector<16x16x32xi1>, vector<16x16x32xf32>
    %cst_29 = arith.constant dense<0.000000e+00> : vector<16x32xf32>
    %61 = vector.multi_reduction <add>, %60, %cst_29 [1] : vector<16x16x32xf32> to vector<16x32xf32>
    %cst_30 = arith.constant 1.250000e-01 : f32
    %62 = vector.broadcast %cst_30 : f32 to vector<16x32xf32>
    %63 = arith.mulf %61, %62 : vector<16x32xf32>
    %c0_31 = arith.constant 0 : index
    %c0_32 = arith.constant 0 : index
    %64 = vector.load %arg3[%c0_31, %c0_32] : memref<16x16xbf16, #tpu.memory_space<vmem>>, vector<16x16xbf16>
    %c0_33 = arith.constant 0 : index
    %c0_34 = arith.constant 0 : index
    %65 = vector.load %arg10[%c0_33, %c0_34] : memref<16x16xbf16, #tpu.memory_space<vmem>>, vector<16x16xbf16>
    %cst_35 = arith.constant dense<0.000000e+00> : vector<16x16xf32>
    %66 = tpu.matmul %64, %65, %cst_35 {dimension_numbers = #tpu.dot_dimension_numbers<[1], [0], [0], [1], [0, 0, 1, 1], [], []>} : vector<16x16xbf16>, vector<16x16xbf16>, vector<16x16xf32> -> vector<16x16xf32>
    %67 = vector.extract_strided_slice %0 {offsets = [3, 0], sizes = [1, 16], strides = [1, 1]} : vector<8x128xf32> to vector<1x16xf32>
    %68 = vector.broadcast %67 : vector<1x16xf32> to vector<16x16xf32>
    %69 = arith.addf %66, %68 : vector<16x16xf32>
    %cst_36 = arith.constant 0.000000e+00 : f32
    %70 = vector.broadcast %cst_36 : f32 to vector<16x16xf32>
    %71 = arith.maximumf %69, %70 : vector<16x16xf32>
    %72 = arith.truncf %24 : vector<16x64xf32> to vector<16x64xbf16>
    %c0_37 = arith.constant 0 : index
    %c0_38 = arith.constant 0 : index
    %73 = vector.load %arg11[%c0_37, %c0_38] : memref<64x64xbf16, #tpu.memory_space<vmem>>, vector<64x64xbf16>
    %cst_39 = arith.constant dense<0.000000e+00> : vector<16x64xf32>
    %74 = tpu.matmul %72, %73, %cst_39 {dimension_numbers = #tpu.dot_dimension_numbers<[1], [0], [0], [1], [0, 0, 1, 1], [], []>} : vector<16x64xbf16>, vector<64x64xbf16>, vector<16x64xf32> -> vector<16x64xf32>
    %75 = arith.truncf %63 : vector<16x32xf32> to vector<16x32xbf16>
    %c0_40 = arith.constant 0 : index
    %c0_41 = arith.constant 0 : index
    %76 = vector.load %arg12[%c0_40, %c0_41] : memref<32x64xbf16, #tpu.memory_space<vmem>>, vector<32x64xbf16>
    %cst_42 = arith.constant dense<0.000000e+00> : vector<16x64xf32>
    %77 = tpu.matmul %75, %76, %cst_42 {dimension_numbers = #tpu.dot_dimension_numbers<[1], [0], [0], [1], [0, 0, 1, 1], [], []>} : vector<16x32xbf16>, vector<32x64xbf16>, vector<16x64xf32> -> vector<16x64xf32>
    %78 = arith.addf %74, %77 : vector<16x64xf32>
    %79 = arith.truncf %71 : vector<16x16xf32> to vector<16x16xbf16>
    %c0_43 = arith.constant 0 : index
    %c0_44 = arith.constant 0 : index
    %80 = vector.load %arg13[%c0_43, %c0_44] : memref<16x64xbf16, #tpu.memory_space<vmem>>, vector<16x64xbf16>
    %cst_45 = arith.constant dense<0.000000e+00> : vector<16x64xf32>
    %81 = tpu.matmul %79, %80, %cst_45 {dimension_numbers = #tpu.dot_dimension_numbers<[1], [0], [0], [1], [0, 0, 1, 1], [], []>} : vector<16x16xbf16>, vector<16x64xbf16>, vector<16x64xf32> -> vector<16x64xf32>
    %82 = arith.addf %78, %81 : vector<16x64xf32>
    %83 = vector.extract_strided_slice %0 {offsets = [4, 0], sizes = [1, 64], strides = [1, 1]} : vector<8x128xf32> to vector<1x64xf32>
    %84 = vector.broadcast %83 : vector<1x64xf32> to vector<16x64xf32>
    %85 = arith.addf %82, %84 : vector<16x64xf32>
    %cst_46 = arith.constant 0.000000e+00 : f32
    %86 = vector.broadcast %cst_46 : f32 to vector<16x64xf32>
    %87 = arith.maximumf %85, %86 : vector<16x64xf32>
    %88 = arith.truncf %87 : vector<16x64xf32> to vector<16x64xbf16>
    %c0_47 = arith.constant 0 : index
    %c0_48 = arith.constant 0 : index
    %89 = vector.load %arg14[%c0_47, %c0_48] : memref<64x128xbf16, #tpu.memory_space<vmem>>, vector<64x128xbf16>
    %cst_49 = arith.constant dense<0.000000e+00> : vector<16x128xf32>
    %90 = tpu.matmul %88, %89, %cst_49 {dimension_numbers = #tpu.dot_dimension_numbers<[1], [0], [0], [1], [0, 0, 1, 1], [], []>} : vector<16x64xbf16>, vector<64x128xbf16>, vector<16x128xf32> -> vector<16x128xf32>
    %91 = vector.extract_strided_slice %0 {offsets = [5, 0], sizes = [1, 128], strides = [1, 1]} : vector<8x128xf32> to vector<1x128xf32>
    %92 = vector.broadcast %91 : vector<1x128xf32> to vector<16x128xf32>
    %93 = arith.addf %90, %92 : vector<16x128xf32>
    %c0_50 = arith.constant 0 : index
    %c0_51 = arith.constant 0 : index
    %94 = vector.load %arg16[%c0_50, %c0_51] : memref<16x128xf32, #tpu.memory_space<vmem>>, vector<16x128xf32>
    tpu.vector_store %arg16[%c0_50, %c0_51], %93 {strides = array<i32>} : memref<16x128xf32, #tpu.memory_space<vmem>>, vector<16x128xf32>,
    return
  }
  func.func @transform_0(%arg0: i32) -> (i32, i32) {
    %c0_i32 = arith.constant 0 : i32
    %c0_i32_0 = arith.constant 0 : i32
    return %arg0, %c0_i32 : i32, i32
  }
  func.func @transform_1(%arg0: i32) -> (i32, i32) {
    %c0_i32 = arith.constant 0 : i32
    %c0_i32_0 = arith.constant 0 : i32
    return %arg0, %c0_i32 : i32, i32
  }
  func.func @transform_2(%arg0: i32) -> (i32, i32) {
    %c0_i32 = arith.constant 0 : i32
    %c0_i32_0 = arith.constant 0 : i32
    return %arg0, %c0_i32 : i32, i32
  }
  func.func @transform_3(%arg0: i32) -> (i32, i32) {
    %c0_i32 = arith.constant 0 : i32
    %c0_i32_0 = arith.constant 0 : i32
    %c0_i32_1 = arith.constant 0 : i32
    return %c0_i32, %c0_i32_0 : i32, i32
  }
  func.func @transform_4(%arg0: i32) -> (i32, i32) {
    %c0_i32 = arith.constant 0 : i32
    %c0_i32_0 = arith.constant 0 : i32
    %c0_i32_1 = arith.constant 0 : i32
    return %c0_i32, %c0_i32_0 : i32, i32
  }
  func.func @transform_5(%arg0: i32) -> (i32, i32) {
    %c0_i32 = arith.constant 0 : i32
    %c0_i32_0 = arith.constant 0 : i32
    %c0_i32_1 = arith.constant 0 : i32
    return %c0_i32, %c0_i32_0 : i32, i32
  }
  func.func @transform_6(%arg0: i32) -> (i32, i32) {
    %c0_i32 = arith.constant 0 : i32
    %c0_i32_0 = arith.constant 0 : i32
    %c0_i32_1 = arith.constant 0 : i32
    return %c0_i32, %c0_i32_0 : i32, i32
  }
  func.func @transform_7(%arg0: i32) -> (i32, i32) {
    %c0_i32 = arith.constant 0 : i32
    %c0_i32_0 = arith.constant 0 : i32
    %c0_i32_1 = arith.constant 0 : i32
    return %c0_i32, %c0_i32_0 : i32, i32
  }
  func.func @transform_8(%arg0: i32) -> (i32, i32) {
    %c0_i32 = arith.constant 0 : i32
    %c0_i32_0 = arith.constant 0 : i32
    %c0_i32_1 = arith.constant 0 : i32
    return %c0_i32, %c0_i32_0 : i32, i32
  }
  func.func @transform_9(%arg0: i32) -> (i32, i32) {
    %c0_i32 = arith.constant 0 : i32
    %c0_i32_0 = arith.constant 0 : i32
    %c0_i32_1 = arith.constant 0 : i32
    return %c0_i32, %c0_i32_0 : i32, i32
  }
  func.func @transform_10(%arg0: i32) -> (i32, i32) {
    %c0_i32 = arith.constant 0 : i32
    %c0_i32_0 = arith.constant 0 : i32
    %c0_i32_1 = arith.constant 0 : i32
    return %c0_i32, %c0_i32_0 : i32, i32
  }
  func.func @transform_11(%arg0: i32) -> (i32, i32) {
    %c0_i32 = arith.constant 0 : i32
    %c0_i32_0 = arith.constant 0 : i32
    %c0_i32_1 = arith.constant 0 : i32
    return %c0_i32, %c0_i32_0 : i32, i32
  }
  func.func @transform_12(%arg0: i32) -> (i32, i32) {
    %c0_i32 = arith.constant 0 : i32
    %c0_i32_0 = arith.constant 0 : i32
    %c0_i32_1 = arith.constant 0 : i32
    return %c0_i32, %c0_i32_0 : i32, i32
  }
  func.func @transform_13(%arg0: i32) -> (i32, i32) {
    %c0_i32 = arith.constant 0 : i32
    %c0_i32_0 = arith.constant 0 : i32
    %c0_i32_1 = arith.constant 0 : i32
    return %c0_i32, %c0_i32_0 : i32, i32
  }
  func.func @transform_14(%arg0: i32) -> (i32, i32) {
    %c0_i32 = arith.constant 0 : i32
    %c0_i32_0 = arith.constant 0 : i32
    %c0_i32_1 = arith.constant 0 : i32
    return %c0_i32, %c0_i32_0 : i32, i32
  }
  func.func @transform_15(%arg0: i32) -> (i32, i32) {
    %c0_i32 = arith.constant 0 : i32
    %c0_i32_0 = arith.constant 0 : i32
    return %arg0, %c0_i32 : i32, i32
  }
}

module attributes {stable_mosaic.version = 11 : i64} {
  func.func @_three_inputs_kernel(%arg0: i32, %arg1: memref<128x32xbf16, #tpu.memory_space<vmem>>, %arg2: memref<256x32xbf16, #tpu.memory_space<vmem>>, %arg3: memref<16x16xbf16, #tpu.memory_space<vmem>>, %arg4: memref<32x64xbf16, #tpu.memory_space<vmem>>, %arg5: memref<32x64xbf16, #tpu.memory_space<vmem>>, %arg6: memref<32x96xbf16, #tpu.memory_space<vmem>>, %arg7: memref<32x96xbf16, #tpu.memory_space<vmem>>, %arg8: memref<96x32xbf16, #tpu.memory_space<vmem>>, %arg9: memref<96x32xbf16, #tpu.memory_space<vmem>>, %arg10: memref<16x16xbf16, #tpu.memory_space<vmem>>, %arg11: memref<64x64xbf16, #tpu.memory_space<vmem>>, %arg12: memref<32x64xbf16, #tpu.memory_space<vmem>>, %arg13: memref<16x64xbf16, #tpu.memory_space<vmem>>, %arg14: memref<64x128xbf16, #tpu.memory_space<vmem>>, %arg15: memref<8x128xf32, #tpu.memory_space<vmem>>, %arg16: memref<16x128xf32, #tpu.memory_space<vmem>>) attributes {dimension_semantics = [#tpu.dimension_semantics<parallel>], iteration_bounds = array<i64: 1>, scalar_prefetch = 0 : i64, scratch_operands = 0 : i64, tpu.core_type = #tpu.core_type<tc>, window_params = [{transform_indices = @transform_0, window_bounds = array<i64: 128, 32>}, {transform_indices = @transform_1, window_bounds = array<i64: 256, 32>}, {transform_indices = @transform_2, window_bounds = array<i64: 16, 16>}, {pipeline_mode = #tpu.pipeline_mode<synchronous>, transform_indices = @transform_3, window_bounds = array<i64: 32, 64>}, {pipeline_mode = #tpu.pipeline_mode<synchronous>, transform_indices = @transform_4, window_bounds = array<i64: 32, 64>}, {pipeline_mode = #tpu.pipeline_mode<synchronous>, transform_indices = @transform_5, window_bounds = array<i64: 32, 96>}, {pipeline_mode = #tpu.pipeline_mode<synchronous>, transform_indices = @transform_6, window_bounds = array<i64: 32, 96>}, {pipeline_mode = #tpu.pipeline_mode<synchronous>, transform_indices = @transform_7, window_bounds = array<i64: 96, 32>}, {pipeline_mode = #tpu.pipeline_mode<synchronous>, transform_indices = @transform_8, window_bounds = array<i64: 96, 32>}, {pipeline_mode = #tpu.pipeline_mode<synchronous>, transform_indices = @transform_9, window_bounds = array<i64: 16, 16>}, {pipeline_mode = #tpu.pipeline_mode<synchronous>, transform_indices = @transform_10, window_bounds = array<i64: 64, 64>}, {pipeline_mode = #tpu.pipeline_mode<synchronous>, transform_indices = @transform_11, window_bounds = array<i64: 32, 64>}, {pipeline_mode = #tpu.pipeline_mode<synchronous>, transform_indices = @transform_12, window_bounds = array<i64: 16, 64>}, {pipeline_mode = #tpu.pipeline_mode<synchronous>, transform_indices = @transform_13, window_bounds = array<i64: 64, 128>}, {pipeline_mode = #tpu.pipeline_mode<synchronous>, transform_indices = @transform_14, window_bounds = array<i64: 8, 128>}, {transform_indices = @transform_15, window_bounds = array<i64: 16, 128>}]} {
    %c0 = arith.constant 0 : index
    %c0_0 = arith.constant 0 : index
    %0 = vector.load %arg15[%c0, %c0_0] : memref<8x128xf32, #tpu.memory_space<vmem>>, vector<8x128xf32>
    %c0_1 = arith.constant 0 : index
    %c0_2 = arith.constant 0 : index
    %1 = vector.load %arg1[%c0_1, %c0_2] : memref<128x32xbf16, #tpu.memory_space<vmem>>, vector<128x32xbf16>
    %2 = vector.extract_strided_slice %0 {offsets = [0, 0], sizes = [1, 128], strides = [1, 1]} : vector<8x128xf32> to vector<1x128xf32>
    %c0_3 = arith.constant 0 : index
    %c0_4 = arith.constant 0 : index
    %3 = vector.load %arg4[%c0_3, %c0_4] : memref<32x64xbf16, #tpu.memory_space<vmem>>, vector<32x64xbf16>
    %cst = arith.constant dense<0.000000e+00> : vector<128x64xf32>
    %4 = tpu.matmul %1, %3, %cst {dimension_numbers = #tpu.dot_dimension_numbers<[1], [0], [0], [1], [0, 0, 1, 1], [], []>} : vector<128x32xbf16>, vector<32x64xbf16>, vector<128x64xf32> -> vector<128x64xf32>
    %c0_5 = arith.constant 0 : index
    %c0_6 = arith.constant 0 : index
    %5 = vector.load %arg5[%c0_5, %c0_6] : memref<32x64xbf16, #tpu.memory_space<vmem>>, vector<32x64xbf16>
    %cst_7 = arith.constant dense<0.000000e+00> : vector<128x64xf32>
    %6 = tpu.matmul %1, %5, %cst_7 {dimension_numbers = #tpu.dot_dimension_numbers<[1], [0], [0], [1], [0, 0, 1, 1], [], []>} : vector<128x32xbf16>, vector<32x64xbf16>, vector<128x64xf32> -> vector<128x64xf32>
    %7 = vector.extract_strided_slice %6 {offsets = [1, 0], sizes = [127, 64], strides = [1, 1]} : vector<128x64xf32> to vector<127x64xf32>
    %8 = vector.extract_strided_slice %6 {offsets = [0, 0], sizes = [1, 64], strides = [1, 1]} : vector<128x64xf32> to vector<1x64xf32>
    %9 = tpu.concatenate %7, %8 in 0 : vector<127x64xf32>, vector<1x64xf32> -> vector<128x64xf32>
    %10 = arith.addf %4, %9 : vector<128x64xf32>
    %11 = vector.extract_strided_slice %2 {offsets = [0, 0], sizes = [1, 64], strides = [1, 1]} : vector<1x128xf32> to vector<1x64xf32>
    %12 = vector.broadcast %11 : vector<1x64xf32> to vector<128x64xf32>
    %13 = arith.addf %10, %12 : vector<128x64xf32>
    %cst_8 = arith.constant 0.000000e+00 : f32
    %14 = vector.broadcast %cst_8 : f32 to vector<128x64xf32>
    %15 = arith.maximumf %13, %14 : vector<128x64xf32>
    %16 = vector.shape_cast %15 : vector<128x64xf32> to vector<16x8x64xf32>
    %17 = tpu.iota {dimensions = array<i32: 1>} : vector<16x8x64xi32>
    %c7_i32 = arith.constant 7 : i32
    %18 = vector.broadcast %c7_i32 : i32 to vector<16x8x64xi32>
    %19 = arith.cmpi slt, %17, %18 : vector<16x8x64xi32>
    %cst_9 = arith.constant 0.000000e+00 : f32
    %20 = vector.broadcast %cst_9 : f32 to vector<16x8x64xf32>
    %21 = arith.select %19, %16, %20 : vector<16x8x64xi1>, vector<16x8x64xf32>
    %cst_10 = arith.constant dense<0.000000e+00> : vector<16x64xf32>
    %22 = vector.multi_reduction <add>, %21, %cst_10 [1] : vector<16x8x64xf32> to vector<16x64xf32>
    %cst_11 = arith.constant 0.142857149 : f32
    %23 = vector.broadcast %cst_11 : f32 to vector<16x64xf32>
    %24 = arith.mulf %22, %23 : vector<16x64xf32>
    %c0_12 = arith.constant 0 : index
    %c0_13 = arith.constant 0 : index
    %25 = vector.load %arg2[%c0_12, %c0_13] : memref<256x32xbf16, #tpu.memory_space<vmem>>, vector<256x32xbf16>
    %26 = vector.extract_strided_slice %0 {offsets = [1, 0], sizes = [1, 128], strides = [1, 1]} : vector<8x128xf32> to vector<1x128xf32>
    %c0_14 = arith.constant 0 : index
    %c0_15 = arith.constant 0 : index
    %27 = vector.load %arg6[%c0_14, %c0_15] : memref<32x96xbf16, #tpu.memory_space<vmem>>, vector<32x96xbf16>
    %cst_16 = arith.constant dense<0.000000e+00> : vector<256x96xf32>
    %28 = tpu.matmul %25, %27, %cst_16 {dimension_numbers = #tpu.dot_dimension_numbers<[1], [0], [0], [1], [0, 0, 1, 1], [], []>} : vector<256x32xbf16>, vector<32x96xbf16>, vector<256x96xf32> -> vector<256x96xf32>
    %c0_17 = arith.constant 0 : index
    %c0_18 = arith.constant 0 : index
    %29 = vector.load %arg7[%c0_17, %c0_18] : memref<32x96xbf16, #tpu.memory_space<vmem>>, vector<32x96xbf16>
    %cst_19 = arith.constant dense<0.000000e+00> : vector<256x96xf32>
    %30 = tpu.matmul %25, %29, %cst_19 {dimension_numbers = #tpu.dot_dimension_numbers<[1], [0], [0], [1], [0, 0, 1, 1], [], []>} : vector<256x32xbf16>, vector<32x96xbf16>, vector<256x96xf32> -> vector<256x96xf32>
    %31 = vector.extract_strided_slice %30 {offsets = [1, 0], sizes = [255, 96], strides = [1, 1]} : vector<256x96xf32> to vector<255x96xf32>
    %32 = vector.extract_strided_slice %30 {offsets = [0, 0], sizes = [1, 96], strides = [1, 1]} : vector<256x96xf32> to vector<1x96xf32>
    %33 = tpu.concatenate %31, %32 in 0 : vector<255x96xf32>, vector<1x96xf32> -> vector<256x96xf32>
    %34 = arith.addf %28, %33 : vector<256x96xf32>
    %35 = vector.extract_strided_slice %26 {offsets = [0, 0], sizes = [1, 96], strides = [1, 1]} : vector<1x128xf32> to vector<1x96xf32>
    %36 = vector.broadcast %35 : vector<1x96xf32> to vector<256x96xf32>
    %37 = arith.addf %34, %36 : vector<256x96xf32>
    %cst_20 = arith.constant 0.000000e+00 : f32
    %38 = vector.broadcast %cst_20 : f32 to vector<256x96xf32>
    %39 = arith.maximumf %37, %38 : vector<256x96xf32>
    %40 = arith.truncf %39 : vector<256x96xf32> to vector<256x96xbf16>
    %41 = vector.extract_strided_slice %0 {offsets = [2, 0], sizes = [1, 128], strides = [1, 1]} : vector<8x128xf32> to vector<1x128xf32>
    %c0_21 = arith.constant 0 : index
    %c0_22 = arith.constant 0 : index
    %42 = vector.load %arg8[%c0_21, %c0_22] : memref<96x32xbf16, #tpu.memory_space<vmem>>, vector<96x32xbf16>
    %cst_23 = arith.constant dense<0.000000e+00> : vector<256x32xf32>
    %43 = tpu.matmul %40, %42, %cst_23 {dimension_numbers = #tpu.dot_dimension_numbers<[1], [0], [0], [1], [0, 0, 1, 1], [], []>} : vector<256x96xbf16>, vector<96x32xbf16>, vector<256x32xf32> -> vector<256x32xf32>
    %c0_24 = arith.constant 0 : index
    %c0_25 = arith.constant 0 : index
    %44 = vector.load %arg9[%c0_24, %c0_25] : memref<96x32xbf16, #tpu.memory_space<vmem>>, vector<96x32xbf16>
    %cst_26 = arith.constant dense<0.000000e+00> : vector<256x32xf32>
    %45 = tpu.matmul %40, %44, %cst_26 {dimension_numbers = #tpu.dot_dimension_numbers<[1], [0], [0], [1], [0, 0, 1, 1], [], []>} : vector<256x96xbf16>, vector<96x32xbf16>, vector<256x32xf32> -> vector<256x32xf32>
    %46 = vector.extract_strided_slice %45 {offsets = [1, 0], sizes = [255, 32], strides = [1, 1]} : vector<256x32xf32> to vector<255x32xf32>
    %47 = vector.extract_strided_slice %45 {offsets = [0, 0], sizes = [1, 32], strides = [1, 1]} : vector<256x32xf32> to vector<1x32xf32>
    %48 = tpu.concatenate %46, %47 in 0 : vector<255x32xf32>, vector<1x32xf32> -> vector<256x32xf32>
    %49 = arith.addf %43, %48 : vector<256x32xf32>
    %50 = vector.extract_strided_slice %41 {offsets = [0, 0], sizes = [1, 32], strides = [1, 1]} : vector<1x128xf32> to vector<1x32xf32>
    %51 = vector.broadcast %50 : vector<1x32xf32> to vector<256x32xf32>
    %52 = arith.addf %49, %51 : vector<256x32xf32>
    %cst_27 = arith.constant 0.000000e+00 : f32
    %53 = vector.broadcast %cst_27 : f32 to vector<256x32xf32>
    %54 = arith.maximumf %52, %53 : vector<256x32xf32>
    %55 = vector.shape_cast %54 : vector<256x32xf32> to vector<16x16x32xf32>
    %56 = tpu.iota {dimensions = array<i32: 1>} : vector<16x16x32xi32>
    %c8_i32 = arith.constant 8 : i32
    %57 = vector.broadcast %c8_i32 : i32 to vector<16x16x32xi32>
    %58 = arith.cmpi slt, %56, %57 : vector<16x16x32xi32>
    %cst_28 = arith.constant 0.000000e+00 : f32
    %59 = vector.broadcast %cst_28 : f32 to vector<16x16x32xf32>
    %60 = arith.select %58, %55, %59 : vector<16x16x32xi1>, vector<16x16x32xf32>
    %cst_29 = arith.constant dense<0.000000e+00> : vector<16x32xf32>
    %61 = vector.multi_reduction <add>, %60, %cst_29 [1] : vector<16x16x32xf32> to vector<16x32xf32>
    %cst_30 = arith.constant 1.250000e-01 : f32
    %62 = vector.broadcast %cst_30 : f32 to vector<16x32xf32>
    %63 = arith.mulf %61, %62 : vector<16x32xf32>
    %c0_31 = arith.constant 0 : index
    %c0_32 = arith.constant 0 : index
    %64 = vector.load %arg3[%c0_31, %c0_32] : memref<16x16xbf16, #tpu.memory_space<vmem>>, vector<16x16xbf16>
    %c0_33 = arith.constant 0 : index
    %c0_34 = arith.constant 0 : index
    %65 = vector.load %arg10[%c0_33, %c0_34] : memref<16x16xbf16, #tpu.memory_space<vmem>>, vector<16x16xbf16>
    %cst_35 = arith.constant dense<0.000000e+00> : vector<16x16xf32>
    %66 = tpu.matmul %64, %65, %cst_35 {dimension_numbers = #tpu.dot_dimension_numbers<[1], [0], [0], [1], [0, 0, 1, 1], [], []>} : vector<16x16xbf16>, vector<16x16xbf16>, vector<16x16xf32> -> vector<16x16xf32>
    %67 = vector.extract_strided_slice %0 {offsets = [3, 0], sizes = [1, 16], strides = [1, 1]} : vector<8x128xf32> to vector<1x16xf32>
    %68 = vector.broadcast %67 : vector<1x16xf32> to vector<16x16xf32>
    %69 = arith.addf %66, %68 : vector<16x16xf32>
    %cst_36 = arith.constant 0.000000e+00 : f32
    %70 = vector.broadcast %cst_36 : f32 to vector<16x16xf32>
    %71 = arith.maximumf %69, %70 : vector<16x16xf32>
    %72 = arith.truncf %24 : vector<16x64xf32> to vector<16x64xbf16>
    %c0_37 = arith.constant 0 : index
    %c0_38 = arith.constant 0 : index
    %73 = vector.load %arg11[%c0_37, %c0_38] : memref<64x64xbf16, #tpu.memory_space<vmem>>, vector<64x64xbf16>
    %cst_39 = arith.constant dense<0.000000e+00> : vector<16x64xf32>
    %74 = tpu.matmul %72, %73, %cst_39 {dimension_numbers = #tpu.dot_dimension_numbers<[1], [0], [0], [1], [0, 0, 1, 1], [], []>} : vector<16x64xbf16>, vector<64x64xbf16>, vector<16x64xf32> -> vector<16x64xf32>
    %75 = arith.truncf %63 : vector<16x32xf32> to vector<16x32xbf16>
    %c0_40 = arith.constant 0 : index
    %c0_41 = arith.constant 0 : index
    %76 = vector.load %arg12[%c0_40, %c0_41] : memref<32x64xbf16, #tpu.memory_space<vmem>>, vector<32x64xbf16>
    %cst_42 = arith.constant dense<0.000000e+00> : vector<16x64xf32>
    %77 = tpu.matmul %75, %76, %cst_42 {dimension_numbers = #tpu.dot_dimension_numbers<[1], [0], [0], [1], [0, 0, 1, 1], [], []>} : vector<16x32xbf16>, vector<32x64xbf16>, vector<16x64xf32> -> vector<16x64xf32>
    %78 = arith.addf %74, %77 : vector<16x64xf32>
    %79 = arith.truncf %71 : vector<16x16xf32> to vector<16x16xbf16>
    %c0_43 = arith.constant 0 : index
    %c0_44 = arith.constant 0 : index
    %80 = vector.load %arg13[%c0_43, %c0_44] : memref<16x64xbf16, #tpu.memory_space<vmem>>, vector<16x64xbf16>
    %cst_45 = arith.constant dense<0.000000e+00> : vector<16x64xf32>
    %81 = tpu.matmul %79, %80, %cst_45 {dimension_numbers = #tpu.dot_dimension_numbers<[1], [0], [0], [1], [0, 0, 1, 1], [], []>} : vector<16x16xbf16>, vector<16x64xbf16>, vector<16x64xf32> -> vector<16x64xf32>
    %82 = arith.addf %78, %81 : vector<16x64xf32>
    %83 = vector.extract_strided_slice %0 {offsets = [4, 0], sizes = [1, 64], strides = [1, 1]} : vector<8x128xf32> to vector<1x64xf32>
    %84 = vector.broadcast %83 : vector<1x64xf32> to vector<16x64xf32>
    %85 = arith.addf %82, %84 : vector<16x64xf32>
    %cst_46 = arith.constant 0.000000e+00 : f32
    %86 = vector.broadcast %cst_46 : f32 to vector<16x64xf32>
    %87 = arith.maximumf %85, %86 : vector<16x64xf32>
    %88 = arith.truncf %87 : vector<16x64xf32> to vector<16x64xbf16>
    %c0_47 = arith.constant 0 : index
    %c0_48 = arith.constant 0 : index
    %89 = vector.load %arg14[%c0_47, %c0_48] : memref<64x128xbf16, #tpu.memory_space<vmem>>, vector<64x128xbf16>
    %cst_49 = arith.constant dense<0.000000e+00> : vector<16x128xf32>
    %90 = tpu.matmul %88, %89, %cst_49 {dimension_numbers = #tpu.dot_dimension_numbers<[1], [0], [0], [1], [0, 0, 1, 1], [], []>} : vector<16x64xbf16>, vector<64x128xbf16>, vector<16x128xf32> -> vector<16x128xf32>
    %91 = vector.extract_strided_slice %0 {offsets = [5, 0], sizes = [1, 128], strides = [1, 1]} : vector<8x128xf32> to vector<1x128xf32>
    %92 = vector.broadcast %91 : vector<1x128xf32> to vector<16x128xf32>
    %93 = arith.addf %90, %92 : vector<16x128xf32>
    %c0_50 = arith.constant 0 : index
    %c0_51 = arith.constant 0 : index
    %94 = vector.load %arg16[%c0_50, %c0_51] : memref<16x128xf32, #tpu.memory_space<vmem>>, vector<16x128xf32>
    tpu.vector_store %arg16[%c0_50, %c0_51], %93 {strides = array<i32>} : memref<16x128xf32, #tpu.memory_space<vmem>>, vector<16x128xf32>,
    return
  }
  func.func @transform_0(%arg0: i32) -> (i32, i32) {
    %c0_i32 = arith.constant 0 : i32
    %c0_i32_0 = arith.constant 0 : i32
    return %arg0, %c0_i32 : i32, i32
  }
  func.func @transform_1(%arg0: i32) -> (i32, i32) {
    %c0_i32 = arith.constant 0 : i32
    %c0_i32_0 = arith.constant 0 : i32
    return %arg0, %c0_i32 : i32, i32
  }
  func.func @transform_2(%arg0: i32) -> (i32, i32) {
    %c0_i32 = arith.constant 0 : i32
    %c0_i32_0 = arith.constant 0 : i32
    return %arg0, %c0_i32 : i32, i32
  }
  func.func @transform_3(%arg0: i32) -> (i32, i32) {
    %c0_i32 = arith.constant 0 : i32
    %c0_i32_0 = arith.constant 0 : i32
    %c0_i32_1 = arith.constant 0 : i32
    return %c0_i32, %c0_i32_0 : i32, i32
  }
  func.func @transform_4(%arg0: i32) -> (i32, i32) {
    %c0_i32 = arith.constant 0 : i32
    %c0_i32_0 = arith.constant 0 : i32
    %c0_i32_1 = arith.constant 0 : i32
    return %c0_i32, %c0_i32_0 : i32, i32
  }
  func.func @transform_5(%arg0: i32) -> (i32, i32) {
    %c0_i32 = arith.constant 0 : i32
    %c0_i32_0 = arith.constant 0 : i32
    %c0_i32_1 = arith.constant 0 : i32
    return %c0_i32, %c0_i32_0 : i32, i32
  }
  func.func @transform_6(%arg0: i32) -> (i32, i32) {
    %c0_i32 = arith.constant 0 : i32
    %c0_i32_0 = arith.constant 0 : i32
    %c0_i32_1 = arith.constant 0 : i32
    return %c0_i32, %c0_i32_0 : i32, i32
  }
  func.func @transform_7(%arg0: i32) -> (i32, i32) {
    %c0_i32 = arith.constant 0 : i32
    %c0_i32_0 = arith.constant 0 : i32
    %c0_i32_1 = arith.constant 0 : i32
    return %c0_i32, %c0_i32_0 : i32, i32
  }
  func.func @transform_8(%arg0: i32) -> (i32, i32) {
    %c0_i32 = arith.constant 0 : i32
    %c0_i32_0 = arith.constant 0 : i32
    %c0_i32_1 = arith.constant 0 : i32
    return %c0_i32, %c0_i32_0 : i32, i32
  }
  func.func @transform_9(%arg0: i32) -> (i32, i32) {
    %c0_i32 = arith.constant 0 : i32
    %c0_i32_0 = arith.constant 0 : i32
    %c0_i32_1 = arith.constant 0 : i32
    return %c0_i32, %c0_i32_0 : i32, i32
  }
  func.func @transform_10(%arg0: i32) -> (i32, i32) {
    %c0_i32 = arith.constant 0 : i32
    %c0_i32_0 = arith.constant 0 : i32
    %c0_i32_1 = arith.constant 0 : i32
    return %c0_i32, %c0_i32_0 : i32, i32
  }
  func.func @transform_11(%arg0: i32) -> (i32, i32) {
    %c0_i32 = arith.constant 0 : i32
    %c0_i32_0 = arith.constant 0 : i32
    %c0_i32_1 = arith.constant 0 : i32
    return %c0_i32, %c0_i32_0 : i32, i32
  }
  func.func @transform_12(%arg0: i32) -> (i32, i32) {
    %c0_i32 = arith.constant 0 : i32
    %c0_i32_0 = arith.constant 0 : i32
    %c0_i32_1 = arith.constant 0 : i32
    return %c0_i32, %c0_i32_0 : i32, i32
  }
  func.func @transform_13(%arg0: i32) -> (i32, i32) {
    %c0_i32 = arith.constant 0 : i32
    %c0_i32_0 = arith.constant 0 : i32
    %c0_i32_1 = arith.constant 0 : i32
    return %c0_i32, %c0_i32_0 : i32, i32
  }
  func.func @transform_14(%arg0: i32) -> (i32, i32) {
    %c0_i32 = arith.constant 0 : i32
    %c0_i32_0 = arith.constant 0 : i32
    %c0_i32_1 = arith.constant 0 : i32
    return %c0_i32, %c0_i32_0 : i32, i32
  }
  func.func @transform_15(%arg0: i32) -> (i32, i32) {
    %c0_i32 = arith.constant 0 : i32
    %c0_i32_0 = arith.constant 0 : i32
    return %arg0, %c0_i32 : i32, i32
  }
}

</mosaic_0001>

<bundles_post_ra>
// kernel: tpu_custom_call.1
= control target key start
LH: loop header
LB: loop body
LE: loop exit
PB: predicated region body
PF: predicated region fallthrough
CT: control target
= control target key end

     0   :  { %6 = vsyncpa [#allocation3], 0  ;;  %s147_s0 = inlined_call_operand.hbm [shape: s32[16,128], index: 0, kind: input, shape index: {}]   ;;  %s148_s1 = inlined_call_operand.hbm [shape: s32[16,128], index: 1, kind: output, shape index: {}]  }
   0x1   :  { %7 = vsyncpa [#allocation4], 0  ;;  %s103_s6 = smov [#allocation2]   ;;  %s55_s10 = scalar_lea.hbm %s147_s0, 256 }
   0x2   :  { %s13_s7 = sshll.u32 %s103_s6, 4  ;;  %p56_p0 = scmp.ne.s32.totalorder %s147_s0, %s55_s10  ;;  %s14_s7 = int_to_ptr.vmem [resolvable:$true] %s13_s7 }
   0x3   :  { %p59_p1 = scmp.lt.u32.totalorder %s55_s10, %s147_s0 }
   0x5   :  { %p61_p2 = pnand %p59_p1, %p56_p0 }
   0x7   :  { %64 = shalt.err (!%p61_p2)
}
   0x8   :  { %s65_s15 = scalar_lea.vmem %s14_s7, 256  ;;  %p70_p4 = scmp.lt.s32.totalorder %s14_s7, %s14_s7 }
   0x9   :  { %p66_p3 = scmp.ne.s32.totalorder %s14_s7, %s65_s15  ;;  %p71_p5 = scmp.lt.s32.totalorder %s65_s15, %s65_s15 }
   0xb   :  { %p72_p6 = por %p71_p5, %p70_p4 }
   0xd   :  { %p73_p7 = pnand %p72_p6, %p66_p3 }
   0xf   :  { %76 = shalt.err (!%p73_p7)
}
  0x10   :  { %s104_s16 = smov 128   ;;  %s105_s17 = smov 8  }
  0x11   :  { %19 = dma.hbm_to_vmem [thread:$0]  %s147_s0, 256, %s14_s7, [#allocation3], %s104_s16, %s104_s16, %s105_s17  }
  0x12   :  { %99 = dma.done.wait [#allocation3], 256  }
  0x13   :  { %100 = vsyncadd [#allocation3], 4294967040  ;;  %v27_v0 = vlaneseq  ;;  %s106_s20 = smov [#allocation5]   ;;  %v23_v2 = vld [vmem:[#allocation2] sm:$0xff]  ;;  %v24_v3 = vld [vmem:[#allocation2 + $0x8] sm:$0xff] }
  0x14   :  { %s39_s21 = sshll.u32 %s106_s20, 4  ;;  %v25_v4 = vrot.slane %v23_v2, 1  ;;  %v26_v5 = vrot.slane %v24_v3, 1  ;;  %s40_s21 = int_to_ptr.vmem [resolvable:$true] %s39_s21 }
  0x15   :  { %v28_v1 = vshrl.u32 %v27_v0, 7  ;;  %s77_s22 = scalar_lea.vmem %s40_s21, 256  ;;  %p82_p9 = scmp.lt.s32.totalorder %s40_s21, %s40_s21 }
  0x16   :  { %p78_p8 = scmp.ne.s32.totalorder %s40_s21, %s77_s22  ;;  %p83_p10 = scmp.lt.s32.totalorder %s77_s22, %s77_s22 }
  0x17   :  { %vm29_vm0 = vcmp.lt.s32.totalorder %v28_v1, 7 }
  0x18   :  { %v30_v6 = vsel %vm29_vm0, %v25_v4, %v26_v5  ;;  %v31_v7 = vsel %vm29_vm0, %v26_v5, %v25_v4  ;;  %p84_p11 = por %p83_p10, %p82_p9 }
  0x19   :  { %32 = vst [vmem:[#allocation5] sm:$0xff] %v30_v6  ;;  %33 = vst [vmem:[#allocation5 + $0x8] sm:$0xff] %v31_v7 }
  0x1a   :  { %p85_p12 = pnand %p84_p11, %p78_p8 }
  0x1c   :  { %88 = shalt.err (!%p85_p12)
}
  0x1d   :  { %s89_s24 = scalar_lea.hbm %s148_s1, 256 }
  0x1e   :  { %p90_p13 = scmp.ne.s32.totalorder %s148_s1, %s89_s24  ;;  %p93_p0 = scmp.lt.u32.totalorder %s89_s24, %s148_s1 }
  0x20   :  { %p95_p1 = pnand %p93_p0, %p90_p13 }
  0x22   :  { %98 = shalt.err (!%p95_p1)
}
  0x23   :  { %45 = dma.vmem_to_hbm [thread:$0]  %s40_s21, 256, %s148_s1, [#allocation4], %s104_s16, %s104_s16, %s105_s17  }
  0x24   :  { %101 = dma.done.wait [#allocation4], 256  }
  0x25   :  { %102 = vsyncadd [#allocation4], 4294967040 }
  0x26   :  { %49 = vsyncpa [#allocation3], 1 }
  0x27   :  { %50 = vsyncpa [#allocation4], 1 }

// kernel: three_inputs_net.1
= control target key start
LH: loop header
LB: loop body
LE: loop exit
PB: predicated region body
PF: predicated region fallthrough
CT: control target
= control target key end

     0   :  { %20 = vsyncpa [#allocation3], 0  ;;  %s4917_s0 = inlined_call_operand.hbm [shape: bf16[128,32], index: 0, kind: input, shape index: {}]   ;;  %s4918_s1 = inlined_call_operand.hbm [shape: bf16[256,32], index: 1, kind: input, shape index: {}]   ;;  %s4919_s2 = inlined_call_operand.hbm [shape: bf16[16,16], index: 2, kind: input, shape index: {}]   ;;  %s4920_s3 = inlined_call_operand.hbm [shape: bf16[32,64], index: 3, kind: input, shape index: {}]   ;;  %s4921_s4 = inlined_call_operand.hbm [shape: bf16[32,64], index: 4, kind: input, shape index: {}]   ;;  %s4922_s5 = inlined_call_operand.hbm [shape: bf16[32,96], index: 5, kind: input, shape index: {}]   ;;  %s4923_s6 = inlined_call_operand.hbm [shape: bf16[32,96], index: 6, kind: input, shape index: {}]   ;;  %s4924_s7 = inlined_call_operand.hbm [shape: bf16[96,32], index: 7, kind: input, shape index: {}]   ;;  %s4925_s8 = inlined_call_operand.hbm [shape: bf16[96,32], index: 8, kind: input, shape index: {}]   ;;  %s4926_s9 = inlined_call_operand.hbm [shape: bf16[16,16], index: 9, kind: input, shape index: {}]   ;;  %s4927_s10 = inlined_call_operand.hbm [shape: bf16[64,64], index: 10, kind: input, shape index: {}]   ;;  %s4928_s11 = inlined_call_operand.hbm [shape: bf16[32,64], index: 11, kind: input, shape index: {}]   ;;  %s4929_s12 = inlined_call_operand.hbm [shape: bf16[16,64], index: 12, kind: input, shape index: {}]   ;;  %s4930_s13 = inlined_call_operand.hbm [shape: bf16[64,128], index: 13, kind: input, shape index: {}]   ;;  %s4931_s14 = inlined_call_operand.hbm [shape: f32[8,128], index: 14, kind: input, shape index: {}]   ;;  %s4932_s15 = inlined_call_operand.hbm [shape: f32[16,128], index: 15, kind: output, shape index: {}]  }
   0x1   :  { %21 = vsyncpa [#allocation6], 0 }
   0x2   :  { %22 = vsyncpa [#allocation9], 0 }
   0x3   :  { %23 = vsyncpa [#allocation12], 0 }
   0x4   :  { %24 = vsyncpa [#allocation15], 0 }
   0x5   :  { %25 = vsyncpa [#allocation18], 0 }
   0x6   :  { %26 = vsyncpa [#allocation21], 0 }
   0x7   :  { %27 = vsyncpa [#allocation24], 0 }
   0x8   :  { %28 = vsyncpa [#allocation4], 0  ;;  %s3855_s18 = smov [#allocation5]   ;;  %s3856_s20 = smov [#allocation8]  }
   0x9   :  { %s46_s19 = sshll.u32 %s3855_s18, 4  ;;  %s70_s21 = sshll.u32 %s3856_s20, 4  ;;  %s47_s19 = int_to_ptr.vmem [resolvable:$true] %s46_s19  ;;  %s3957_s21 = int_to_ptr.vmem [resolvable:$true] %s70_s21 }
   0xa   :  { %s3485_s24 = scalar_lea.hbm %s4918_s1, 2048 }
   0xb   :  { %p3486_p0 = scmp.ne.s32.totalorder %s4918_s1, %s3485_s24  ;;  %p3489_p1 = scmp.lt.u32.totalorder %s3485_s24, %s4918_s1 }
   0xd   :  { %p3491_p2 = pnand %p3489_p1, %p3486_p0 }
   0xf   :  { %3494 = shalt.err (!%p3491_p2)
}
  0x10   :  { %s3495_s29 = scalar_lea.vmem %s47_s19, 2048  ;;  %p3500_p4 = scmp.lt.s32.totalorder %s47_s19, %s47_s19 }
  0x11   :  { %p3496_p3 = scmp.ne.s32.totalorder %s47_s19, %s3495_s29  ;;  %p3501_p5 = scmp.lt.s32.totalorder %s3495_s29, %s3495_s29 }
  0x13   :  { %p3502_p6 = por %p3501_p5, %p3500_p4 }
  0x15   :  { %p3503_p7 = pnand %p3502_p6, %p3496_p3 }
  0x17   :  { %3506 = shalt.err (!%p3503_p7)
}
  0x18   :  { %s3857_s30 = smov 64   ;;  %s3858_s16 = smov 4  }
  0x19   :  { %52 = dma.hbm_to_vmem [thread:$0]  %s4918_s1, 2048, %s47_s19, [#allocation6], %s3857_s30, %s3857_s30, %s3858_s16  }
  0x1a   :  { %s3507_s23 = scalar_lea.hbm %s4920_s3, 256 }
  0x1b   :  { %p3508_p8 = scmp.ne.s32.totalorder %s4920_s3, %s3507_s23  ;;  %p3511_p9 = scmp.lt.u32.totalorder %s3507_s23, %s4920_s3 }
  0x1d   :  { %p3513_p10 = pnand %p3511_p9, %p3508_p8 }
  0x1f   :  { %3516 = shalt.err (!%p3513_p10)
}
  0x20   :  { %s3517_s28 = scalar_lea.vmem %s3957_s21, 256  ;;  %p3522_p12 = scmp.lt.s32.totalorder %s3957_s21, %s3957_s21 }
  0x21   :  { %p3518_p11 = scmp.ne.s32.totalorder %s3957_s21, %s3517_s28  ;;  %p3523_p13 = scmp.lt.s32.totalorder %s3517_s28, %s3517_s28 }
  0x23   :  { %p3524_p0 = por %p3523_p13, %p3522_p12 }
  0x25   :  { %p3525_p1 = pnand %p3524_p0, %p3518_p11 }
  0x27   :  { %3528 = shalt.err (!%p3525_p1)
}
  0x28   :  { %76 = dma.hbm_to_vmem [thread:$0]  %s4920_s3, 256, %s3957_s21, [#allocation9], %s3857_s30, %s3857_s30, %s3858_s16  }
  0x29   :  { %s3859_s29 = smov [#allocation11]   ;;  %s3860_s18 = smov [#allocation14]  }
  0x2a   :  { %s94_s17 = sshll.u32 %s3859_s29, 4  ;;  %s118_s20 = sshll.u32 %s3860_s18, 4  ;;  %s95_s17 = int_to_ptr.vmem [resolvable:$true] %s94_s17  ;;  %s3994_s20 = int_to_ptr.vmem [resolvable:$true] %s118_s20 }
  0x2b   :  { %s3529_s24 = scalar_lea.hbm %s4922_s5, 256 }
  0x2c   :  { %p3530_p2 = scmp.ne.s32.totalorder %s4922_s5, %s3529_s24  ;;  %p3533_p3 = scmp.lt.u32.totalorder %s3529_s24, %s4922_s5 }
  0x2e   :  { %p3535_p4 = pnand %p3533_p3, %p3530_p2 }
  0x30   :  { %3538 = shalt.err (!%p3535_p4)
}
  0x31   :  { %s3539_s3 = scalar_lea.vmem %s95_s17, 256  ;;  %p3544_p6 = scmp.lt.s32.totalorder %s95_s17, %s95_s17 }
  0x32   :  { %p3540_p5 = scmp.ne.s32.totalorder %s95_s17, %s3539_s3  ;;  %p3545_p7 = scmp.lt.s32.totalorder %s3539_s3, %s3539_s3 }
  0x34   :  { %p3546_p8 = por %p3545_p7, %p3544_p6 }
  0x36   :  { %p3547_p9 = pnand %p3546_p8, %p3540_p5 }
  0x38   :  { %3550 = shalt.err (!%p3547_p9)
}
  0x39   :  { %100 = dma.hbm_to_vmem [thread:$0]  %s4922_s5, 256, %s95_s17, [#allocation12], %s3857_s30, %s3857_s30, %s3858_s16  }
  0x3a   :  { %s3551_s18 = scalar_lea.hbm %s4924_s7, 768 }
  0x3b   :  { %p3552_p10 = scmp.ne.s32.totalorder %s4924_s7, %s3551_s18  ;;  %p3555_p11 = scmp.lt.u32.totalorder %s3551_s18, %s4924_s7 }
  0x3d   :  { %p3557_p12 = pnand %p3555_p11, %p3552_p10 }
  0x3f   :  { %3560 = shalt.err (!%p3557_p12)
}
  0x40   :  { %s3561_s26 = scalar_lea.vmem %s3994_s20, 768  ;;  %p3566_p0 = scmp.lt.s32.totalorder %s3994_s20, %s3994_s20 }
  0x41   :  { %p3562_p13 = scmp.ne.s32.totalorder %s3994_s20, %s3561_s26  ;;  %p3567_p1 = scmp.lt.s32.totalorder %s3561_s26, %s3561_s26 }
  0x43   :  { %p3568_p2 = por %p3567_p1, %p3566_p0 }
  0x45   :  { %p3569_p3 = pnand %p3568_p2, %p3562_p13 }
  0x47   :  { %3572 = shalt.err (!%p3569_p3)
}
  0x48   :  { %124 = dma.hbm_to_vmem [thread:$0]  %s4924_s7, 768, %s3994_s20, [#allocation15], %s3857_s30, %s3857_s30, %s3858_s16  }
  0x49   :  { %s3861_s27 = smov [#allocation17]   ;;  %s3862_s3 = smov [#allocation20]  }
  0x4a   :  { %s142_s28 = sshll.u32 %s3861_s27, 4  ;;  %s166_s21 = sshll.u32 %s3862_s3, 4  ;;  %s143_s28 = int_to_ptr.vmem [resolvable:$true] %s142_s28  ;;  %s4031_s21 = int_to_ptr.vmem [resolvable:$true] %s166_s21 }
  0x4b   :  { %s3573_s29 = scalar_lea.hbm %s4926_s9, 128 }
  0x4c   :  { %p3574_p4 = scmp.ne.s32.totalorder %s4926_s9, %s3573_s29  ;;  %p3577_p5 = scmp.lt.u32.totalorder %s3573_s29, %s4926_s9 }
  0x4e   :  { %p3579_p6 = pnand %p3577_p5, %p3574_p4 }
  0x50   :  { %3582 = shalt.err (!%p3579_p6)
}
  0x51   :  { %s3583_s7 = scalar_lea.vmem %s143_s28, 128  ;;  %p3588_p8 = scmp.lt.s32.totalorder %s143_s28, %s143_s28 }
  0x52   :  { %p3584_p7 = scmp.ne.s32.totalorder %s143_s28, %s3583_s7  ;;  %p3589_p9 = scmp.lt.s32.totalorder %s3583_s7, %s3583_s7 }
  0x54   :  { %p3590_p10 = por %p3589_p9, %p3588_p8 }
  0x56   :  { %p3591_p11 = pnand %p3590_p10, %p3584_p7 }
  0x58   :  { %3594 = shalt.err (!%p3591_p11)
}
  0x59   :  { %148 = dma.hbm_to_vmem [thread:$0]  %s4926_s9, 128, %s143_s28, [#allocation18], %s3857_s30, %s3857_s30, %s3858_s16  }
  0x5a   :  { %s3595_s17 = scalar_lea.hbm %s4928_s11, 256 }
  0x5b   :  { %p3596_p12 = scmp.ne.s32.totalorder %s4928_s11, %s3595_s17  ;;  %p3599_p13 = scmp.lt.u32.totalorder %s3595_s17, %s4928_s11 }
  0x5d   :  { %p3601_p0 = pnand %p3599_p13, %p3596_p12 }
  0x5f   :  { %3604 = shalt.err (!%p3601_p0)
}
  0x60   :  { %s3605_s29 = scalar_lea.vmem %s4031_s21, 256  ;;  %p3610_p2 = scmp.lt.s32.totalorder %s4031_s21, %s4031_s21 }
  0x61   :  { %p3606_p1 = scmp.ne.s32.totalorder %s4031_s21, %s3605_s29  ;;  %p3611_p3 = scmp.lt.s32.totalorder %s3605_s29, %s3605_s29 }
  0x63   :  { %p3612_p4 = por %p3611_p3, %p3610_p2 }
  0x65   :  { %p3613_p5 = pnand %p3612_p4, %p3606_p1 }
  0x67   :  { %3616 = shalt.err (!%p3613_p5)
}
  0x68   :  { %172 = dma.hbm_to_vmem [thread:$0]  %s4928_s11, 256, %s4031_s21, [#allocation21], %s3857_s30, %s3857_s30, %s3858_s16  }
  0x69   :  { %s3863_s18 = smov [#allocation23]   ;;  %s3864_s23 = smov [#allocation2]  }
  0x6a   :  { %s190_s22 = sshll.u32 %s3863_s18, 4  ;;  %s34_s24 = sshll.u32 %s3864_s23, 4  ;;  %s191_s22 = int_to_ptr.vmem [resolvable:$true] %s190_s22  ;;  %s4068_s24 = int_to_ptr.vmem [resolvable:$true] %s34_s24 }
  0x6b   :  { %s3617_s25 = scalar_lea.hbm %s4930_s13, 512 }
  0x6c   :  { %p3618_p6 = scmp.ne.s32.totalorder %s4930_s13, %s3617_s25  ;;  %p3621_p7 = scmp.lt.u32.totalorder %s3617_s25, %s4930_s13 }
  0x6e   :  { %p3623_p8 = pnand %p3621_p7, %p3618_p6 }
  0x70   :  { %3626 = shalt.err (!%p3623_p8)
}
  0x71   :  { %s3627_s11 = scalar_lea.vmem %s191_s22, 512  ;;  %p3632_p10 = scmp.lt.s32.totalorder %s191_s22, %s191_s22 }
  0x72   :  { %p3628_p9 = scmp.ne.s32.totalorder %s191_s22, %s3627_s11  ;;  %p3633_p11 = scmp.lt.s32.totalorder %s3627_s11, %s3627_s11 }
  0x74   :  { %p3634_p12 = por %p3633_p11, %p3632_p10 }
  0x76   :  { %p3635_p13 = pnand %p3634_p12, %p3628_p9 }
  0x78   :  { %3638 = shalt.err (!%p3635_p13)
}
  0x79   :  { %196 = dma.hbm_to_vmem [thread:$0]  %s4930_s13, 512, %s191_s22, [#allocation24], %s3857_s30, %s3857_s30, %s3858_s16  }
  0x7a   :  { %s3639_s29 = scalar_lea.hbm %s4917_s0, 1024 }
  0x7b   :  { %p3640_p0 = scmp.ne.s32.totalorder %s4917_s0, %s3639_s29  ;;  %p3643_p1 = scmp.lt.u32.totalorder %s3639_s29, %s4917_s0 }
  0x7d   :  { %p3645_p2 = pnand %p3643_p1, %p3640_p0 }
  0x7f   :  { %3648 = shalt.err (!%p3645_p2)
}
  0x80   :  { %s3649_s7 = scalar_lea.vmem %s4068_s24, 1024  ;;  %p3654_p4 = scmp.lt.s32.totalorder %s4068_s24, %s4068_s24 }
  0x81   :  { %p3650_p3 = scmp.ne.s32.totalorder %s4068_s24, %s3649_s7  ;;  %p3655_p5 = scmp.lt.s32.totalorder %s3649_s7, %s3649_s7 }
  0x83   :  { %p3656_p6 = por %p3655_p5, %p3654_p4 }
  0x85   :  { %p3657_p7 = pnand %p3656_p6, %p3650_p3 }
  0x87   :  { %3660 = shalt.err (!%p3657_p7)
}
  0x88   :  { %40 = dma.hbm_to_vmem [thread:$0]  %s4917_s0, 1024, %s4068_s24, [#allocation3], %s3857_s30, %s3857_s30, %s3858_s16  }
  0x89   :  { %s3865_s20 = smov [#allocation7]   ;;  %s3866_s26 = smov [#allocation10]  }
  0x8a   :  { %s58_s25 = sshll.u32 %s3865_s20, 4  ;;  %s82_s5 = sshll.u32 %s3866_s26, 4  ;;  %s59_s25 = int_to_ptr.vmem [resolvable:$true] %s58_s25  ;;  %s4105_s5 = int_to_ptr.vmem [resolvable:$true] %s82_s5 }
  0x8b   :  { %s3661_s11 = scalar_lea.hbm %s4919_s2, 128 }
  0x8c   :  { %p3662_p8 = scmp.ne.s32.totalorder %s4919_s2, %s3661_s11  ;;  %p3665_p9 = scmp.lt.u32.totalorder %s3661_s11, %s4919_s2 }
  0x8e   :  { %p3667_p10 = pnand %p3665_p9, %p3662_p8 }
  0x90   :  { %3670 = shalt.err (!%p3667_p10)
}
  0x91   :  { %s3671_s0 = scalar_lea.vmem %s59_s25, 128  ;;  %p3676_p12 = scmp.lt.s32.totalorder %s59_s25, %s59_s25 }
  0x92   :  { %p3672_p11 = scmp.ne.s32.totalorder %s59_s25, %s3671_s0  ;;  %p3677_p13 = scmp.lt.s32.totalorder %s3671_s0, %s3671_s0 }
  0x94   :  { %p3678_p0 = por %p3677_p13, %p3676_p12 }
  0x96   :  { %p3679_p1 = pnand %p3678_p0, %p3672_p11 }
  0x98   :  { %3682 = shalt.err (!%p3679_p1)
}
  0x99   :  { %64 = dma.hbm_to_vmem [thread:$0]  %s4919_s2, 128, %s59_s25, [#allocation6], %s3857_s30, %s3857_s30, %s3858_s16  }
  0x9a   :  { %s3683_s18 = scalar_lea.hbm %s4921_s4, 256 }
  0x9b   :  { %p3684_p2 = scmp.ne.s32.totalorder %s4921_s4, %s3683_s18  ;;  %p3687_p3 = scmp.lt.u32.totalorder %s3683_s18, %s4921_s4 }
  0x9d   :  { %p3689_p4 = pnand %p3687_p3, %p3684_p2 }
  0x9f   :  { %3692 = shalt.err (!%p3689_p4)
}
  0xa0   :  { %s3693_s20 = scalar_lea.vmem %s4105_s5, 256  ;;  %p3698_p6 = scmp.lt.s32.totalorder %s4105_s5, %s4105_s5 }
  0xa1   :  { %p3694_p5 = scmp.ne.s32.totalorder %s4105_s5, %s3693_s20  ;;  %p3699_p7 = scmp.lt.s32.totalorder %s3693_s20, %s3693_s20 }
  0xa3   :  { %p3700_p8 = por %p3699_p7, %p3698_p6 }
  0xa5   :  { %p3701_p9 = pnand %p3700_p8, %p3694_p5 }
  0xa7   :  { %3704 = shalt.err (!%p3701_p9)
}
  0xa8   :  { %88 = dma.hbm_to_vmem [thread:$0]  %s4921_s4, 256, %s4105_s5, [#allocation9], %s3857_s30, %s3857_s30, %s3858_s16  }
  0xa9   :  { %s3867_s26 = smov [#allocation13]   ;;  %s3868_s27 = smov [#allocation16]  }
  0xaa   :  { %s106_s17 = sshll.u32 %s3867_s26, 4  ;;  %s130_s11 = sshll.u32 %s3868_s27, 4  ;;  %s107_s17 = int_to_ptr.vmem [resolvable:$true] %s106_s17  ;;  %s4142_s11 = int_to_ptr.vmem [resolvable:$true] %s130_s11 }
  0xab   :  { %s3705_s1 = scalar_lea.hbm %s4923_s6, 256 }
  0xac   :  { %p3706_p10 = scmp.ne.s32.totalorder %s4923_s6, %s3705_s1  ;;  %p3709_p11 = scmp.lt.u32.totalorder %s3705_s1, %s4923_s6 }
  0xae   :  { %p3711_p12 = pnand %p3709_p11, %p3706_p10 }
  0xb0   :  { %3714 = shalt.err (!%p3711_p12)
}
  0xb1   :  { %s3715_s4 = scalar_lea.vmem %s107_s17, 256  ;;  %p3720_p0 = scmp.lt.s32.totalorder %s107_s17, %s107_s17 }
  0xb2   :  { %p3716_p13 = scmp.ne.s32.totalorder %s107_s17, %s3715_s4  ;;  %p3721_p1 = scmp.lt.s32.totalorder %s3715_s4, %s3715_s4 }
  0xb4   :  { %p3722_p2 = por %p3721_p1, %p3720_p0 }
  0xb6   :  { %p3723_p3 = pnand %p3722_p2, %p3716_p13 }
  0xb8   :  { %3726 = shalt.err (!%p3723_p3)
}
  0xb9   :  { %112 = dma.hbm_to_vmem [thread:$0]  %s4923_s6, 256, %s107_s17, [#allocation12], %s3857_s30, %s3857_s30, %s3858_s16  }
  0xba   :  { %s3727_s23 = scalar_lea.hbm %s4925_s8, 768 }
  0xbb   :  { %p3728_p4 = scmp.ne.s32.totalorder %s4925_s8, %s3727_s23  ;;  %p3731_p5 = scmp.lt.u32.totalorder %s3727_s23, %s4925_s8 }
  0xbd   :  { %p3733_p6 = pnand %p3731_p5, %p3728_p4 }
  0xbf   :  { %3736 = shalt.err (!%p3733_p6)
}
  0xc0   :  { %s3737_s2 = scalar_lea.vmem %s4142_s11, 768  ;;  %p3742_p8 = scmp.lt.s32.totalorder %s4142_s11, %s4142_s11 }
  0xc1   :  { %p3738_p7 = scmp.ne.s32.totalorder %s4142_s11, %s3737_s2  ;;  %p3743_p9 = scmp.lt.s32.totalorder %s3737_s2, %s3737_s2 }
  0xc3   :  { %p3744_p10 = por %p3743_p9, %p3742_p8 }
  0xc5   :  { %p3745_p11 = pnand %p3744_p10, %p3738_p7 }
  0xc7   :  { %3748 = shalt.err (!%p3745_p11)
}
  0xc8   :  { %136 = dma.hbm_to_vmem [thread:$0]  %s4925_s8, 768, %s4142_s11, [#allocation15], %s3857_s30, %s3857_s30, %s3858_s16  }
  0xc9   :  { %s3869_s26 = smov [#allocation19]   ;;  %s3870_s27 = smov [#allocation22]  }
  0xca   :  { %s154_s17 = sshll.u32 %s3869_s26, 4  ;;  %s178_s21 = sshll.u32 %s3870_s27, 4  ;;  %s155_s17 = int_to_ptr.vmem [resolvable:$true] %s154_s17  ;;  %s4179_s21 = int_to_ptr.vmem [resolvable:$true] %s178_s21 }
  0xcb   :  { %s3749_s19 = scalar_lea.hbm %s4927_s10, 512 }
  0xcc   :  { %p3750_p12 = scmp.ne.s32.totalorder %s4927_s10, %s3749_s19  ;;  %p3753_p13 = scmp.lt.u32.totalorder %s3749_s19, %s4927_s10 }
  0xce   :  { %p3755_p0 = pnand %p3753_p13, %p3750_p12 }
  0xd0   :  { %3758 = shalt.err (!%p3755_p0)
}
  0xd1   :  { %s3759_s8 = scalar_lea.vmem %s155_s17, 512  ;;  %p3764_p2 = scmp.lt.s32.totalorder %s155_s17, %s155_s17 }
  0xd2   :  { %p3760_p1 = scmp.ne.s32.totalorder %s155_s17, %s3759_s8  ;;  %p3765_p3 = scmp.lt.s32.totalorder %s3759_s8, %s3759_s8 }
  0xd4   :  { %p3766_p4 = por %p3765_p3, %p3764_p2 }
  0xd6   :  { %p3767_p5 = pnand %p3766_p4, %p3760_p1 }
  0xd8   :  { %3770 = shalt.err (!%p3767_p5)
}
  0xd9   :  { %160 = dma.hbm_to_vmem [thread:$0]  %s4927_s10, 512, %s155_s17, [#allocation18], %s3857_s30, %s3857_s30, %s3858_s16  }
  0xda   :  { %s3771_s18 = scalar_lea.hbm %s4929_s12, 128 }
  0xdb   :  { %p3772_p6 = scmp.ne.s32.totalorder %s4929_s12, %s3771_s18  ;;  %p3775_p7 = scmp.lt.u32.totalorder %s3771_s18, %s4929_s12 }
  0xdd   :  { %p3777_p8 = pnand %p3775_p7, %p3772_p6 }
  0xdf   :  { %3780 = shalt.err (!%p3777_p8)
}
  0xe0   :  { %s3781_s20 = scalar_lea.vmem %s4179_s21, 128  ;;  %p3786_p10 = scmp.lt.s32.totalorder %s4179_s21, %s4179_s21 }
  0xe1   :  { %p3782_p9 = scmp.ne.s32.totalorder %s4179_s21, %s3781_s20  ;;  %p3787_p11 = scmp.lt.s32.totalorder %s3781_s20, %s3781_s20 }
  0xe3   :  { %p3788_p12 = por %p3787_p11, %p3786_p10 }
  0xe5   :  { %p3789_p13 = pnand %p3788_p12, %p3782_p9 }
  0xe7   :  { %3792 = shalt.err (!%p3789_p13)
}
  0xe8   :  { %184 = dma.hbm_to_vmem [thread:$0]  %s4929_s12, 128, %s4179_s21, [#allocation21], %s3857_s30, %s3857_s30, %s3858_s16  }
  0xe9   :  { %s3871_s6 = smov [#allocation25]   ;;  %s3793_s27 = scalar_lea.hbm %s4931_s14, 128 }
  0xea   :  { %s203_s25 = sshll.u32 %s3871_s6, 4  ;;  %p3794_p0 = scmp.ne.s32.totalorder %s4931_s14, %s3793_s27  ;;  %s204_s25 = int_to_ptr.vmem [resolvable:$true] %s203_s25 }
  0xeb   :  { %p3797_p1 = scmp.lt.u32.totalorder %s3793_s27, %s4931_s14 }
  0xed   :  { %p3799_p2 = pnand %p3797_p1, %p3794_p0 }
  0xef   :  { %3802 = shalt.err (!%p3799_p2)
}
  0xf0   :  { %s3803_s24 = scalar_lea.vmem %s204_s25, 128  ;;  %p3808_p4 = scmp.lt.s32.totalorder %s204_s25, %s204_s25 }
  0xf1   :  { %p3804_p3 = scmp.ne.s32.totalorder %s204_s25, %s3803_s24  ;;  %p3809_p5 = scmp.lt.s32.totalorder %s3803_s24, %s3803_s24 }
  0xf3   :  { %p3810_p6 = por %p3809_p5, %p3808_p4 }
  0xf5   :  { %p3811_p7 = pnand %p3810_p6, %p3804_p3 }
  0xf7   :  { %3814 = shalt.err (!%p3811_p7)
}
  0xf8   :  { %206 = dma.hbm_to_vmem [thread:$0]  %s4931_s14, 128, %s204_s25, [#allocation24]  }
  0xf9   :  { %3837 = dma.done.wait [#allocation3], 1024  }
  0xfa   :  { %3838 = vsyncadd [#allocation3], 4294966272 }
  0xfb   :  { %3839 = dma.done.wait [#allocation6], 2176  }
  0xfc   :  { %3840 = vsyncadd [#allocation6], 4294965120 }
  0xfd   :  { %3841 = dma.done.wait [#allocation9], 512  }
  0xfe   :  { %3842 = vsyncadd [#allocation9], 4294966784 }
  0xff   :  { %3843 = dma.done.wait [#allocation12], 512  }
 0x100   :  { %3844 = vsyncadd [#allocation12], 4294966784 }
 0x101   :  { %3845 = dma.done.wait [#allocation15], 1536  }
 0x102   :  { %3846 = vsyncadd [#allocation15], 4294965760 }
 0x103   :  { %3847 = dma.done.wait [#allocation18], 640  }
 0x104   :  { %3848 = vsyncadd [#allocation18], 4294966656 }
 0x105   :  { %3849 = dma.done.wait [#allocation21], 384  }
 0x106   :  { %3850 = vsyncadd [#allocation21], 4294966912 }
 0x107   :  { %3851 = dma.done.wait [#allocation24], 640  }
 0x108   :  { %3852 = vsyncadd [#allocation24], 4294966656  ;;  %v3427_v0 = vld [vmem:[#allocation10] sm:$0xff]   ;;  %v3428_v1 = vld [vmem:[#allocation8] sm:$0xff]   ;;  %vm330_vm0 = vcmask 261120   ;;  %v4933_v44 = vmov 0.0   ;;  %v627_v45 = vlaneseq }
 0x109   :  { %3161 = vmatprep.subr.bf16.mxu0 %v3427_v0  ;;  %v3429_v2 = vld [vmem:[#allocation10 + $0x8] sm:$0xff]   ;;  %3181 = vmatprep.subr.bf16.mxu1 %v3428_v1  ;;  %v3431_v4 = vld [vmem:[#allocation8 + $0x8] sm:$0xff]   ;;  %v3432_v5 = vld [vmem:[#allocation2 + $0x8] sm:$0xff]   ;;  %vm468_vm1 = vcmask 1046528   ;;  %vm682_vm3 = vcmask 523264   ;;  %vm2539_vm4 = vcmask 1041409  }
 0x10a   :  { %3162 = vmatpush3.bf16.msra.mxu0 %v3427_v0  ;;  %v3430_v3 = vld [vmem:[#allocation2] sm:$0xff]   ;;  %3182 = vmatpush3.bf16.msra.mxu1 %v3428_v1  ;;  %v3433_v6 = vld [vmem:[#allocation13] sm:$0xff]   ;;  %v3434_v7 = vld [vmem:[#allocation2 + $0x10] sm:$0xff]   ;;  %v4278_v46 = vshrl.u32 %v627_v45, 7  ;;  %vm2541_vm5 = vcmask 1042434   ;;  %vm2543_vm6 = vcmask 1043459  }
 0x10b   :  { %3163 = vmatprep.subr.bf16.mxu0 %v3429_v2  ;;  %3165 = vmatprep.mubr.msk.bf16.mxu0 %vm330_vm0, %v3430_v3  ;;  %v3436_v8 = vld [vmem:[#allocation11] sm:$0xff]   ;;  %v3439_v9 = vld [vmem:[#allocation13 + $0x8] sm:$0xff]   ;;  %v3435_v10 = vld [vmem:[#allocation2 + $0x18] sm:$0xff]   ;;  %vm2545_vm7 = vcmask 1044484   ;;  %vm2547_vm8 = vcmask 1045509   ;;  %vm1598_vm9 = vcmask 785408  }
 0x10c   :  { %3185 = vmatprep.mubr.msk.bf16.mxu1 %vm330_vm0, %v3430_v3  ;;  %3183 = vmatprep.subr.bf16.mxu1 %v3431_v4  ;;  %v3437_v11 = vld [vmem:[#allocation2 + $0x20] sm:$0xff]   ;;  %v3442_v12 = vld [vmem:[#allocation11 + $0x8] sm:$0xff]   ;;  %v3438_v13 = vld [vmem:[#allocation2 + $0x28] sm:$0xff]   ;;  %4940 = vst [vmem:[#allocation36_spill] sm:$0xff] %v4278_v46  ;;  %v629_v48 = vsub.s32 0, %v4278_v46  ;;  %vm665_vm2 = vcmp.lt.s32.totalorder %v4278_v46, 7 }
 0x10d   :  { %v3440_v14 = vld [vmem:[#allocation2 + $0x30] sm:$0xff]   ;;  %v3441_v15 = vld [vmem:[#allocation2 + $0x38] sm:$0xff]   ;;  %v3443_v16 = vld [vmem:[#allocation5] sm:$0xff]   ;;  %vm2549_vm10 = vcmask 1046534   ;;  %vm2551_vm11 = vcmask 1047559   ;;  %vm3873_vm12 = vmmov 0  }
 0x10e   :  { %3164 = vmatpush3.bf16.msra.mxu0 %v3429_v2  ;;  %3184 = vmatpush3.bf16.msra.mxu1 %v3431_v4  ;;  %v3459_v17 = vld [vmem:[#allocation16] sm:$0xff]   ;;  %v3460_v18 = vld [vmem:[#allocation14] sm:$0xff]   ;;  %v3445_v20 = vld [vmem:[#allocation5 + $0x10] sm:$0xff]   ;;  %vm2416_vm13 = vcmask 130048   ;;  %s3874_s14 = smov [#allocation26]  }
 0x10f   :  { %3201 = vmatprep.subr.bf16.mxu0 %v3433_v6  ;;  %3237 = vmatprep.subr.bf16.mxu1 %v3436_v8  ;;  %v3444_v19 = vld [vmem:[#allocation5 + $0x8] sm:$0xff]   ;;  %v3446_v21 = vld [vmem:[#allocation5 + $0x18] sm:$0xff]   ;;  %v3447_v22 = vld [vmem:[#allocation5 + $0x20] sm:$0xff]   ;;  %s2883_s16 = sshll.u32 %s3874_s14, 4  ;;  %s2884_s16 = int_to_ptr.vmem [resolvable:$true] %s2883_s16 }
 0x110   :  { %v3448_v23 = vld [vmem:[#allocation5 + $0x28] sm:$0xff]   ;;  %v3449_v24 = vld [vmem:[#allocation5 + $0x30] sm:$0xff]   ;;  %v3450_v25 = vld [vmem:[#allocation5 + $0x38] sm:$0xff]   ;;  %s3815_s21 = scalar_lea.vmem %s2884_s16, 256  ;;  %p3820_p9 = scmp.lt.s32.totalorder %s2884_s16, %s2884_s16 }
 0x111   :  { %3166 = vmatmul.mubr.msk.bf16.vlgmr.msra.gmra.mrb[0].mxu0 %vm330_vm0, %v3432_v5  ;;  %3186 = vmatmul.mubr.msk.bf16.vlgmr.msra.gmra.mrb[0].mxu1 %vm330_vm0, %v3432_v5  ;;  %v3451_v26 = vld [vmem:[#allocation5 + $0x40] sm:$0xff]   ;;  %v3452_v27 = vld [vmem:[#allocation5 + $0x48] sm:$0xff]   ;;  %v3453_v28 = vld [vmem:[#allocation5 + $0x50] sm:$0xff]   ;;  %p3816_p8 = scmp.ne.s32.totalorder %s2884_s16, %s3815_s21  ;;  %p3821_p10 = scmp.lt.s32.totalorder %s3815_s21, %s3815_s21 }
 0x112   :  { %3202 = vmatpush3.bf16.msra.mxu0 %v3433_v6  ;;  %3169 = vmatprep.mubr.msk.bf16.mxu0 %vm330_vm0, %v3434_v7  ;;  %v3454_v29 = vld [vmem:[#allocation5 + $0x58] sm:$0xff]   ;;  %v3455_v30 = vld [vmem:[#allocation5 + $0x60] sm:$0xff]   ;;  %v3456_v31 = vld [vmem:[#allocation5 + $0x68] sm:$0xff]  }
 0x113   :  { %3238 = vmatpush3.bf16.msra.mxu1 %v3436_v8  ;;  %3189 = vmatprep.mubr.msk.bf16.mxu1 %vm330_vm0, %v3434_v7  ;;  %v3457_v32 = vld [vmem:[#allocation5 + $0x70] sm:$0xff]   ;;  %v3458_v33 = vld [vmem:[#allocation5 + $0x78] sm:$0xff]   ;;  %v3461_v34 = vld [vmem:[#allocation16 + $0x8] sm:$0xff]   ;;  %p3822_p11 = por %p3821_p10, %p3820_p9 }
 0x114   :  { %3203 = vmatprep.subr.bf16.mxu0 %v3439_v9  ;;  %3239 = vmatprep.subr.bf16.mxu1 %v3442_v12  ;;  %v3462_v35 = vld [vmem:[#allocation14 + $0x8] sm:$0xff]   ;;  %v3463_v36 = vld [vmem:[#allocation16 + $0x10] sm:$0xff]   ;;  %v3464_v37 = vld [vmem:[#allocation14 + $0x10] sm:$0xff]  }
 0x115   :  { %v3465_v38 = vld [vmem:[#allocation16 + $0x18] sm:$0xff]   ;;  %v3466_v39 = vld [vmem:[#allocation14 + $0x18] sm:$0xff]   ;;  %v3467_v40 = vld [vmem:[#allocation16 + $0x20] sm:$0xff]   ;;  %p3823_p12 = pnand %p3822_p11, %p3816_p8 }
 0x116   :  { %3204 = vmatpush3.bf16.msra.mxu0 %v3439_v9  ;;  %v3468_v41 = vld [vmem:[#allocation14 + $0x20] sm:$0xff]   ;;  %v3469_v42 = vld [vmem:[#allocation16 + $0x28] sm:$0xff]   ;;  %v3470_v43 = vld [vmem:[#allocation14 + $0x28] sm:$0xff]  }
 0x117   :  { %3240 = vmatpush3.bf16.msra.mxu1 %v3442_v12  ;;  %3273 = vmatprep.subr.bf16.mxu0 %v3459_v17  ;;  %v253_v50 = vld [vmem:[#allocation25] sm:$0xff] }
 0x118   :  { %3317 = vmatprep.subr.bf16.mxu1 %v3460_v18  ;;  %v4284_v60 = vrot.slane %v253_v50, %v629_v48 }
 0x119   :  { %3170 = vmatmul.mubr.msk.bf16.gmra.mrb[4].mxu0 %vm330_vm0, %v3435_v10  ;;  %3190 = vmatmul.mubr.msk.bf16.gmra.mrb[4].mxu1 %vm330_vm0, %v3435_v10 }
 0x11a   :  { %3173 = vmatprep.mubr.msk.bf16.mxu0 %vm330_vm0, %v3437_v11  ;;  %3193 = vmatprep.mubr.msk.bf16.mxu1 %vm330_vm0, %v3437_v11 }
 0x121   :  { %3174 = vmatmul.mubr.msk.bf16.gmra.mrb[8].mxu0 %vm330_vm0, %v3438_v13  ;;  %3194 = vmatmul.mubr.msk.bf16.gmra.mrb[8].mxu1 %vm330_vm0, %v3438_v13 }
 0x122   :  { %3177 = vmatprep.mubr.msk.bf16.mxu0 %vm330_vm0, %v3440_v14  ;;  %3197 = vmatprep.mubr.msk.bf16.mxu1 %vm330_vm0, %v3440_v14  ;;  %v1456_v14 = vsub.s32 1, %v4278_v46 }
 0x129   :  { %3178 = vmatmul.mubr.msk.bf16.gmra.mrb[12].mxu0 %vm330_vm0, %v3441_v15  ;;  %3198 = vmatmul.mubr.msk.bf16.gmra.mrb[12].mxu1 %vm330_vm0, %v3441_v15 }
 0x12a   :  { %3205 = vmatprep.mubr.msk.bf16.mxu0 %vm330_vm0, %v3443_v16  ;;  %3241 = vmatprep.mubr.msk.bf16.mxu1 %vm330_vm0, %v3443_v16 }
 0x131   :  { %3206 = vmatmul.mubr.msk.bf16.vlgmr.msra.gmra.mrb[16].mxu0 %vm330_vm0, %v3444_v19  ;;  %3242 = vmatmul.mubr.msk.bf16.vlgmr.msra.gmra.mrb[16].mxu1 %vm330_vm0, %v3444_v19 }
 0x132   :  { %3209 = vmatprep.mubr.msk.bf16.mxu0 %vm330_vm0, %v3445_v20  ;;  %3245 = vmatprep.mubr.msk.bf16.mxu1 %vm330_vm0, %v3445_v20 }
 0x133   :  { %3274 = vmatpush3.bf16.msra.mxu0 %v3459_v17  ;;  %3318 = vmatpush3.bf16.msra.mxu1 %v3460_v18 }
 0x134   :  { %3275 = vmatprep.subr.bf16.mxu0 %v3461_v34  ;;  %3319 = vmatprep.subr.bf16.mxu1 %v3462_v35 }
 0x137   :  { %3276 = vmatpush3.bf16.msra.mxu0 %v3461_v34  ;;  %3320 = vmatpush3.bf16.msra.mxu1 %v3462_v35 }
 0x138   :  { %3277 = vmatprep.subr.bf16.mxu0 %v3463_v36  ;;  %3321 = vmatprep.subr.bf16.mxu1 %v3464_v37 }
 0x139   :  { %3210 = vmatmul.mubr.msk.bf16.gmra.mrb[20].mxu0 %vm330_vm0, %v3446_v21  ;;  %3246 = vmatmul.mubr.msk.bf16.gmra.mrb[20].mxu1 %vm330_vm0, %v3446_v21 }
 0x13a   :  { %3213 = vmatprep.mubr.msk.bf16.mxu0 %vm330_vm0, %v3447_v22  ;;  %3249 = vmatprep.mubr.msk.bf16.mxu1 %vm330_vm0, %v3447_v22 }
 0x13b   :  { %3278 = vmatpush3.bf16.msra.mxu0 %v3463_v36  ;;  %3322 = vmatpush3.bf16.msra.mxu1 %v3464_v37 }
 0x13c   :  { %3279 = vmatprep.subr.bf16.mxu0 %v3465_v38  ;;  %3323 = vmatprep.subr.bf16.mxu1 %v3466_v39 }
 0x13f   :  { %3280 = vmatpush3.bf16.msra.mxu0 %v3465_v38  ;;  %3324 = vmatpush3.bf16.msra.mxu1 %v3466_v39  ;;  %v4315_v38 = vrot.slane %v253_v50, %v1456_v14 }
 0x140   :  { %3281 = vmatprep.subr.bf16.mxu0 %v3467_v40  ;;  %3325 = vmatprep.subr.bf16.mxu1 %v3468_v41 }
 0x141   :  { %3214 = vmatmul.mubr.msk.bf16.gmra.mrb[24].mxu0 %vm330_vm0, %v3448_v23  ;;  %3250 = vmatmul.mubr.msk.bf16.gmra.mrb[24].mxu1 %vm330_vm0, %v3448_v23 }
 0x142   :  { %3217 = vmatprep.mubr.msk.bf16.mxu0 %vm330_vm0, %v3449_v24  ;;  %3253 = vmatprep.mubr.msk.bf16.mxu1 %vm330_vm0, %v3449_v24 }
 0x143   :  { %3282 = vmatpush3.bf16.msra.mxu0 %v3467_v40  ;;  %3326 = vmatpush3.bf16.msra.mxu1 %v3468_v41 }
 0x144   :  { %3283 = vmatprep.subr.bf16.mxu0 %v3469_v42  ;;  %3327 = vmatprep.subr.bf16.mxu1 %v3470_v43 }
 0x147   :  { %3284 = vmatpush3.bf16.msra.mxu0 %v3469_v42  ;;  %3328 = vmatpush3.bf16.msra.mxu1 %v3470_v43 }
 0x148   :  { %3361 = vmatprep.subr.bf16.mxu0 %v4933_v44  ;;  %3367 = vmatprep.subr.bf16.mxu1 %v4933_v44 }
 0x149   :  { %3218 = vmatmul.mubr.msk.bf16.gmra.mrb[28].mxu0 %vm330_vm0, %v3450_v25  ;;  %3254 = vmatmul.mubr.msk.bf16.gmra.mrb[28].mxu1 %vm330_vm0, %v3450_v25 }
 0x14a   :  { %3221 = vmatprep.mubr.msk.bf16.mxu0 %vm330_vm0, %v3451_v26  ;;  %3257 = vmatprep.mubr.msk.bf16.mxu1 %vm330_vm0, %v3451_v26 }
 0x151   :  { %3222 = vmatmul.mubr.msk.bf16.gmra.mrb[32].mxu0 %vm330_vm0, %v3452_v27  ;;  %3258 = vmatmul.mubr.msk.bf16.gmra.mrb[32].mxu1 %vm330_vm0, %v3452_v27 }
 0x152   :  { %3225 = vmatprep.mubr.msk.bf16.mxu0 %vm330_vm0, %v3453_v28  ;;  %3261 = vmatprep.mubr.msk.bf16.mxu1 %vm330_vm0, %v3453_v28 }
 0x159   :  { %3226 = vmatmul.mubr.msk.bf16.gmra.mrb[36].mxu0 %vm330_vm0, %v3454_v29  ;;  %3262 = vmatmul.mubr.msk.bf16.gmra.mrb[36].mxu1 %vm330_vm0, %v3454_v29 }
 0x15a   :  { %3229 = vmatprep.mubr.msk.bf16.mxu0 %vm330_vm0, %v3455_v30  ;;  %3265 = vmatprep.mubr.msk.bf16.mxu1 %vm330_vm0, %v3455_v30 }
 0x161   :  { %3230 = vmatmul.mubr.msk.bf16.gmra.mrb[40].mxu0 %vm330_vm0, %v3456_v31  ;;  %3266 = vmatmul.mubr.msk.bf16.gmra.mrb[40].mxu1 %vm330_vm0, %v3456_v31 }
 0x162   :  { %3233 = vmatprep.mubr.msk.bf16.mxu0 %vm330_vm0, %v3457_v32  ;;  %3269 = vmatprep.mubr.msk.bf16.mxu1 %vm330_vm0, %v3457_v32 }
 0x169   :  { %3234 = vmatmul.mubr.msk.bf16.gmra.mrb[44].mxu0 %vm330_vm0, %v3458_v33  ;;  %3270 = vmatmul.mubr.msk.bf16.gmra.mrb[44].mxu1 %vm330_vm0, %v3458_v33 }
 0x1e4   :  { %v3167_v47 = vpop.f32.mrb[0].mxu0  ;;  %v3187_v51 = vpop.f32.mrb[0].mxu1 }
 0x1e5   :  { %v4281_v49 = vpop.f32.mrb[1].mxu0  ;;  %v564_v53 = vpop.f32.mrb[1].mxu1  ;;  %v472_v54 = vrot.slane %v3167_v47, 1 }
 0x1e6   :  { %v3168_v52 = vpop.f32.mrb[2].mxu0  ;;  %v3188_v57 = vpop.f32.mrb[2].mxu1  ;;  %v469_v58 = vrot.slane %v4281_v49, 1 }
 0x1e7   :  { %v474_v55 = vrot.slane %v3168_v52, 1  ;;  %v392_v56 = vpop.f32.mrb[3].mxu0  ;;  %v567_v61 = vpop.f32.mrb[3].mxu1 }
 0x1e8   :  { %v470_v59 = vrot.slane %v392_v56, 1 }
 0x1e9   :  { %v475_v62 = vsel %vm468_vm1, %v472_v54, %v474_v55 }
 0x1ea   :  { %v573_v63 = vadd.f32 %v3187_v51, %v475_v62  ;;  %v471_v0 = vsel %vm468_vm1, %v469_v58, %v470_v59  ;;  %v473_v1 = vsel %vm468_vm1, %v470_v59, %v472_v54 }
 0x1eb   :  { %v565_v2 = vadd.f32 %v564_v53, %v471_v0  ;;  %v568_v3 = vadd.f32 %v567_v61, %v473_v1 }
 0x1ec   :  { %v633_v4 = vadd.f32 %v4284_v60, %v573_v63  ;;  %v3171_v5 = vpop.f32.mrb[4].mxu0  ;;  %v3191_v9 = vpop.f32.mrb[4].mxu1 }
 0x1ed   :  { %v631_v6 = vadd.f32 %v4284_v60, %v565_v2  ;;  %v632_v7 = vadd.f32 %v4284_v60, %v568_v3  ;;  %v405_v8 = vpop.f32.mrb[5].mxu0  ;;  %v580_v13 = vpop.f32.mrb[5].mxu1  ;;  %v480_v21 = vrot.slane %v3171_v5, 1 }
 0x1ee   :  { %v649_v10 = vmax.f32 %v633_v4, 0.0  ;;  %v476_v11 = vrot.slane %v405_v8, 1  ;;  %v4295_v12 = vpop.f32.mrb[6].mxu0  ;;  %v4299_v19 = vpop.f32.mrb[6].mxu1 }
 0x1ef   :  { %v647_v15 = vmax.f32 %v631_v6, 0.0  ;;  %v648_v16 = vmax.f32 %v632_v7, 0.0  ;;  %v482_v17 = vrot.slane %v4295_v12, 1  ;;  %v408_v18 = vpop.f32.mrb[7].mxu0  ;;  %v583_v24 = vpop.f32.mrb[7].mxu1 }
 0x1f0   :  { %v668_v20 = vsel %vm665_vm2, %v649_v10, 0.0  ;;  %v477_v22 = vsel %vm468_vm1, %v474_v55, %v476_v11  ;;  %v478_v23 = vrot.slane %v408_v18, 1 }
 0x1f1   :  { %v697_v25 = vsel %vm682_vm3, %v668_v20, 0.0  ;;  %v666_v26 = vsel %vm665_vm2, %v647_v15, 0.0  ;;  %v667_v27 = vsel %vm665_vm2, %v648_v16, 0.0  ;;  %v576_v28 = vadd.f32 %v3188_v57, %v477_v22 }
 0x1f2   :  { %v698_v29 = vrot.slane %v697_v25, 4  ;;  %v683_v30 = vsel %vm682_vm3, %v666_v26, 0.0  ;;  %v690_v31 = vsel %vm682_vm3, %v667_v27, 0.0  ;;  %v483_v32 = vsel %vm468_vm1, %v480_v21, %v482_v17 }
 0x1f3   :  { %v684_v33 = vrot.slane %v683_v30, 4  ;;  %v691_v34 = vrot.slane %v690_v31, 4  ;;  %v634_v35 = vadd.f32 %v4284_v60, %v576_v28  ;;  %v589_v36 = vadd.f32 %v3191_v9, %v483_v32 }
 0x1f4   :  { %v699_v37 = vadd.f32 %v698_v29, %v697_v25  ;;  %v479_v39 = vsel %vm468_vm1, %v476_v11, %v478_v23  ;;  %v481_v40 = vsel %vm468_vm1, %v478_v23, %v480_v21  ;;  %v4319_v41 = vpop.f32.mrb[8].mxu0  ;;  %v4324_v51 = vpop.f32.mrb[8].mxu1 }
 0x1f5   :  { %v685_v42 = vadd.f32 %v684_v33, %v683_v30  ;;  %v692_v43 = vadd.f32 %v691_v34, %v690_v31  ;;  %v650_v45 = vmax.f32 %v634_v35, 0.0  ;;  %v637_v47 = vadd.f32 %v4284_v60, %v589_v36  ;;  %v4322_v48 = vpop.f32.mrb[9].mxu0  ;;  %v4329_v56 = vpop.f32.mrb[9].mxu1 }
 0x1f6   :  { %v700_v52 = vrot.slane %v699_v37, 2  ;;  %v581_v53 = vadd.f32 %v580_v13, %v479_v39  ;;  %v584_v54 = vadd.f32 %v583_v24, %v481_v40  ;;  %v488_v50 = vrot.slane %v4319_v41, 1  ;;  %v4327_v55 = vpop.f32.mrb[10].mxu0  ;;  %v4335_v0 = vpop.f32.mrb[10].mxu1 }
 0x1f7   :  { %v686_v57 = vrot.slane %v685_v42, 2  ;;  %v693_v59 = vrot.slane %v692_v43, 2  ;;  %v669_v61 = vsel %vm665_vm2, %v650_v45, 0.0  ;;  %v653_v62 = vmax.f32 %v637_v47, 0.0  ;;  %v4333_v63 = vpop.f32.mrb[11].mxu0  ;;  %v4340_v5 = vpop.f32.mrb[11].mxu1 }
 0x1f8   :  { %v701_v1 = vadd.f32 %v700_v52, %v699_v37  ;;  %v704_v2 = vsel %vm682_vm3, %v669_v61, 0.0  ;;  %v635_v3 = vadd.f32 %v4284_v60, %v581_v53  ;;  %v636_v4 = vadd.f32 %v4284_v60, %v584_v54 }
 0x1f9   :  { %v687_v6 = vadd.f32 %v686_v57, %v685_v42  ;;  %v694_v7 = vadd.f32 %v693_v59, %v692_v43  ;;  %v705_v8 = vrot.slane %v704_v2, 4  ;;  %v672_v9 = vsel %vm665_vm2, %v653_v62, 0.0 }
 0x1fa   :  { %v702_v10 = vrot.slane %v701_v1, 1  ;;  %v725_v11 = vsel %vm682_vm3, %v672_v9, 0.0  ;;  %v651_v13 = vmax.f32 %v635_v3, 0.0  ;;  %v652_v14 = vmax.f32 %v636_v4, 0.0 }
 0x1fb   :  { %v688_v15 = vrot.slane %v687_v6, 1  ;;  %v695_v16 = vrot.slane %v694_v7, 1  ;;  %v706_v18 = vadd.f32 %v705_v8, %v704_v2  ;;  %v726_v20 = vrot.slane %v725_v11, 4 }
 0x1fc   :  { %v703_v21 = vadd.f32 %v702_v10, %v701_v1  ;;  %v670_v22 = vsel %vm665_vm2, %v651_v13, 0.0  ;;  %v671_v23 = vsel %vm665_vm2, %v652_v14, 0.0  ;;  %v484_v24 = vrot.slane %v4322_v48, 1  ;;  %v4350_v25 = vpop.f32.mrb[12].mxu0  ;;  %v4354_v31 = vpop.f32.mrb[12].mxu1 }
 0x1fd   :  { %v689_v26 = vadd.f32 %v688_v15, %v687_v6  ;;  %v696_v27 = vadd.f32 %v695_v16, %v694_v7  ;;  %v707_v28 = vrot.slane %v706_v18, 2  ;;  %v727_v29 = vadd.f32 %v726_v20, %v725_v11  ;;  %v4352_v30 = vpop.f32.mrb[13].mxu0  ;;  %v4365_v37 = vpop.f32.mrb[13].mxu1 }
 0x1fe   :  { %v797_v32 = vmul.f32 0.14285715, %v703_v21  ;;  %v711_v33 = vsel %vm682_vm3, %v670_v22, 0.0  ;;  %v718_v34 = vsel %vm682_vm3, %v671_v23, 0.0  ;;  %v485_v35 = vsel %vm468_vm1, %v482_v17, %v484_v24  ;;  %v4363_v36 = vpop.f32.mrb[14].mxu0  ;;  %v4370_v57 = vpop.f32.mrb[14].mxu1 }
 0x1ff   :  { %v795_v39 = vmul.f32 0.14285715, %v689_v26  ;;  %v796_v40 = vmul.f32 0.14285715, %v696_v27  ;;  %v708_v42 = vadd.f32 %v707_v28, %v706_v18  ;;  %v728_v43 = vrot.slane %v727_v29, 2  ;;  %v4367_v45 = vpop.f32.mrb[15].mxu0 }
 0x200   :  { %v2465_v47 = vpack.c.bf16 %v797_v32, %v797_v32  ;;  %v712_v52 = vrot.slane %v711_v33, 4  ;;  %v719_v53 = vrot.slane %v718_v34, 4  ;;  %v592_v54 = vadd.f32 %v4299_v19, %v485_v35  ;;  %v4372_v62 = vpop.f32.mrb[15].mxu1 }
 0x201   :  { %v2463_v12 = vpack.c.bf16 %v795_v39, %v795_v39  ;;  %v2464_v17 = vpack.c.bf16 %v796_v40, %v796_v40  ;;  %v709_v59 = vrot.slane %v708_v42, 1  ;;  %v729_v61 = vadd.f32 %v728_v43, %v727_v29 }
 0x202   :  { %v2635_v1 = vunpack.c.l.b16 %v2465_v47  ;;  %v713_v2 = vadd.f32 %v712_v52, %v711_v33  ;;  %v720_v3 = vadd.f32 %v719_v53, %v718_v34  ;;  %v638_v4 = vadd.f32 %v4284_v60, %v592_v54 }
 0x203   :  { %v2633_v6 = vunpack.c.l.b16 %v2463_v12  ;;  %v2634_v7 = vunpack.c.l.b16 %v2464_v17  ;;  %v710_v8 = vadd.f32 %v709_v59, %v708_v42  ;;  %v730_v9 = vrot.slane %v729_v61, 1 }
 0x204   :  { %v714_v10 = vrot.slane %v713_v2, 2  ;;  %v721_v11 = vrot.slane %v720_v3, 2  ;;  %v654_v19 = vmax.f32 %v638_v4, 0.0  ;;  %v490_v13 = vrot.slane %v4327_v55, 1  ;;  %v4376_v14 = vpop.f32.mrb[16].mxu0  ;;  %v4382_v22 = vpop.f32.mrb[16].mxu1 }
 0x205   :  { %v2649_v15 = vsel %vm2539_vm4, %v2634_v7, %v2633_v6  ;;  %v798_v16 = vmul.f32 0.14285715, %v710_v8  ;;  %v731_v18 = vadd.f32 %v730_v9, %v729_v61  ;;  %v486_v20 = vrot.slane %v4333_v63, 1  ;;  %v4380_v21 = vpop.f32.mrb[17].mxu0  ;;  %v4389_v29 = vpop.f32.mrb[17].mxu1 }
 0x206   :  { %4941 = vst [vmem:[#allocation37_spill] sm:$0xff] %v4380_v21  ;;  %v2650_v23 = vsel %vm2541_vm5, %v2635_v1, %v2649_v15  ;;  %v715_v26 = vadd.f32 %v714_v10, %v713_v2  ;;  %v722_v27 = vadd.f32 %v721_v11, %v720_v3  ;;  %v673_v28 = vsel %vm665_vm2, %v654_v19, 0.0  ;;  %v4387_v55 = vpop.f32.mrb[18].mxu0  ;;  %v4399_v39 = vpop.f32.mrb[18].mxu1 }
 0x207   :  { %v2466_v32 = vpack.c.bf16 %v798_v16, %v798_v16  ;;  %v4391_v33 = vmul.f32 0.14285715, %v731_v18  ;;  %v732_v63 = vsel %vm682_vm3, %v673_v28, 0.0  ;;  %v491_v34 = vsel %vm468_vm1, %v488_v50, %v490_v13  ;;  %v4397_v35 = vpop.f32.mrb[19].mxu0  ;;  %v4402_v52 = vpop.f32.mrb[19].mxu1 }
 0x208   :  { %v716_v40 = vrot.slane %v715_v26, 1  ;;  %v723_v42 = vrot.slane %v722_v27, 1  ;;  %v733_v43 = vrot.slane %v732_v63, 4  ;;  %v605_v47 = vadd.f32 %v4324_v51, %v491_v34 }
 0x209   :  { %v2636_v53 = vunpack.c.l.b16 %v2466_v32  ;;  %v487_v54 = vsel %vm468_vm1, %v484_v24, %v486_v20  ;;  %v489_v12 = vsel %vm468_vm1, %v486_v20, %v488_v50  ;;  %v2469_v51 = vpack.c.bf16 %v4391_v33, %v4391_v33 }
 0x20a   :  { %v717_v17 = vadd.f32 %v716_v40, %v715_v26  ;;  %v724_v59 = vadd.f32 %v723_v42, %v722_v27  ;;  %v734_v61 = vadd.f32 %v733_v43, %v732_v63  ;;  %v641_v1 = vadd.f32 %v4284_v60, %v605_v47 }
 0x20b   :  { %v2651_v2 = vsel %vm2543_vm6, %v2636_v53, %v2650_v23  ;;  %v597_v3 = vadd.f32 %v4329_v56, %v487_v54  ;;  %v600_v48 = vadd.f32 %v4340_v5, %v489_v12  ;;  %v496_v8 = vrot.slane %v4350_v25, 1 }
 0x20c   :  { %v799_v4 = vmul.f32 0.14285715, %v717_v17  ;;  %v800_v24 = vmul.f32 0.14285715, %v724_v59  ;;  %v735_v6 = vrot.slane %v734_v61, 2  ;;  %v657_v41 = vmax.f32 %v641_v1, 0.0 }
 0x20d   :  { %v639_v50 = vadd.f32 %v4284_v60, %v597_v3  ;;  %v640_v7 = vadd.f32 %v4284_v60, %v600_v48  ;;  %v492_v9 = vrot.slane %v4352_v30, 1  ;;  %v4420_v10 = vpop.f32.mrb[20].mxu0  ;;  %v4422_v11 = vpop.f32.mrb[20].mxu1  ;;  %v498_v53 = vrot.slane %v4363_v36, 1 }
 0x20e   :  { %v2467_v19 = vpack.c.bf16 %v799_v4, %v799_v4  ;;  %v2468_v56 = vpack.c.bf16 %v800_v24, %v800_v24  ;;  %v736_v15 = vadd.f32 %v735_v6, %v734_v61  ;;  %v676_v5 = vsel %vm665_vm2, %v657_v41, 0.0  ;;  %v4426_v16 = vpop.f32.mrb[21].mxu0  ;;  %v4428_v18 = vpop.f32.mrb[21].mxu1 }
 0x20f   :  { %v753_v20 = vsel %vm682_vm3, %v676_v5, 0.0  ;;  %v655_v23 = vmax.f32 %v639_v50, 0.0  ;;  %v656_v26 = vmax.f32 %v640_v7, 0.0  ;;  %v493_v30 = vsel %vm468_vm1, %v490_v13, %v492_v9  ;;  %v4432_v27 = vpop.f32.mrb[22].mxu0  ;;  %v4434_v28 = vpop.f32.mrb[22].mxu1 }
 0x210   :  { %v2637_v32 = vunpack.c.l.b16 %v2467_v19  ;;  %v2638_v33 = vunpack.c.l.b16 %v2468_v56  ;;  %v737_v63 = vrot.slane %v736_v15, 1  ;;  %v754_v34 = vrot.slane %v753_v20, 4  ;;  %v4436_v40 = vpop.f32.mrb[23].mxu0  ;;  %v4438_v42 = vpop.f32.mrb[23].mxu1 }
 0x211   :  { %v674_v43 = vsel %vm665_vm2, %v655_v23, 0.0  ;;  %v675_v47 = vsel %vm665_vm2, %v656_v26, 0.0  ;;  %v608_v13 = vadd.f32 %v4335_v0, %v493_v30  ;;  %v4453_v4 = vunpack.c.l.b16 %v2469_v51 }
 0x212   :  { %v2652_v54 = vsel %vm2545_vm7, %v2637_v32, %v2651_v2  ;;  %v738_v12 = vadd.f32 %v737_v63, %v736_v15  ;;  %v755_v17 = vadd.f32 %v754_v34, %v753_v20  ;;  %v739_v59 = vsel %vm682_vm3, %v674_v43, 0.0 }
 0x213   :  { %v4449_v61 = vsel %vm2547_vm8, %v2638_v33, %v2652_v54  ;;  %v740_v1 = vrot.slane %v739_v59, 4  ;;  %v746_v3 = vsel %vm682_vm3, %v675_v47, 0.0  ;;  %v642_v48 = vadd.f32 %v4284_v60, %v608_v13  ;;  %4943 = vst [vmem:[#allocation39_spill] sm:$0xff] %v4453_v4 }
 0x214   :  { %4942 = vst [vmem:[#allocation38_spill] sm:$0xff] %v4449_v61  ;;  %v756_v24 = vrot.slane %v755_v17, 2  ;;  %v747_v0 = vrot.slane %v746_v3, 4  ;;  %v494_v36 = vrot.slane %v4367_v45, 1  ;;  %v4456_v6 = vpop.f32.mrb[24].mxu0  ;;  %v499_v50 = vsel %vm468_vm1, %v496_v8, %v498_v53  ;;  %v4466_v51 = vpop.f32.mrb[24].mxu1 }
 0x215   :  { %v741_v2 = vadd.f32 %v740_v1, %v739_v59  ;;  %v658_v41 = vmax.f32 %v642_v48, 0.0  ;;  %v517_v7 = vsel %vm468_vm1, %v498_v53, %v469_v58  ;;  %v4464_v19 = vpop.f32.mrb[25].mxu0  ;;  %v4468_v56 = vmul.f32 0.14285715, %v738_v12  ;;  %v4473_v23 = vpop.f32.mrb[25].mxu1 }
 0x216   :  { %v757_v15 = vadd.f32 %v756_v24, %v755_v17  ;;  %v748_v45 = vadd.f32 %v747_v0, %v746_v3  ;;  %v621_v5 = vadd.f32 %v4354_v31, %v499_v50  ;;  %v4471_v20 = vpop.f32.mrb[26].mxu0  ;;  %v495_v58 = vsel %vm468_vm1, %v492_v9, %v494_v36  ;;  %v4481_v33 = vpop.f32.mrb[26].mxu1 }
 0x217   :  { %v742_v26 = vrot.slane %v741_v2, 2  ;;  %v677_v49 = vsel %vm665_vm2, %v658_v41, 0.0  ;;  %v624_v30 = vadd.f32 %v4370_v57, %v517_v7  ;;  %v4479_v32 = vpop.f32.mrb[27].mxu0  ;;  %v4485_v47 = vpop.f32.mrb[27].mxu1  ;;  %v613_v54 = vadd.f32 %v4365_v37, %v495_v58 }
 0x218   :  { %v758_v63 = vrot.slane %v757_v15, 1  ;;  %v749_v34 = vrot.slane %v748_v45, 2  ;;  %v760_v31 = vsel %vm682_vm3, %v677_v49, 0.0  ;;  %v645_v43 = vadd.f32 %v4284_v60, %v621_v5 }
 0x219   :  { %v743_v13 = vadd.f32 %v742_v26, %v741_v2  ;;  %v761_v53 = vrot.slane %v760_v31, 4  ;;  %v646_v9 = vadd.f32 %v4284_v60, %v624_v30  ;;  %v497_v59 = vsel %vm468_vm1, %v494_v36, %v496_v8 }
 0x21a   :  { %v759_v12 = vadd.f32 %v758_v63, %v757_v15  ;;  %v750_v57 = vadd.f32 %v749_v34, %v748_v45  ;;  %v661_v17 = vmax.f32 %v645_v43, 0.0  ;;  %v643_v48 = vadd.f32 %v4284_v60, %v613_v54 }
 0x21b   :  { %v744_v1 = vrot.slane %v743_v13, 1  ;;  %v762_v3 = vadd.f32 %v761_v53, %v760_v31  ;;  %v662_v24 = vmax.f32 %v646_v9, 0.0  ;;  %v616_v37 = vadd.f32 %v4372_v62, %v497_v59 }
 0x21c   :  { %v805_v0 = vmul.f32 0.14285715, %v759_v12  ;;  %v751_v41 = vrot.slane %v750_v57, 1  ;;  %v680_v2 = vsel %vm665_vm2, %v661_v17, 0.0  ;;  %v4496_v50 = vpop.f32.mrb[28].mxu0  ;;  %v659_v45 = vmax.f32 %v643_v48, 0.0 }
 0x21d   :  { %v745_v7 = vadd.f32 %v744_v1, %v743_v13  ;;  %v763_v15 = vrot.slane %v762_v3, 2  ;;  %v781_v25 = vsel %vm682_vm3, %v680_v2, 0.0  ;;  %v4499_v8 = vpop.f32.mrb[29].mxu0  ;;  %v4501_v36 = vpop.f32.mrb[28].mxu1  ;;  %v681_v58 = vsel %vm665_vm2, %v662_v24, 0.0 }
 0x21e   :  { %v2473_v5 = vpack.c.bf16 %v805_v0, %v805_v0  ;;  %v752_v26 = vadd.f32 %v751_v41, %v750_v57  ;;  %v782_v49 = vrot.slane %v781_v25, 4  ;;  %v4505_v30 = vpop.f32.mrb[30].mxu0  ;;  %v4507_v62 = vpop.f32.mrb[29].mxu1  ;;  %v678_v31 = vsel %vm665_vm2, %v659_v45, 0.0 }
 0x21f   :  { %v803_v63 = vmul.f32 0.14285715, %v745_v7  ;;  %v764_v34 = vadd.f32 %v763_v15, %v762_v3  ;;  %v788_v43 = vsel %vm682_vm3, %v681_v58, 0.0  ;;  %v4512_v13 = vpop.f32.mrb[31].mxu0  ;;  %v4514_v53 = vpop.f32.mrb[30].mxu1  ;;  %v767_v57 = vsel %vm682_vm3, %v678_v31, 0.0 }
 0x220   :  { %v2643_v54 = vunpack.c.l.b16 %v2473_v5  ;;  %v804_v9 = vmul.f32 0.14285715, %v752_v26  ;;  %v783_v12 = vadd.f32 %v782_v49, %v781_v25  ;;  %v4517_v17 = vpop.f32.mrb[31].mxu1  ;;  %v768_v48 = vrot.slane %v767_v57, 4 }
 0x221   :  { %v2471_v59 = vpack.c.bf16 %v803_v63, %v803_v63  ;;  %v765_v1 = vrot.slane %v764_v34, 1  ;;  %v789_v3 = vrot.slane %v788_v43, 4  ;;  %v644_v41 = vadd.f32 %v4284_v60, %v616_v37 }
 0x222   :  { %v2472_v24 = vpack.c.bf16 %v804_v9, %v804_v9  ;;  %v784_v0 = vrot.slane %v783_v12, 2  ;;  %v1187_v2 = vrot.slane %v4376_v14, 1  ;;  %v769_v45 = vadd.f32 %v768_v48, %v767_v57 }
 0x223   :  { %v2641_v7 = vunpack.c.l.b16 %v2471_v59  ;;  %v766_v15 = vadd.f32 %v765_v1, %v764_v34  ;;  %v790_v5 = vadd.f32 %v789_v3, %v788_v43  ;;  %v660_v49 = vmax.f32 %v644_v41, 0.0 }
 0x224   :  { %v2642_v26 = vunpack.c.l.b16 %v2472_v24  ;;  %v785_v25 = vadd.f32 %v784_v0, %v783_v12  ;;  %v4935_v58 = vrot.slane %v4380_v21, 1  ;;  %v4522_v31 = vpop.f32.mrb[32].mxu0  ;;  %v770_v44 = vrot.slane %v769_v45, 2  ;;  %v4533_v12 = vpop.f32.mrb[32].mxu1 }
 0x225   :  { %v806_v63 = vmul.f32 0.14285715, %v766_v15  ;;  %v791_v4 = vrot.slane %v790_v5, 2  ;;  %v4936_v9 = vrot.slane %v4387_v55, 1  ;;  %v4525_v61 = vpop.f32.mrb[33].mxu0  ;;  %v679_v37 = vsel %vm665_vm2, %v660_v49, 0.0 }
 0x226   :  { %v2656_v60 = vsel %vm2539_vm4, %v2642_v26, %v2641_v7  ;;  %v786_v14 = vrot.slane %v785_v25, 1  ;;  %v1185_v34 = vrot.slane %v4397_v35, 1  ;;  %v4531_v43 = vpop.f32.mrb[34].mxu0  ;;  %v771_v1 = vadd.f32 %v770_v44, %v769_v45  ;;  %v4538_v24 = vpop.f32.mrb[33].mxu1 }
 0x227   :  { %v2657_v57 = vsel %vm2541_vm5, %v2643_v54, %v2656_v60  ;;  %v2474_v59 = vpack.c.bf16 %v806_v63, %v806_v63  ;;  %v792_v48 = vadd.f32 %v791_v4, %v790_v5  ;;  %v4536_v3 = vpop.f32.mrb[35].mxu0  ;;  %v774_v41 = vsel %vm682_vm3, %v679_v37, 0.0  ;;  %v4547_v15 = vpop.f32.mrb[34].mxu1 }
 0x228   :  { %v787_v0 = vadd.f32 %v786_v14, %v785_v25  ;;  %v1190_v35 = vsel %vm468_vm1, %v1187_v2, %v4936_v9  ;;  %v1186_v7 = vsel %vm468_vm1, %v4935_v58, %v1185_v34  ;;  %v772_v44 = vrot.slane %v771_v1, 1  ;;  %v4549_v5 = vpop.f32.mrb[35].mxu1 }
 0x229   :  { %v2644_v54 = vunpack.c.l.b16 %v2474_v59  ;;  %v793_v4 = vrot.slane %v792_v48, 1  ;;  %v775_v45 = vrot.slane %v774_v41, 4  ;;  %v1336_v25 = vadd.f32 %v4382_v22, %v1190_v35 }
 0x22a   :  { %v809_v26 = vmul.f32 0.14285715, %v787_v0  ;;  %v1328_v49 = vadd.f32 %v4389_v29, %v1186_v7  ;;  %v1188_v63 = vsel %vm468_vm1, %v1185_v34, %v1187_v2  ;;  %v773_v60 = vadd.f32 %v772_v44, %v771_v1 }
 0x22b   :  { %v2658_v14 = vsel %vm2543_vm6, %v2644_v54, %v2657_v57  ;;  %v794_v37 = vadd.f32 %v793_v4, %v792_v48  ;;  %v776_v58 = vadd.f32 %v775_v45, %v774_v41  ;;  %v4556_v59 = vadd.f32 %v4315_v38, %v1336_v25 }
 0x22c   :  { %v2477_v9 = vpack.c.bf16 %v809_v26, %v809_v26  ;;  %v1458_v46 = vadd.f32 %v4315_v38, %v1328_v49  ;;  %v1331_v21 = vadd.f32 %v4402_v52, %v1188_v63  ;;  %v4560_v0 = vpop.f32.mrb[36].mxu0  ;;  %v807_v29 = vmul.f32 0.14285715, %v773_v60  ;;  %v4572_v7 = vpop.f32.mrb[36].mxu1 }
 0x22d   :  { %v4564_v2 = vmul.f32 0.14285715, %v794_v37  ;;  %v777_v34 = vrot.slane %v776_v58, 2  ;;  %v1195_v41 = vrot.slane %v4420_v10, 1  ;;  %v4570_v35 = vpop.f32.mrb[37].mxu0  ;;  %v1492_v44 = vmax.f32 %v4556_v59, 0.0 }
 0x22e   :  { %v4566_v57 = vunpack.c.l.b16 %v2477_v9  ;;  %v1490_v1 = vmax.f32 %v1458_v46, 0.0  ;;  %v1459_v48 = vadd.f32 %v4315_v38, %v1331_v21  ;;  %v2475_v52 = vpack.c.bf16 %v807_v29, %v807_v29  ;;  %v4576_v45 = vpop.f32.mrb[38].mxu0  ;;  %v4578_v26 = vpop.f32.mrb[37].mxu1 }
 0x22f   :  { %v778_v54 = vadd.f32 %v777_v34, %v776_v58  ;;  %v1191_v4 = vrot.slane %v4426_v16, 1  ;;  %v1197_v10 = vrot.slane %v4432_v27, 1  ;;  %v1193_v9 = vrot.slane %v4436_v40, 1  ;;  %v4584_v25 = vpop.f32.mrb[39].mxu0  ;;  %v4586_v49 = vpop.f32.mrb[38].mxu1 }
 0x230   :  { %4944 = vst [vmem:[#allocation40_spill] sm:$0xff] %v4566_v57  ;;  %v1491_v21 = vmax.f32 %v1459_v48, 0.0  ;;  %v2645_v58 = vunpack.c.l.b16 %v2475_v52  ;;  %v4945_v16 = vrot.slane %v4387_v55, 1  ;;  %v1203_v37 = vrot.slane %v4456_v6, 1  ;;  %v4592_v59 = vpop.f32.mrb[39].mxu1 }
 0x231   :  { %v779_v63 = vrot.slane %v778_v54, 1  ;;  %v1198_v27 = vsel %vm468_vm1, %v1195_v41, %v1197_v10  ;;  %v1194_v40 = vsel %vm468_vm1, %v1191_v4, %v1193_v9  ;;  %v1196_v6 = vsel %vm468_vm1, %v1193_v9, %v1195_v41 }
 0x232   :  { %v1192_v60 = vsel %vm468_vm1, %v4945_v16, %v1191_v4  ;;  %v1522_v29 = vpack.c.bf16 %v1491_v21, %v1490_v1  ;;  %v2659_v48 = vsel %vm2545_vm7, %v2645_v58, %v2658_v14  ;;  %v1352_v52 = vadd.f32 %v4422_v11, %v1198_v27  ;;  %v3471_v27 = vld [vmem:[#allocation17] sm:$0xff]  }
 0x233   :  { %v1339_v34 = vadd.f32 %v4399_v39, %v1192_v60  ;;  %v780_v22 = vadd.f32 %v779_v63, %v778_v54  ;;  %v1344_v55 = vadd.f32 %v4428_v18, %v1194_v40  ;;  %v1199_v39 = vrot.slane %v4464_v19, 1 }
 0x234   :  { %3285 = vmatprep.mubr.msk.bf16.mxu0 %vm1598_vm9, %v1522_v29  ;;  %3329 = vmatprep.mubr.msk.bf16.mxu1 %vm1598_vm9, %v1522_v29  ;;  %v1205_v1 = vrot.slane %v4471_v20, 1  ;;  %v4606_v4 = vpop.f32.mrb[40].mxu0  ;;  %v1464_v54 = vadd.f32 %v4315_v38, %v1352_v52  ;;  %v1347_v18 = vadd.f32 %v4438_v42, %v1196_v6  ;;  %v4613_v41 = vpop.f32.mrb[40].mxu1  ;;  %v1201_v19 = vrot.slane %v4479_v32, 1 }
 0x235   :  { %v1461_v16 = vadd.f32 %v4315_v38, %v1339_v34  ;;  %v808_v14 = vmul.f32 0.14285715, %v780_v22  ;;  %v1462_v11 = vadd.f32 %v4315_v38, %v1344_v55  ;;  %v4611_v21 = vpop.f32.mrb[41].mxu0  ;;  %v1200_v58 = vsel %vm468_vm1, %v1197_v10, %v1199_v39  ;;  %v4620_v22 = vpop.f32.mrb[41].mxu1 }
 0x236   :  { %v1206_v20 = vsel %vm468_vm1, %v1203_v37, %v1205_v1  ;;  %v4618_v63 = vpop.f32.mrb[42].mxu0  ;;  %v1496_v29 = vmax.f32 %v1464_v54, 0.0  ;;  %v1463_v42 = vadd.f32 %v4315_v38, %v1347_v18  ;;  %v4625_v52 = vpop.f32.mrb[42].mxu1  ;;  %v1355_v10 = vadd.f32 %v4434_v28, %v1200_v58 }
 0x237   :  { %v1493_v9 = vmax.f32 %v1461_v16, 0.0  ;;  %v2476_v60 = vpack.c.bf16 %v808_v14, %v808_v14  ;;  %v1494_v34 = vmax.f32 %v1462_v11, 0.0  ;;  %v4623_v40 = vpop.f32.mrb[43].mxu0  ;;  %v1368_v32 = vadd.f32 %v4466_v51, %v1206_v20  ;;  %v4630_v6 = vpop.f32.mrb[43].mxu1 }
 0x238   :  { %v1202_v16 = vsel %vm468_vm1, %v1199_v39, %v1201_v19  ;;  %v1495_v14 = vmax.f32 %v1463_v42, 0.0  ;;  %v1204_v11 = vsel %vm468_vm1, %v1201_v19, %v1203_v37  ;;  %v1465_v18 = vadd.f32 %v4315_v38, %v1355_v10 }
 0x239   :  { %v1523_v55 = vpack.c.bf16 %v1493_v9, %v1492_v44  ;;  %v2646_v46 = vunpack.c.l.b16 %v2476_v60  ;;  %v1360_v54 = vadd.f32 %v4473_v23, %v1202_v16  ;;  %v4636_v57 = vadd.f32 %v4315_v38, %v1368_v32 }
 0x23a   :  { %v1363_v28 = vadd.f32 %v4485_v47, %v1204_v11  ;;  %v1211_v51 = vrot.slane %v4496_v50, 1  ;;  %v1524_v39 = vpack.c.bf16 %v1495_v14, %v1494_v34  ;;  %v1207_v37 = vrot.slane %v4499_v8, 1 }
 0x23b   :  { %3286 = vmatmul.mubr.msk.bf16.vlgmr.msra.gmra.mrb[48].mxu0 %vm1598_vm9, %v1523_v55  ;;  %3330 = vmatmul.mubr.msk.bf16.vlgmr.msra.gmra.mrb[48].mxu1 %vm1598_vm9, %v1523_v55  ;;  %v4643_v44 = vsel %vm2547_vm8, %v2646_v46, %v2659_v48  ;;  %v1466_v23 = vadd.f32 %v4315_v38, %v1360_v54  ;;  %v1497_v9 = vmax.f32 %v1465_v18, 0.0  ;;  %v1500_v58 = vmax.f32 %v4636_v57, 0.0 }
 0x23c   :  { %3362 = vmatpush3.bf16.msra.mxu0 %v3471_v27  ;;  %v1467_v19 = vadd.f32 %v4315_v38, %v1363_v28  ;;  %v1213_v20 = vrot.slane %v4505_v30, 1  ;;  %v4650_v60 = vpop.f32.mrb[44].mxu0  ;;  %v4946_v47 = vmov 0.0   ;;  %3289 = vmatprep.mubr.msk.bf16.mxu0 %vm1598_vm9, %v1524_v39  ;;  %v1208_v46 = vsel %vm468_vm1, %v1205_v1, %v1207_v37  ;;  %v4660_v34 = vpop.f32.mrb[44].mxu1 }
 0x23d   :  { %3375 = vmatprep.subr.bf16.mxu0 %v4946_v47  ;;  %v1498_v50 = vmax.f32 %v1466_v23, 0.0  ;;  %3333 = vmatprep.mubr.msk.bf16.mxu1 %vm1598_vm9, %v1524_v39  ;;  %v1209_v8 = vrot.slane %v4512_v13, 1  ;;  %v1219_v48 = vrot.slane %v4522_v31, 1  ;;  %v4658_v57 = vpop.f32.mrb[45].mxu0  ;;  %v1371_v42 = vadd.f32 %v4481_v33, %v1208_v46  ;;  %v4666_v32 = vpop.f32.mrb[45].mxu1 }
 0x23e   :  { %v1499_v30 = vmax.f32 %v1467_v19, 0.0  ;;  %v1214_v27 = vsel %vm468_vm1, %v1211_v51, %v1213_v20  ;;  %v1525_v55 = vpack.c.bf16 %v1497_v9, %v1496_v29  ;;  %v4664_v10 = vpop.f32.mrb[46].mxu0  ;;  %v1215_v16 = vrot.slane %v4525_v61, 1  ;;  %v4674_v54 = vpop.f32.mrb[46].mxu1 }
 0x23f   :  { %v1384_v1 = vadd.f32 %v4501_v36, %v1214_v27  ;;  %v1210_v13 = vsel %vm468_vm1, %v1207_v37, %v1209_v8  ;;  %v1212_v31 = vsel %vm468_vm1, %v1209_v8, %v1211_v51  ;;  %v4672_v14 = vpop.f32.mrb[47].mxu0  ;;  %v1469_v11 = vadd.f32 %v4315_v38, %v1371_v42  ;;  %v4679_v28 = vpop.f32.mrb[47].mxu1 }
 0x240   :  { %v1526_v33 = vpack.c.bf16 %v1499_v30, %v1498_v50  ;;  %v1376_v29 = vadd.f32 %v4507_v62, %v1210_v13  ;;  %v1379_v18 = vadd.f32 %v4517_v17, %v1212_v31  ;;  %v1216_v39 = vsel %vm468_vm1, %v1213_v20, %v1215_v16 }
 0x241   :  { %v1472_v36 = vadd.f32 %v4315_v38, %v1384_v1  ;;  %v1221_v51 = vrot.slane %v4531_v43, 1  ;;  %v1217_v61 = vrot.slane %v4536_v3, 1  ;;  %v1501_v23 = vmax.f32 %v1469_v11, 0.0 }
 0x242   :  { %v1470_v37 = vadd.f32 %v4315_v38, %v1376_v29  ;;  %v1471_v62 = vadd.f32 %v4315_v38, %v1379_v18  ;;  %v1387_v17 = vadd.f32 %v4514_v53, %v1216_v39  ;;  %v1227_v27 = vrot.slane %v4560_v0, 1 }
 0x243   :  { %3290 = vmatmul.mubr.msk.bf16.gmra.mrb[52].mxu0 %vm1598_vm9, %v1525_v55  ;;  %3334 = vmatmul.mubr.msk.bf16.gmra.mrb[52].mxu1 %vm1598_vm9, %v1525_v55  ;;  %v1504_v9 = vmax.f32 %v1472_v36, 0.0  ;;  %v1222_v43 = vsel %vm468_vm1, %v1219_v48, %v1221_v51  ;;  %v1218_v3 = vsel %vm468_vm1, %v1215_v16, %v1217_v61  ;;  %v1220_v19 = vsel %vm468_vm1, %v1217_v61, %v1219_v48 }
 0x244   :  { %3293 = vmatprep.mubr.msk.bf16.mxu0 %vm1598_vm9, %v1526_v33  ;;  %3337 = vmatprep.mubr.msk.bf16.mxu1 %vm1598_vm9, %v1526_v33  ;;  %v1502_v20 = vmax.f32 %v1470_v37, 0.0  ;;  %v1503_v50 = vmax.f32 %v1471_v62, 0.0  ;;  %v1473_v46 = vadd.f32 %v4315_v38, %v1387_v17  ;;  %v1400_v8 = vadd.f32 %v4533_v12, %v1222_v43 }
 0x245   :  { %v1392_v30 = vadd.f32 %v4538_v24, %v1218_v3  ;;  %v1527_v53 = vpack.c.bf16 %v1501_v23, %v1500_v58  ;;  %v1395_v42 = vadd.f32 %v4549_v5, %v1220_v19  ;;  %v1223_v31 = vrot.slane %v4570_v35, 1 }
 0x246   :  { %v1528_v55 = vpack.c.bf16 %v1503_v50, %v1502_v20  ;;  %v1505_v1 = vmax.f32 %v1473_v46, 0.0  ;;  %v1476_v13 = vadd.f32 %v4315_v38, %v1400_v8  ;;  %v1229_v33 = vrot.slane %v4576_v45, 1 }
 0x247   :  { %v1474_v48 = vadd.f32 %v4315_v38, %v1392_v30  ;;  %v1475_v16 = vadd.f32 %v4315_v38, %v1395_v42  ;;  %v1225_v12 = vrot.slane %v4584_v25, 1  ;;  %v1224_v58 = vsel %vm468_vm1, %v1221_v51, %v1223_v31 }
 0x248   :  { %v1508_v24 = vmax.f32 %v1476_v13, 0.0  ;;  %v1529_v5 = vpack.c.bf16 %v1505_v1, %v1504_v9  ;;  %v1235_v0 = vrot.slane %v4606_v4, 1  ;;  %v1403_v18 = vadd.f32 %v4547_v15, %v1224_v58 }
 0x249   :  { %v1506_v11 = vmax.f32 %v1474_v48, 0.0  ;;  %v1507_v29 = vmax.f32 %v1475_v16, 0.0  ;;  %v1230_v35 = vsel %vm468_vm1, %v1227_v27, %v1229_v33  ;;  %v1226_v25 = vsel %vm468_vm1, %v1223_v31, %v1225_v12 }
 0x24a   :  { %v1416_v45 = vadd.f32 %v4572_v7, %v1230_v35  ;;  %v1228_v36 = vsel %vm468_vm1, %v1225_v12, %v1227_v27  ;;  %v1231_v39 = vrot.slane %v4611_v21, 1  ;;  %v1477_v15 = vadd.f32 %v4315_v38, %v1403_v18  ;;  %v4948_v12 = vld [vmem:[#allocation37_spill] sm:$0xff] }
 0x24b   :  { %3294 = vmatmul.mubr.msk.bf16.gmra.mrb[56].mxu0 %vm1598_vm9, %v1527_v53  ;;  %3338 = vmatmul.mubr.msk.bf16.gmra.mrb[56].mxu1 %vm1598_vm9, %v1527_v53  ;;  %v1530_v51 = vpack.c.bf16 %v1507_v29, %v1506_v11  ;;  %v1408_v4 = vadd.f32 %v4578_v26, %v1226_v25  ;;  %v1237_v61 = vrot.slane %v4618_v63, 1  ;;  %v1411_v7 = vadd.f32 %v4592_v59, %v1228_v36 }
 0x24c   :  { %3297 = vmatprep.mubr.msk.bf16.mxu0 %vm1598_vm9, %v1528_v55  ;;  %3341 = vmatprep.mubr.msk.bf16.mxu1 %vm1598_vm9, %v1528_v55  ;;  %v1480_v23 = vadd.f32 %v4315_v38, %v1416_v45  ;;  %v1232_v37 = vsel %vm468_vm1, %v1229_v33, %v1231_v39  ;;  %v1233_v62 = vrot.slane %v4623_v40, 1  ;;  %v1509_v21 = vmax.f32 %v1477_v15, 0.0 }
 0x24d   :  { %v1478_v17 = vadd.f32 %v4315_v38, %v1408_v4  ;;  %v1419_v9 = vadd.f32 %v4586_v49, %v1232_v37  ;;  %v1238_v43 = vsel %vm468_vm1, %v1235_v0, %v1237_v61  ;;  %v4947_v26 = vpack.c.bf16 %v4564_v2, %v4564_v2  ;;  %v4953_v4 = vld [vmem:[#allocation40_spill] sm:$0xff] }
 0x24e   :  { %v1479_v3 = vadd.f32 %v4315_v38, %v1411_v7  ;;  %v1432_v59 = vadd.f32 %v4613_v41, %v1238_v43  ;;  %v1234_v19 = vsel %vm468_vm1, %v1231_v39, %v1233_v62  ;;  %v1531_v49 = vpack.c.bf16 %v1509_v21, %v1508_v24 }
 0x24f   :  { %v2648_v63 = vunpack.c.l.b16 %v4947_v26  ;;  %v1510_v40 = vmax.f32 %v1478_v17, 0.0  ;;  %v1481_v20 = vadd.f32 %v4315_v38, %v1419_v9  ;;  %v1424_v50 = vadd.f32 %v4620_v22, %v1234_v19  ;;  %v3473_v26 = vld [vmem:[#allocation19] sm:$0xff]  }
 0x250   :  { %v1512_v46 = vmax.f32 %v1480_v23, 0.0  ;;  %v1511_v8 = vmax.f32 %v1479_v3, 0.0  ;;  %v1484_v30 = vadd.f32 %v4315_v38, %v1432_v59  ;;  %v1236_v2 = vsel %vm468_vm1, %v1233_v62, %v1235_v0  ;;  %v3475_v3 = vld [vmem:[#allocation19 + $0x10] sm:$0xff]   ;;  %v3476_v59 = vld [vmem:[#allocation19 + $0x18] sm:$0xff]   ;;  %v3477_v19 = vld [vmem:[#allocation20] sm:$0xff]  }
 0x251   :  { %v1513_v53 = vmax.f32 %v1481_v20, 0.0  ;;  %v1482_v42 = vadd.f32 %v4315_v38, %v1424_v50  ;;  %v1427_v41 = vadd.f32 %v4630_v6, %v1236_v2  ;;  %v1239_v27 = vrot.slane %v4658_v57, 1  ;;  %3368 = vmatpush3.bf16.msra.mxu1 %v3477_v19 }
 0x252   :  { %v1532_v55 = vpack.c.bf16 %v1511_v8, %v1510_v40  ;;  %v1243_v22 = vrot.slane %v4650_v60, 1  ;;  %v1245_v1 = vrot.slane %v4664_v10, 1  ;;  %v1241_v13 = vrot.slane %v4672_v14, 1  ;;  %3369 = vmatprep.subr.bf16.mxu1 %v4946_v47  ;;  %v3478_v40 = vld [vmem:[#allocation20 + $0x8] sm:$0xff]  }
 0x253   :  { %3298 = vmatmul.mubr.msk.bf16.gmra.mrb[60].mxu0 %vm1598_vm9, %v1529_v5  ;;  %3342 = vmatmul.mubr.msk.bf16.gmra.mrb[60].mxu1 %vm1598_vm9, %v1529_v5  ;;  %v1514_v31 = vmax.f32 %v1482_v42, 0.0  ;;  %v1483_v6 = vadd.f32 %v4315_v38, %v1427_v41  ;;  %v1240_v57 = vsel %vm468_vm1, %v1237_v61, %v1239_v27  ;;  %v1533_v48 = vpack.c.bf16 %v1513_v53, %v1512_v46 }
 0x254   :  { %3301 = vmatprep.mubr.msk.bf16.mxu0 %vm1598_vm9, %v1530_v51  ;;  %3345 = vmatprep.mubr.msk.bf16.mxu1 %vm1598_vm9, %v1530_v51  ;;  %v1435_v16 = vadd.f32 %v4625_v52, %v1240_v57  ;;  %v1246_v33 = vsel %vm468_vm1, %v1243_v22, %v1245_v1  ;;  %v1242_v60 = vsel %vm468_vm1, %v1239_v27, %v1241_v13  ;;  %v4949_v10 = vrot.slane %v4948_v12, 1  ;;  %v4952_v51 = vld [vmem:[#allocation39_spill] sm:$0xff] }
 0x255   :  { %v1515_v24 = vmax.f32 %v1483_v6, 0.0  ;;  %v1448_v58 = vadd.f32 %v4660_v34, %v1246_v33  ;;  %v1440_v5 = vadd.f32 %v4666_v32, %v1242_v60  ;;  %v1516_v11 = vmax.f32 %v1484_v30, 0.0  ;;  %3370 = vmatpush3.bf16.msra.mxu1 %v3478_v40 }
 0x256   :  { %v1280_v14 = vsel %vm468_vm1, %v1245_v1, %v4949_v10  ;;  %v1485_v29 = vadd.f32 %v4315_v38, %v1435_v16  ;;  %v1244_v52 = vsel %vm468_vm1, %v1241_v13, %v1243_v22  ;;  %v4950_v18 = vpack.c.bf16 %v4468_v56, %v4468_v56  ;;  %3387 = vmatprep.subr.bf16.mxu1 %v4946_v47  ;;  %v4805_v1 = vld [vmem:[#allocation25] sm:$0xff] }
 0x257   :  { %v1451_v0 = vadd.f32 %v4674_v54, %v1280_v14  ;;  %v1534_v45 = vpack.c.bf16 %v1515_v24, %v1514_v31  ;;  %v1488_v25 = vadd.f32 %v4315_v38, %v1448_v58  ;;  %v1486_v36 = vadd.f32 %v4315_v38, %v1440_v5  ;;  %v4951_v54 = vld [vmem:[#allocation38_spill] sm:$0xff] }
 0x258   :  { %v2640_v35 = vunpack.c.l.b16 %v4950_v18  ;;  %v1517_v39 = vmax.f32 %v1485_v29, 0.0  ;;  %v1443_v32 = vadd.f32 %v4679_v28, %v1244_v52  ;;  %v2654_v15 = vsel %vm2549_vm10, %v4952_v51, %v4951_v54 }
 0x259   :  { %v1489_v34 = vadd.f32 %v4315_v38, %v1451_v0  ;;  %v2661_v61 = vsel %vm2549_vm10, %v4953_v4, %v4643_v44  ;;  %v1520_v56 = vmax.f32 %v1488_v25, 0.0  ;;  %v1518_v37 = vmax.f32 %v1486_v36, 0.0 }
 0x25a   :  { %v2655_v7 = vsel %vm2551_vm11, %v2640_v35, %v2654_v15  ;;  %v1487_v62 = vadd.f32 %v4315_v38, %v1443_v32  ;;  %v1535_v28 = vpack.c.bf16 %v1517_v39, %v1516_v11  ;;  %v2662_v21 = vsel %vm2551_vm11, %v2648_v63, %v2661_v61  ;;  %v3472_v38 = vld [vmem:[#allocation7] sm:$0xff]   ;;  %v3474_v63 = vld [vmem:[#allocation19 + $0x8] sm:$0xff]  }
 0x25b   :  { %v1521_v23 = vmax.f32 %v1489_v34, 0.0  ;;  %3302 = vmatmul.mubr.msk.bf16.gmra.mrb[64].mxu0 %vm1598_vm9, %v1531_v49  ;;  %3346 = vmatmul.mubr.msk.bf16.gmra.mrb[64].mxu1 %vm1598_vm9, %v1531_v49  ;;  %v2663_v44 = vpack.c.b16 %v2662_v21, %v2655_v7  ;;  %v4954_v49 = vld [vmem:[#allocation36_spill] sm:$0xff] }
 0x25c   :  { %3305 = vmatprep.mubr.msk.bf16.mxu0 %vm1598_vm9, %v1532_v55  ;;  %3349 = vmatprep.mubr.msk.bf16.mxu1 %vm1598_vm9, %v1532_v55  ;;  %v1519_v9 = vmax.f32 %v1487_v62, 0.0  ;;  %v2136_v46 = vsub.s32 2, %v4954_v49 }
 0x25d   :  { %v1537_v17 = vpack.c.bf16 %v1521_v23, %v1520_v56 }
 0x25e   :  { %v1536_v43 = vpack.c.bf16 %v1519_v9, %v1518_v37  ;;  %v4808_v13 = vrot.slane %v4805_v1, %v2136_v46 }
 0x263   :  { %3306 = vmatmul.mubr.msk.bf16.gmra.mrb[68].mxu0 %vm1598_vm9, %v1533_v48  ;;  %3350 = vmatmul.mubr.msk.bf16.gmra.mrb[68].mxu1 %vm1598_vm9, %v1533_v48 }
 0x264   :  { %3309 = vmatprep.mubr.msk.bf16.mxu0 %vm1598_vm9, %v1534_v45  ;;  %3353 = vmatprep.mubr.msk.bf16.mxu1 %vm1598_vm9, %v1534_v45 }
 0x26b   :  { %3310 = vmatmul.mubr.msk.bf16.gmra.mrb[72].mxu0 %vm1598_vm9, %v1535_v28  ;;  %3354 = vmatmul.mubr.msk.bf16.gmra.mrb[72].mxu1 %vm1598_vm9, %v1535_v28 }
 0x26c   :  { %3313 = vmatprep.mubr.msk.bf16.mxu0 %vm1598_vm9, %v1536_v43  ;;  %3357 = vmatprep.mubr.msk.bf16.mxu1 %vm1598_vm9, %v1536_v43 }
 0x273   :  { %3314 = vmatmul.mubr.msk.bf16.gmra.mrb[76].mxu0 %vm1598_vm9, %v1537_v17  ;;  %3358 = vmatmul.mubr.msk.bf16.gmra.mrb[76].mxu1 %vm1598_vm9, %v1537_v17 }
 0x274   :  { %3363 = vmatprep.mubr.msk.bf16.mxu0 %vm3873_vm12, %v4946_v47  ;;  %3371 = vmatprep.mubr.msk.bf16.mxu1 %vm3873_vm12, %v4946_v47 }
 0x27b   :  { %3364 = vmatmul.mubr.msk.bf16.vlgmr.msra.gmra.mrb[80].mxu0 %vm2416_vm13, %v3472_v38 }
 0x27c   :  { %3376 = vmatpush3.bf16.msra.mxu0 %v3473_v26  ;;  %3383 = vmatprep.mubr.msk.bf16.mxu0 %vm3873_vm12, %v4946_v47  ;;  %v2403_v26 = vsub.s32 3, %v4954_v49 }
 0x27d   :  { %3377 = vmatprep.subr.bf16.mxu0 %v4946_v47 }
 0x280   :  { %3378 = vmatpush3.bf16.msra.mxu0 %v3474_v63 }
 0x281   :  { %3379 = vmatprep.subr.bf16.mxu0 %v4946_v47 }
 0x284   :  { %3380 = vmatpush3.bf16.msra.mxu0 %v3475_v3 }
 0x285   :  { %3381 = vmatprep.subr.bf16.mxu0 %v4946_v47 }
 0x288   :  { %3382 = vmatpush3.bf16.msra.mxu0 %v3476_v59 }
 0x28b   :  { %3384 = vmatmul.mubr.msk.bf16.vlgmr.msra.gmra.mrb[84].mxu0 %vm682_vm3, %v2663_v44 }
 0x30e   :  { %v3287_v20 = vpop.f32.mrb[48].mxu0  ;;  %v3331_v50 = vpop.f32.mrb[48].mxu1 }
 0x30f   :  { %v1681_v8 = vpop.f32.mrb[49].mxu0  ;;  %v2007_v30 = vpop.f32.mrb[49].mxu1  ;;  %v1843_v42 = vrot.slane %v3287_v20, 1 }
 0x310   :  { %v3288_v2 = vpop.f32.mrb[50].mxu0  ;;  %v3332_v53 = vpop.f32.mrb[50].mxu1  ;;  %v1840_v22 = vrot.slane %v1681_v8, 1 }
 0x311   :  { %v1845_v41 = vrot.slane %v3288_v2, 1  ;;  %v1684_v27 = vpop.f32.mrb[51].mxu0  ;;  %v2010_v55 = vpop.f32.mrb[51].mxu1 }
 0x312   :  { %v1841_v31 = vrot.slane %v1684_v27, 1 }
 0x313   :  { %v1846_v6 = vsel %vm468_vm1, %v1843_v42, %v1845_v41 }
 0x314   :  { %v2016_v57 = vadd.f32 %v3331_v50, %v1846_v6  ;;  %v1842_v48 = vsel %vm468_vm1, %v1840_v22, %v1841_v31 }
 0x315   :  { %v2008_v16 = vadd.f32 %v2007_v30, %v1842_v48 }
 0x316   :  { %v2140_v33 = vadd.f32 %v4808_v13, %v2016_v57  ;;  %v3291_v60 = vpop.f32.mrb[52].mxu0  ;;  %v3335_v12 = vpop.f32.mrb[52].mxu1 }
 0x317   :  { %v2138_v10 = vadd.f32 %v4808_v13, %v2008_v16  ;;  %v1697_v14 = vpop.f32.mrb[53].mxu0  ;;  %v2023_v24 = vpop.f32.mrb[53].mxu1  ;;  %v1851_v29 = vrot.slane %v3291_v60, 1 }
 0x318   :  { %v2172_v58 = vmax.f32 %v2140_v33, 0.0  ;;  %v3292_v5 = vpop.f32.mrb[54].mxu0  ;;  %v3336_v0 = vpop.f32.mrb[54].mxu1  ;;  %v1847_v25 = vrot.slane %v1697_v14, 1  ;;  %v4827_v14 = vrot.slane %v4805_v1, %v2403_v26 }
 0x319   :  { %v2170_v11 = vmax.f32 %v2138_v10, 0.0  ;;  %v1853_v52 = vrot.slane %v3292_v5, 1  ;;  %v1700_v18 = vpop.f32.mrb[55].mxu0  ;;  %v2026_v35 = vpop.f32.mrb[55].mxu1 }
 0x31a   :  { %v2246_v45 = vsel %vm330_vm0, %v2172_v58, 0.0  ;;  %v1849_v36 = vrot.slane %v1700_v18, 1 }
 0x31b   :  { %v2249_v34 = vrot.slane %v2246_v45, 4  ;;  %v2237_v39 = vsel %vm330_vm0, %v2170_v11, 0.0  ;;  %v1854_v32 = vsel %vm468_vm1, %v1851_v29, %v1853_v52 }
 0x31c   :  { %v2240_v54 = vrot.slane %v2237_v39, 4  ;;  %v2032_v51 = vadd.f32 %v3335_v12, %v1854_v32  ;;  %v1850_v15 = vsel %vm468_vm1, %v1847_v25, %v1849_v36 }
 0x31d   :  { %v2250_v4 = vadd.f32 %v2249_v34, %v2246_v45  ;;  %v2024_v61 = vadd.f32 %v2023_v24, %v1850_v15 }
 0x31e   :  { %v2241_v56 = vadd.f32 %v2240_v54, %v2237_v39  ;;  %v2144_v23 = vadd.f32 %v4808_v13, %v2032_v51  ;;  %v3295_v7 = vpop.f32.mrb[56].mxu0  ;;  %v3339_v37 = vpop.f32.mrb[56].mxu1 }
 0x31f   :  { %v2251_v62 = vrot.slane %v2250_v4, 2  ;;  %v2142_v28 = vadd.f32 %v4808_v13, %v2024_v61  ;;  %v1713_v21 = vpop.f32.mrb[57].mxu0  ;;  %v2039_v17 = vpop.f32.mrb[57].mxu1  ;;  %v1859_v59 = vrot.slane %v3295_v7, 1 }
 0x320   :  { %v2242_v44 = vrot.slane %v2241_v56, 2  ;;  %v2176_v9 = vmax.f32 %v2144_v23, 0.0  ;;  %v3296_v43 = vpop.f32.mrb[58].mxu0  ;;  %v3340_v38 = vpop.f32.mrb[58].mxu1  ;;  %v1855_v8 = vrot.slane %v1713_v21, 1 }
 0x321   :  { %v2252_v63 = vadd.f32 %v2251_v62, %v2250_v4  ;;  %v2174_v3 = vmax.f32 %v2142_v28, 0.0  ;;  %v1861_v19 = vrot.slane %v3296_v43, 1  ;;  %v1716_v40 = vpop.f32.mrb[59].mxu0  ;;  %v2042_v20 = vpop.f32.mrb[59].mxu1 }
 0x322   :  { %v2243_v50 = vadd.f32 %v2242_v44, %v2241_v56  ;;  %v2264_v46 = vsel %vm330_vm0, %v2176_v9, 0.0  ;;  %v1857_v30 = vrot.slane %v1716_v40, 1 }
 0x323   :  { %v2253_v2 = vrot.slane %v2252_v63, 1  ;;  %v2267_v53 = vrot.slane %v2264_v46, 4  ;;  %v2255_v42 = vsel %vm330_vm0, %v2174_v3, 0.0  ;;  %v1862_v41 = vsel %vm468_vm1, %v1859_v59, %v1861_v19 }
 0x324   :  { %v2244_v27 = vrot.slane %v2243_v50, 1  ;;  %v2258_v55 = vrot.slane %v2255_v42, 4  ;;  %v2048_v22 = vadd.f32 %v3339_v37, %v1862_v41  ;;  %v1858_v31 = vsel %vm468_vm1, %v1855_v8, %v1857_v30 }
 0x325   :  { %v2254_v6 = vadd.f32 %v2253_v2, %v2252_v63  ;;  %v2268_v57 = vadd.f32 %v2267_v53, %v2264_v46  ;;  %v2040_v48 = vadd.f32 %v2039_v17, %v1858_v31 }
 0x326   :  { %v2245_v16 = vadd.f32 %v2244_v27, %v2243_v50  ;;  %v2259_v33 = vadd.f32 %v2258_v55, %v2255_v42  ;;  %v2148_v60 = vadd.f32 %v4808_v13, %v2048_v22  ;;  %v3299_v12 = vpop.f32.mrb[60].mxu0  ;;  %v3343_v10 = vpop.f32.mrb[60].mxu1 }
 0x327   :  { %v2382_v24 = vmul.f32 0.125, %v2254_v6  ;;  %v2269_v58 = vrot.slane %v2268_v57, 2  ;;  %v2146_v5 = vadd.f32 %v4808_v13, %v2040_v48  ;;  %v1867_v0 = vrot.slane %v3299_v12, 1  ;;  %v1729_v11 = vpop.f32.mrb[61].mxu0  ;;  %v2055_v29 = vpop.f32.mrb[61].mxu1 }
 0x328   :  { %v2381_v52 = vmul.f32 0.125, %v2245_v16  ;;  %v2260_v18 = vrot.slane %v2259_v33, 2  ;;  %v2180_v35 = vmax.f32 %v2148_v60, 0.0  ;;  %v1863_v45 = vrot.slane %v1729_v11, 1  ;;  %v3300_v25 = vpop.f32.mrb[62].mxu0  ;;  %v3344_v36 = vpop.f32.mrb[62].mxu1 }
 0x329   :  { %v2488_v34 = vpack.c.bf16 %v2382_v24, %v2382_v24  ;;  %v2270_v39 = vadd.f32 %v2269_v58, %v2268_v57  ;;  %v2178_v32 = vmax.f32 %v2146_v5, 0.0  ;;  %v1869_v54 = vrot.slane %v3300_v25, 1  ;;  %v1732_v51 = vpop.f32.mrb[63].mxu0  ;;  %v2058_v15 = vpop.f32.mrb[63].mxu1 }
 0x32a   :  { %v2487_v4 = vpack.c.bf16 %v2381_v52, %v2381_v52  ;;  %v2261_v61 = vadd.f32 %v2260_v18, %v2259_v33  ;;  %v2282_v56 = vsel %vm330_vm0, %v2180_v35, 0.0  ;;  %v1865_v23 = vrot.slane %v1732_v51, 1 }
 0x32b   :  { %v2524_v7 = vunpack.c.l.b16 %v2488_v34  ;;  %v2271_v37 = vrot.slane %v2270_v39, 1  ;;  %v2285_v62 = vrot.slane %v2282_v56, 4  ;;  %v2273_v28 = vsel %vm330_vm0, %v2178_v32, 0.0 }
 0x32c   :  { %v2523_v21 = vunpack.c.l.b16 %v2487_v4  ;;  %v2262_v17 = vrot.slane %v2261_v61, 1  ;;  %v2276_v44 = vrot.slane %v2273_v28, 4  ;;  %v1870_v9 = vsel %vm468_vm1, %v1867_v0, %v1869_v54 }
 0x32d   :  { %v2272_v43 = vadd.f32 %v2271_v37, %v2270_v39  ;;  %v2286_v38 = vadd.f32 %v2285_v62, %v2282_v56  ;;  %v2064_v26 = vadd.f32 %v3343_v10, %v1870_v9  ;;  %v1866_v63 = vsel %vm468_vm1, %v1863_v45, %v1865_v23 }
 0x32e   :  { %v2540_v3 = vsel %vm2539_vm4, %v2524_v7, %v2523_v21  ;;  %v2263_v59 = vadd.f32 %v2262_v17, %v2261_v61  ;;  %v2277_v19 = vadd.f32 %v2276_v44, %v2273_v28  ;;  %v2056_v40 = vadd.f32 %v2055_v29, %v1866_v63  ;;  %v3303_v20 = vpop.f32.mrb[64].mxu0  ;;  %v3347_v50 = vpop.f32.mrb[64].mxu1 }
 0x32f   :  { %v2384_v46 = vmul.f32 0.125, %v2272_v43  ;;  %v2287_v8 = vrot.slane %v2286_v38, 2  ;;  %v2152_v30 = vadd.f32 %v4808_v13, %v2064_v26  ;;  %v1875_v2 = vrot.slane %v3303_v20, 1  ;;  %v1745_v53 = vpop.f32.mrb[65].mxu0  ;;  %v2071_v42 = vpop.f32.mrb[65].mxu1 }
 0x330   :  { %v2383_v41 = vmul.f32 0.125, %v2263_v59  ;;  %v2278_v27 = vrot.slane %v2277_v19, 2  ;;  %v2150_v55 = vadd.f32 %v4808_v13, %v2056_v40  ;;  %v1871_v22 = vrot.slane %v1745_v53, 1  ;;  %v3304_v31 = vpop.f32.mrb[66].mxu0  ;;  %v3348_v6 = vpop.f32.mrb[66].mxu1 }
 0x331   :  { %v2490_v57 = vpack.c.bf16 %v2384_v46, %v2384_v46  ;;  %v2288_v48 = vadd.f32 %v2287_v8, %v2286_v38  ;;  %v2184_v16 = vmax.f32 %v2152_v30, 0.0  ;;  %v1877_v33 = vrot.slane %v3304_v31, 1  ;;  %v1748_v60 = vpop.f32.mrb[67].mxu0  ;;  %v2074_v12 = vpop.f32.mrb[67].mxu1 }
 0x332   :  { %v2489_v10 = vpack.c.bf16 %v2383_v41, %v2383_v41  ;;  %v2279_v24 = vadd.f32 %v2278_v27, %v2277_v19  ;;  %v2182_v58 = vmax.f32 %v2150_v55, 0.0  ;;  %v1873_v5 = vrot.slane %v1748_v60, 1 }
 0x333   :  { %v2526_v0 = vunpack.c.l.b16 %v2490_v57  ;;  %v2289_v11 = vrot.slane %v2288_v48, 1  ;;  %v2300_v29 = vsel %vm330_vm0, %v2184_v16, 0.0  ;;  %v1878_v52 = vsel %vm468_vm1, %v1875_v2, %v1877_v33 }
 0x334   :  { %v2525_v18 = vunpack.c.l.b16 %v2489_v10  ;;  %v2280_v35 = vrot.slane %v2279_v24, 1  ;;  %v2303_v45 = vrot.slane %v2300_v29, 4  ;;  %v2291_v25 = vsel %vm330_vm0, %v2182_v58, 0.0 }
 0x335   :  { %v2290_v36 = vadd.f32 %v2289_v11, %v2288_v48  ;;  %v2294_v34 = vrot.slane %v2291_v25, 4  ;;  %v2080_v39 = vadd.f32 %v3347_v50, %v1878_v52  ;;  %v1874_v32 = vsel %vm468_vm1, %v1871_v22, %v1873_v5 }
 0x336   :  { %v2542_v54 = vsel %vm2541_vm5, %v2525_v18, %v2540_v3  ;;  %v2281_v51 = vadd.f32 %v2280_v35, %v2279_v24  ;;  %v2304_v15 = vadd.f32 %v2303_v45, %v2300_v29  ;;  %v2072_v4 = vadd.f32 %v2071_v42, %v1874_v32  ;;  %v3307_v61 = vpop.f32.mrb[68].mxu0  ;;  %v3351_v56 = vpop.f32.mrb[68].mxu1 }
 0x337   :  { %v2386_v23 = vmul.f32 0.125, %v2290_v36  ;;  %v2544_v7 = vsel %vm2543_vm6, %v2526_v0, %v2542_v54  ;;  %v2295_v37 = vadd.f32 %v2294_v34, %v2291_v25  ;;  %v2156_v62 = vadd.f32 %v4808_v13, %v2080_v39  ;;  %v1761_v28 = vpop.f32.mrb[69].mxu0  ;;  %v2087_v21 = vpop.f32.mrb[69].mxu1 }
 0x338   :  { %v2385_v17 = vmul.f32 0.125, %v2281_v51  ;;  %v2305_v44 = vrot.slane %v2304_v15, 2  ;;  %v2154_v9 = vadd.f32 %v4808_v13, %v2072_v4  ;;  %v1883_v43 = vrot.slane %v3307_v61, 1  ;;  %v3308_v38 = vpop.f32.mrb[70].mxu0  ;;  %v3352_v26 = vpop.f32.mrb[70].mxu1 }
 0x339   :  { %v2492_v63 = vpack.c.bf16 %v2386_v23, %v2386_v23  ;;  %v2296_v3 = vrot.slane %v2295_v37, 2  ;;  %v2188_v59 = vmax.f32 %v2156_v62, 0.0  ;;  %v1879_v19 = vrot.slane %v1761_v28, 1  ;;  %v1764_v40 = vpop.f32.mrb[71].mxu0  ;;  %v2090_v20 = vpop.f32.mrb[71].mxu1 }
 0x33a   :  { %v2491_v50 = vpack.c.bf16 %v2385_v17, %v2385_v17  ;;  %v2306_v46 = vadd.f32 %v2305_v44, %v2304_v15  ;;  %v2186_v8 = vmax.f32 %v2154_v9, 0.0  ;;  %v1885_v30 = vrot.slane %v3308_v38, 1 }
 0x33b   :  { %v4845_v2 = vunpack.c.l.b16 %v2492_v63  ;;  %v2297_v53 = vadd.f32 %v2296_v3, %v2295_v37  ;;  %v2318_v42 = vsel %vm330_vm0, %v2188_v59, 0.0  ;;  %v1881_v41 = vrot.slane %v1764_v40, 1 }
 0x33c   :  { %v2527_v27 = vunpack.c.l.b16 %v2491_v50  ;;  %v2307_v55 = vrot.slane %v2306_v46, 1  ;;  %v2321_v22 = vrot.slane %v2318_v42, 4  ;;  %v2309_v31 = vsel %vm330_vm0, %v2186_v8, 0.0 }
 0x33d   :  { %v2298_v6 = vrot.slane %v2297_v53, 1  ;;  %v2312_v57 = vrot.slane %v2309_v31, 4  ;;  %v1886_v48 = vsel %vm468_vm1, %v1883_v43, %v1885_v30  ;;  %v1882_v16 = vsel %vm468_vm1, %v1879_v19, %v1881_v41 }
 0x33e   :  { %v4852_v33 = vsel %vm2545_vm7, %v2527_v27, %v2544_v7  ;;  %v2308_v60 = vadd.f32 %v2307_v55, %v2306_v46  ;;  %v2322_v12 = vadd.f32 %v2321_v22, %v2318_v42  ;;  %v2096_v10 = vadd.f32 %v3351_v56, %v1886_v48  ;;  %v3311_v24 = vpop.f32.mrb[72].mxu0  ;;  %v3355_v58 = vpop.f32.mrb[72].mxu1 }
 0x33f   :  { %v2299_v5 = vadd.f32 %v2298_v6, %v2297_v53  ;;  %v2313_v0 = vadd.f32 %v2312_v57, %v2309_v31  ;;  %v2088_v11 = vadd.f32 %v2087_v21, %v1882_v16  ;;  %v1891_v29 = vrot.slane %v3311_v24, 1  ;;  %v1777_v52 = vpop.f32.mrb[73].mxu0  ;;  %v2103_v18 = vpop.f32.mrb[73].mxu1 }
 0x340   :  { %v2388_v35 = vmul.f32 0.125, %v2308_v60  ;;  %v2323_v45 = vrot.slane %v2322_v12, 2  ;;  %v2160_v25 = vadd.f32 %v4808_v13, %v2096_v10  ;;  %v1887_v36 = vrot.slane %v1777_v52, 1  ;;  %v3312_v34 = vpop.f32.mrb[74].mxu0  ;;  %v3356_v39 = vpop.f32.mrb[74].mxu1 }
 0x341   :  { %v2387_v32 = vmul.f32 0.125, %v2299_v5  ;;  %v2314_v54 = vrot.slane %v2313_v0, 2  ;;  %v2158_v51 = vadd.f32 %v4808_v13, %v2088_v11  ;;  %v1893_v15 = vrot.slane %v3312_v34, 1  ;;  %v1780_v4 = vpop.f32.mrb[75].mxu0  ;;  %v2106_v61 = vpop.f32.mrb[75].mxu1 }
 0x342   :  { %v2494_v56 = vpack.c.bf16 %v2388_v35, %v2388_v35  ;;  %v2324_v23 = vadd.f32 %v2323_v45, %v2322_v12  ;;  %v2192_v7 = vmax.f32 %v2160_v25, 0.0  ;;  %v1889_v37 = vrot.slane %v1780_v4, 1 }
 0x343   :  { %v2493_v62 = vpack.c.bf16 %v2387_v32, %v2387_v32  ;;  %v2315_v28 = vadd.f32 %v2314_v54, %v2313_v0  ;;  %v2190_v21 = vmax.f32 %v2158_v51, 0.0  ;;  %v1894_v17 = vsel %vm468_vm1, %v1891_v29, %v1893_v15 }
 0x344   :  { %v4857_v44 = vunpack.c.l.b16 %v2494_v56  ;;  %v2325_v9 = vrot.slane %v2324_v23, 1  ;;  %v2336_v43 = vsel %vm330_vm0, %v2192_v7, 0.0  ;;  %v2112_v38 = vadd.f32 %v3355_v58, %v1894_v17 }
 0x345   :  { %v4860_v26 = vunpack.c.l.b16 %v2493_v62  ;;  %v2316_v63 = vrot.slane %v2315_v28, 1  ;;  %v2339_v3 = vrot.slane %v2336_v43, 4  ;;  %v2327_v59 = vsel %vm330_vm0, %v2190_v21, 0.0 }
 0x346   :  { %v2326_v19 = vadd.f32 %v2325_v9, %v2324_v23  ;;  %v2330_v40 = vrot.slane %v2327_v59, 4  ;;  %v2164_v20 = vadd.f32 %v4808_v13, %v2112_v38  ;;  %v1890_v50 = vsel %vm468_vm1, %v1887_v36, %v1889_v37  ;;  %v3315_v46 = vpop.f32.mrb[76].mxu0  ;;  %v3359_v8 = vpop.f32.mrb[76].mxu1 }
 0x347   :  { %v2317_v30 = vadd.f32 %v2316_v63, %v2315_v28  ;;  %v2340_v53 = vadd.f32 %v2339_v3, %v2336_v43  ;;  %v2104_v42 = vadd.f32 %v2103_v18, %v1890_v50  ;;  %v1899_v41 = vrot.slane %v3315_v46, 1  ;;  %v1793_v27 = vpop.f32.mrb[77].mxu0  ;;  %v2119_v55 = vpop.f32.mrb[77].mxu1 }
 0x348   :  { %v2390_v22 = vmul.f32 0.125, %v2326_v19  ;;  %v2331_v31 = vadd.f32 %v2330_v40, %v2327_v59  ;;  %v2196_v6 = vmax.f32 %v2164_v20, 0.0  ;;  %v1895_v57 = vrot.slane %v1793_v27, 1  ;;  %v3316_v48 = vpop.f32.mrb[78].mxu0  ;;  %v3360_v16 = vpop.f32.mrb[78].mxu1 }
 0x349   :  { %v2389_v60 = vmul.f32 0.125, %v2317_v30  ;;  %v2341_v12 = vrot.slane %v2340_v53, 2  ;;  %v2162_v10 = vadd.f32 %v4808_v13, %v2104_v42  ;;  %v1901_v24 = vrot.slane %v3316_v48, 1  ;;  %v1796_v58 = vpop.f32.mrb[79].mxu0  ;;  %v2122_v5 = vpop.f32.mrb[79].mxu1 }
 0x34a   :  { %v2496_v0 = vpack.c.bf16 %v2390_v22, %v2390_v22  ;;  %v2332_v11 = vrot.slane %v2331_v31, 2  ;;  %v2354_v29 = vsel %vm330_vm0, %v2196_v6, 0.0  ;;  %v1897_v52 = vrot.slane %v1796_v58, 1 }
 0x34b   :  { %v2495_v18 = vpack.c.bf16 %v2389_v60, %v2389_v60  ;;  %v2342_v35 = vadd.f32 %v2341_v12, %v2340_v53  ;;  %v2357_v45 = vrot.slane %v2354_v29, 4  ;;  %v2194_v25 = vmax.f32 %v2162_v10, 0.0 }
 0x34c   :  { %v2532_v36 = vunpack.c.l.b16 %v2496_v0  ;;  %v2333_v34 = vadd.f32 %v2332_v11, %v2331_v31  ;;  %v1902_v39 = vsel %vm468_vm1, %v1899_v41, %v1901_v24  ;;  %v1898_v32 = vsel %vm468_vm1, %v1895_v57, %v1897_v52 }
 0x34d   :  { %v2531_v54 = vunpack.c.l.b16 %v2495_v18  ;;  %v2343_v51 = vrot.slane %v2342_v35, 1  ;;  %v2358_v15 = vadd.f32 %v2357_v45, %v2354_v29  ;;  %v2345_v4 = vsel %vm330_vm0, %v2194_v25, 0.0 }
 0x34e   :  { %v2334_v61 = vrot.slane %v2333_v34, 1  ;;  %v2348_v56 = vrot.slane %v2345_v4, 4  ;;  %v2128_v23 = vadd.f32 %v3359_v8, %v1902_v39  ;;  %v2120_v7 = vadd.f32 %v2119_v55, %v1898_v32  ;;  %v2454_v37 = vpop.f32.mrb[80].mxu0 }
 0x34f   :  { %v2553_v62 = vsel %vm2539_vm4, %v2532_v36, %v2531_v54  ;;  %v2344_v28 = vadd.f32 %v2343_v51, %v2342_v35  ;;  %v2359_v21 = vrot.slane %v2358_v15, 2  ;;  %v2455_v17 = vadd.f32 %v2454_v37, %v4827_v14  ;;  %v3365_v9 = vpop.f32.mrb[81].mxu0 }
 0x350   :  { %v2335_v43 = vadd.f32 %v2334_v61, %v2333_v34  ;;  %v2349_v38 = vadd.f32 %v2348_v56, %v2345_v4  ;;  %v2168_v63 = vadd.f32 %v4808_v13, %v2128_v23  ;;  %v2166_v3 = vadd.f32 %v4808_v13, %v2120_v7  ;;  %v2457_v59 = vpop.f32.mrb[82].mxu0 }
 0x351   :  { %v2392_v19 = vmul.f32 0.125, %v2344_v28  ;;  %v2360_v40 = vadd.f32 %v2359_v21, %v2358_v15  ;;  %v2461_v20 = vmax.f32 %v2455_v17, 0.0  ;;  %v2458_v50 = vadd.f32 %v2457_v59, %v4827_v14  ;;  %v3366_v46 = vpop.f32.mrb[83].mxu0 }
 0x352   :  { %v2391_v8 = vmul.f32 0.125, %v2335_v43  ;;  %v2350_v30 = vrot.slane %v2349_v38, 2  ;;  %v2200_v53 = vmax.f32 %v2168_v63, 0.0  ;;  %v2198_v42 = vmax.f32 %v2166_v3, 0.0  ;;  %v3479_v3 = vld [vmem:[#allocation22] sm:$0xff]  }
 0x353   :  { %v2498_v41 = vpack.c.bf16 %v2392_v19, %v2392_v19  ;;  %v2361_v27 = vrot.slane %v2360_v40, 1  ;;  %v2462_v55 = vmax.f32 %v2458_v50, 0.0  ;;  %v2548_v22 = vsel %vm2547_vm8, %v4845_v2, %v4852_v33  ;;  %v3480_v19 = vld [vmem:[#allocation23] sm:$0xff]   ;;  %v3483_v50 = vld [vmem:[#allocation23 + $0x18] sm:$0xff]  }
 0x354   :  { %v2497_v31 = vpack.c.bf16 %v2391_v8, %v2391_v8  ;;  %v2351_v13 = vadd.f32 %v2350_v30, %v2349_v38  ;;  %v2372_v6 = vsel %vm330_vm0, %v2200_v53, 0.0  ;;  %v2363_v57 = vsel %vm330_vm0, %v2198_v42, 0.0 }
 0x355   :  { %v2534_v48 = vunpack.c.l.b16 %v2498_v41  ;;  %v2362_v14 = vadd.f32 %v2361_v27, %v2360_v40  ;;  %v2375_v16 = vrot.slane %v2372_v6, 4  ;;  %v2366_v60 = vrot.slane %v2363_v57, 4  ;;  %v3481_v40 = vld [vmem:[#allocation23 + $0x8] sm:$0xff]  }
 0x356   :  { %v2533_v12 = vunpack.c.l.b16 %v2497_v31  ;;  %v2352_v10 = vrot.slane %v2351_v13, 1  ;;  %v2732_v24 = vpack.c.bf16 %v2462_v55, %v2461_v20  ;;  %v2550_v58 = vsel %vm2549_vm10, %v4860_v26, %v2548_v22  ;;  %v3482_v20 = vld [vmem:[#allocation23 + $0x10] sm:$0xff]  }
 0x357   :  { %v2394_v5 = vmul.f32 0.125, %v2362_v14  ;;  %v2376_v0 = vadd.f32 %v2375_v16, %v2372_v6  ;;  %v2367_v11 = vadd.f32 %v2366_v60, %v2363_v57  ;;  %v2552_v2 = vsel %vm2551_vm11, %v4857_v44, %v2550_v58 }
 0x358   :  { %v2554_v33 = vsel %vm2541_vm5, %v2533_v12, %v2553_v62  ;;  %v2353_v29 = vadd.f32 %v2352_v10, %v2351_v13  ;;  %v2789_v27 = vsub.s32 4, %v4954_v49  ;;  %v2806_v10 = vsub.s32 5, %v4954_v49 }
 0x359   :  { %v2555_v52 = vsel %vm2543_vm6, %v2534_v48, %v2554_v33  ;;  %v2377_v18 = vrot.slane %v2376_v0, 2  ;;  %v2368_v35 = vrot.slane %v2367_v11, 2  ;;  %v2500_v25 = vpack.c.bf16 %v2394_v5, %v2394_v5 }
 0x35a   :  { %v2393_v45 = vmul.f32 0.125, %v2353_v29  ;;  %v2790_v55 = vrot.slane %v4805_v1, %v2789_v27 }
 0x35b   :  { %v2378_v36 = vadd.f32 %v2377_v18, %v2376_v0  ;;  %v2369_v34 = vadd.f32 %v2368_v35, %v2367_v11  ;;  %v2536_v15 = vunpack.c.l.b16 %v2500_v25 }
 0x35c   :  { %v2499_v39 = vpack.c.bf16 %v2393_v45, %v2393_v45 }
 0x35d   :  { %v2379_v32 = vrot.slane %v2378_v36, 1  ;;  %v2370_v26 = vrot.slane %v2369_v34, 1 }
 0x35e   :  { %v2535_v54 = vunpack.c.l.b16 %v2499_v39  ;;  %v2725_v51 = vpop.f32.mrb[84].mxu0 }
 0x35f   :  { %v2380_v4 = vadd.f32 %v2379_v32, %v2378_v36  ;;  %v2371_v61 = vadd.f32 %v2370_v26, %v2369_v34  ;;  %v3385_v44 = vpop.f32.mrb[85].mxu0 }
 0x360   :  { %v2556_v56 = vsel %vm2545_vm7, %v2535_v54, %v2555_v52  ;;  %v2728_v23 = vpop.f32.mrb[86].mxu0 }
 0x361   :  { %v2396_v7 = vmul.f32 0.125, %v2380_v4  ;;  %v2395_v37 = vmul.f32 0.125, %v2371_v61  ;;  %v3386_v62 = vpop.f32.mrb[87].mxu0  ;;  %v2557_v28 = vsel %vm2547_vm8, %v2536_v15, %v2556_v56 }
 0x363   :  { %v2502_v21 = vpack.c.bf16 %v2396_v7, %v2396_v7  ;;  %v2501_v17 = vpack.c.bf16 %v2395_v37, %v2395_v37 }
 0x365   :  { %v2537_v9 = vunpack.c.l.b16 %v2501_v17  ;;  %v2538_v43 = vunpack.c.l.b16 %v2502_v21 }
 0x367   :  { %v2558_v38 = vsel %vm2549_vm10, %v2537_v9, %v2557_v28 }
 0x368   :  { %v2559_v63 = vsel %vm2551_vm11, %v2538_v43, %v2558_v38 }
 0x369   :  { %v2560_v59 = vpack.c.b16 %v2559_v63, %v2552_v2 }
 0x36b   :  { %3372 = vmatmul.mubr.msk.bf16.vlgmr.msra.gmra.mrb[80].mxu1 %vm330_vm0, %v2560_v59 }
 0x36c   :  { %3388 = vmatpush3.bf16.msra.mxu1 %v3479_v3  ;;  %3389 = vmatprep.mubr.msk.bf16.mxu1 %vm3873_vm12, %v4946_v47 }
 0x36d   :  { %3393 = vmatprep.subr.bf16.mxu1 %v4946_v47 }
 0x373   :  { %3390 = vmatmul.mubr.msk.bf16.vlgmr.msra.gmra.mrb[84].mxu1 %vm2416_vm13, %v2732_v24  ;;  %v2807_v24 = vrot.slane %v4805_v1, %v2806_v10 }
 0x374   :  { %3401 = vmatprep.mubr.msk.bf16.mxu1 %vm3873_vm12, %v4946_v47  ;;  %3394 = vmatpush3.bf16.msra.mxu1 %v3480_v19 }
 0x375   :  { %3395 = vmatprep.subr.bf16.mxu1 %v4946_v47 }
 0x378   :  { %3396 = vmatpush3.bf16.msra.mxu1 %v3481_v40 }
 0x379   :  { %3397 = vmatprep.subr.bf16.mxu1 %v4946_v47 }
 0x37c   :  { %3398 = vmatpush3.bf16.msra.mxu1 %v3482_v20 }
 0x37d   :  { %3399 = vmatprep.subr.bf16.mxu1 %v4946_v47 }
 0x380   :  { %3400 = vmatpush3.bf16.msra.mxu1 %v3483_v50 }
 0x43e   :  { %v2610_v46 = vpop.f32.mrb[80].mxu1 }
 0x43f   :  { %v2726_v8 = vadd.f32 %v2725_v51, %v2610_v46  ;;  %v3373_v30 = vpop.f32.mrb[81].mxu1 }
 0x440   :  { %v2613_v53 = vpop.f32.mrb[82].mxu1 }
 0x441   :  { %v2729_v42 = vadd.f32 %v2728_v23, %v2613_v53  ;;  %v3374_v41 = vpop.f32.mrb[83].mxu1 }
 0x446   :  { %v2778_v22 = vpop.f32.mrb[84].mxu1 }
 0x447   :  { %v2785_v31 = vadd.f32 %v2778_v22, %v2726_v8  ;;  %v3391_v13 = vpop.f32.mrb[85].mxu1 }
 0x448   :  { %v2781_v6 = vpop.f32.mrb[86].mxu1 }
 0x449   :  { %v2791_v57 = vadd.f32 %v2790_v55, %v2785_v31  ;;  %v2786_v48 = vadd.f32 %v2781_v6, %v2729_v42  ;;  %v3392_v14 = vpop.f32.mrb[87].mxu1 }
 0x44b   :  { %v2792_v16 = vadd.f32 %v2790_v55, %v2786_v48  ;;  %v2793_v47 = vmax.f32 %v2791_v57, 0.0 }
 0x44d   :  { %v2794_v60 = vmax.f32 %v2792_v16, 0.0 }
 0x44f   :  { %v2795_v12 = vpack.c.bf16 %v2794_v60, %v2793_v47 }
 0x451   :  { %3402 = vmatmul.mubr.msk.bf16.vlgmr.msra.gmra.mrb[88].mxu1 %vm682_vm3, %v2795_v12 }
 0x524   :  { %v2869_v58 = vpop.f32.mrb[88].mxu1 }
 0x525   :  { %v2870_v5 = vadd.f32 %v2869_v58, %v2807_v24  ;;  %v3403_v0 = vpop.f32.mrb[89].mxu1 }
 0x526   :  { %v2872_v11 = vpop.f32.mrb[90].mxu1 }
 0x527   :  { %2876 = vst [vmem:[#allocation26] sm:$0xff] %v2870_v5  ;;  %v2873_v2 = vadd.f32 %v2872_v11, %v2807_v24  ;;  %v3404_v33 = vpop.f32.mrb[91].mxu1 }
 0x529   :  { %2877 = vst [vmem:[#allocation26 + $0x8] sm:$0xff] %v2873_v2 }
 0x52a   :  { %3826 = shalt.err (!%p3823_p12)
}
 0x52b   :  { %s3827_s8 = scalar_lea.hbm %s4932_s15, 256 }
 0x52c   :  { %p3828_p13 = scmp.ne.s32.totalorder %s4932_s15, %s3827_s8  ;;  %p3831_p0 = scmp.lt.u32.totalorder %s3827_s8, %s4932_s15 }
 0x52e   :  { %p3833_p1 = pnand %p3831_p0, %p3828_p13 }
 0x530   :  { %3836 = shalt.err (!%p3833_p1)
}
 0x531   :  { %s3875_s18 = smov 128   ;;  %s3876_s23 = smov 8  }
 0x532   :  { %2889 = dma.vmem_to_hbm [thread:$0]  %s2884_s16, 256, %s4932_s15, [#allocation4], %s3875_s18, %s3875_s18, %s3876_s23  }
 0x533   :  { %3853 = dma.done.wait [#allocation4], 256  }
 0x534   :  { %3854 = vsyncadd [#allocation4], 4294967040 }
 0x535   :  { %2893 = vsyncpa [#allocation3], 1 }
 0x536   :  { %2894 = vsyncpa [#allocation6], 1 }
 0x537   :  { %2895 = vsyncpa [#allocation9], 1 }
 0x538   :  { %2896 = vsyncpa [#allocation12], 1 }
 0x539   :  { %2897 = vsyncpa [#allocation15], 1 }
 0x53a   :  { %2898 = vsyncpa [#allocation18], 1 }
 0x53b   :  { %2899 = vsyncpa [#allocation21], 1 }
 0x53c   :  { %2900 = vsyncpa [#allocation24], 1 }
 0x53d   :  { %2901 = vsyncpa [#allocation4], 1 }

// kernel: three_inputs_net.1
= control target key start
LH: loop header
LB: loop body
LE: loop exit
PB: predicated region body
PF: predicated region fallthrough
CT: control target
= control target key end

     0   :  { %20 = vsyncpa [#allocation3], 0  ;;  %s4917_s0 = inlined_call_operand.hbm [shape: bf16[128,32], index: 0, kind: input, shape index: {}]   ;;  %s4918_s1 = inlined_call_operand.hbm [shape: bf16[256,32], index: 1, kind: input, shape index: {}]   ;;  %s4919_s2 = inlined_call_operand.hbm [shape: bf16[16,16], index: 2, kind: input, shape index: {}]   ;;  %s4920_s3 = inlined_call_operand.hbm [shape: bf16[32,64], index: 3, kind: input, shape index: {}]   ;;  %s4921_s4 = inlined_call_operand.hbm [shape: bf16[32,64], index: 4, kind: input, shape index: {}]   ;;  %s4922_s5 = inlined_call_operand.hbm [shape: bf16[32,96], index: 5, kind: input, shape index: {}]   ;;  %s4923_s6 = inlined_call_operand.hbm [shape: bf16[32,96], index: 6, kind: input, shape index: {}]   ;;  %s4924_s7 = inlined_call_operand.hbm [shape: bf16[96,32], index: 7, kind: input, shape index: {}]   ;;  %s4925_s8 = inlined_call_operand.hbm [shape: bf16[96,32], index: 8, kind: input, shape index: {}]   ;;  %s4926_s9 = inlined_call_operand.hbm [shape: bf16[16,16], index: 9, kind: input, shape index: {}]   ;;  %s4927_s10 = inlined_call_operand.hbm [shape: bf16[64,64], index: 10, kind: input, shape index: {}]   ;;  %s4928_s11 = inlined_call_operand.hbm [shape: bf16[32,64], index: 11, kind: input, shape index: {}]   ;;  %s4929_s12 = inlined_call_operand.hbm [shape: bf16[16,64], index: 12, kind: input, shape index: {}]   ;;  %s4930_s13 = inlined_call_operand.hbm [shape: bf16[64,128], index: 13, kind: input, shape index: {}]   ;;  %s4931_s14 = inlined_call_operand.hbm [shape: f32[8,128], index: 14, kind: input, shape index: {}]   ;;  %s4932_s15 = inlined_call_operand.hbm [shape: f32[16,128], index: 15, kind: output, shape index: {}]  }
   0x1   :  { %21 = vsyncpa [#allocation6], 0 }
   0x2   :  { %22 = vsyncpa [#allocation9], 0 }
   0x3   :  { %23 = vsyncpa [#allocation12], 0 }
   0x4   :  { %24 = vsyncpa [#allocation15], 0 }
   0x5   :  { %25 = vsyncpa [#allocation18], 0 }
   0x6   :  { %26 = vsyncpa [#allocation21], 0 }
   0x7   :  { %27 = vsyncpa [#allocation24], 0 }
   0x8   :  { %28 = vsyncpa [#allocation4], 0  ;;  %s3855_s18 = smov [#allocation5]   ;;  %s3856_s20 = smov [#allocation8]  }
   0x9   :  { %s46_s19 = sshll.u32 %s3855_s18, 4  ;;  %s70_s21 = sshll.u32 %s3856_s20, 4  ;;  %s47_s19 = int_to_ptr.vmem [resolvable:$true] %s46_s19  ;;  %s3957_s21 = int_to_ptr.vmem [resolvable:$true] %s70_s21 }
   0xa   :  { %s3485_s24 = scalar_lea.hbm %s4918_s1, 2048 }
   0xb   :  { %p3486_p0 = scmp.ne.s32.totalorder %s4918_s1, %s3485_s24  ;;  %p3489_p1 = scmp.lt.u32.totalorder %s3485_s24, %s4918_s1 }
   0xd   :  { %p3491_p2 = pnand %p3489_p1, %p3486_p0 }
   0xf   :  { %3494 = shalt.err (!%p3491_p2)
}
  0x10   :  { %s3495_s29 = scalar_lea.vmem %s47_s19, 2048  ;;  %p3500_p4 = scmp.lt.s32.totalorder %s47_s19, %s47_s19 }
  0x11   :  { %p3496_p3 = scmp.ne.s32.totalorder %s47_s19, %s3495_s29  ;;  %p3501_p5 = scmp.lt.s32.totalorder %s3495_s29, %s3495_s29 }
  0x13   :  { %p3502_p6 = por %p3501_p5, %p3500_p4 }
  0x15   :  { %p3503_p7 = pnand %p3502_p6, %p3496_p3 }
  0x17   :  { %3506 = shalt.err (!%p3503_p7)
}
  0x18   :  { %s3857_s30 = smov 64   ;;  %s3858_s16 = smov 4  }
  0x19   :  { %52 = dma.hbm_to_vmem [thread:$0]  %s4918_s1, 2048, %s47_s19, [#allocation6], %s3857_s30, %s3857_s30, %s3858_s16  }
  0x1a   :  { %s3507_s23 = scalar_lea.hbm %s4920_s3, 256 }
  0x1b   :  { %p3508_p8 = scmp.ne.s32.totalorder %s4920_s3, %s3507_s23  ;;  %p3511_p9 = scmp.lt.u32.totalorder %s3507_s23, %s4920_s3 }
  0x1d   :  { %p3513_p10 = pnand %p3511_p9, %p3508_p8 }
  0x1f   :  { %3516 = shalt.err (!%p3513_p10)
}
  0x20   :  { %s3517_s28 = scalar_lea.vmem %s3957_s21, 256  ;;  %p3522_p12 = scmp.lt.s32.totalorder %s3957_s21, %s3957_s21 }
  0x21   :  { %p3518_p11 = scmp.ne.s32.totalorder %s3957_s21, %s3517_s28  ;;  %p3523_p13 = scmp.lt.s32.totalorder %s3517_s28, %s3517_s28 }
  0x23   :  { %p3524_p0 = por %p3523_p13, %p3522_p12 }
  0x25   :  { %p3525_p1 = pnand %p3524_p0, %p3518_p11 }
  0x27   :  { %3528 = shalt.err (!%p3525_p1)
}
  0x28   :  { %76 = dma.hbm_to_vmem [thread:$0]  %s4920_s3, 256, %s3957_s21, [#allocation9], %s3857_s30, %s3857_s30, %s3858_s16  }
  0x29   :  { %s3859_s29 = smov [#allocation11]   ;;  %s3860_s18 = smov [#allocation14]  }
  0x2a   :  { %s94_s17 = sshll.u32 %s3859_s29, 4  ;;  %s118_s20 = sshll.u32 %s3860_s18, 4  ;;  %s95_s17 = int_to_ptr.vmem [resolvable:$true] %s94_s17  ;;  %s3994_s20 = int_to_ptr.vmem [resolvable:$true] %s118_s20 }
  0x2b   :  { %s3529_s24 = scalar_lea.hbm %s4922_s5, 256 }
  0x2c   :  { %p3530_p2 = scmp.ne.s32.totalorder %s4922_s5, %s3529_s24  ;;  %p3533_p3 = scmp.lt.u32.totalorder %s3529_s24, %s4922_s5 }
  0x2e   :  { %p3535_p4 = pnand %p3533_p3, %p3530_p2 }
  0x30   :  { %3538 = shalt.err (!%p3535_p4)
}
  0x31   :  { %s3539_s3 = scalar_lea.vmem %s95_s17, 256  ;;  %p3544_p6 = scmp.lt.s32.totalorder %s95_s17, %s95_s17 }
  0x32   :  { %p3540_p5 = scmp.ne.s32.totalorder %s95_s17, %s3539_s3  ;;  %p3545_p7 = scmp.lt.s32.totalorder %s3539_s3, %s3539_s3 }
  0x34   :  { %p3546_p8 = por %p3545_p7, %p3544_p6 }
  0x36   :  { %p3547_p9 = pnand %p3546_p8, %p3540_p5 }
  0x38   :  { %3550 = shalt.err (!%p3547_p9)
}
  0x39   :  { %100 = dma.hbm_to_vmem [thread:$0]  %s4922_s5, 256, %s95_s17, [#allocation12], %s3857_s30, %s3857_s30, %s3858_s16  }
  0x3a   :  { %s3551_s18 = scalar_lea.hbm %s4924_s7, 768 }
  0x3b   :  { %p3552_p10 = scmp.ne.s32.totalorder %s4924_s7, %s3551_s18  ;;  %p3555_p11 = scmp.lt.u32.totalorder %s3551_s18, %s4924_s7 }
  0x3d   :  { %p3557_p12 = pnand %p3555_p11, %p3552_p10 }
  0x3f   :  { %3560 = shalt.err (!%p3557_p12)
}
  0x40   :  { %s3561_s26 = scalar_lea.vmem %s3994_s20, 768  ;;  %p3566_p0 = scmp.lt.s32.totalorder %s3994_s20, %s3994_s20 }
  0x41   :  { %p3562_p13 = scmp.ne.s32.totalorder %s3994_s20, %s3561_s26  ;;  %p3567_p1 = scmp.lt.s32.totalorder %s3561_s26, %s3561_s26 }
  0x43   :  { %p3568_p2 = por %p3567_p1, %p3566_p0 }
  0x45   :  { %p3569_p3 = pnand %p3568_p2, %p3562_p13 }
  0x47   :  { %3572 = shalt.err (!%p3569_p3)
}
  0x48   :  { %124 = dma.hbm_to_vmem [thread:$0]  %s4924_s7, 768, %s3994_s20, [#allocation15], %s3857_s30, %s3857_s30, %s3858_s16  }
  0x49   :  { %s3861_s27 = smov [#allocation17]   ;;  %s3862_s3 = smov [#allocation20]  }
  0x4a   :  { %s142_s28 = sshll.u32 %s3861_s27, 4  ;;  %s166_s21 = sshll.u32 %s3862_s3, 4  ;;  %s143_s28 = int_to_ptr.vmem [resolvable:$true] %s142_s28  ;;  %s4031_s21 = int_to_ptr.vmem [resolvable:$true] %s166_s21 }
  0x4b   :  { %s3573_s29 = scalar_lea.hbm %s4926_s9, 128 }
  0x4c   :  { %p3574_p4 = scmp.ne.s32.totalorder %s4926_s9, %s3573_s29  ;;  %p3577_p5 = scmp.lt.u32.totalorder %s3573_s29, %s4926_s9 }
  0x4e   :  { %p3579_p6 = pnand %p3577_p5, %p3574_p4 }
  0x50   :  { %3582 = shalt.err (!%p3579_p6)
}
  0x51   :  { %s3583_s7 = scalar_lea.vmem %s143_s28, 128  ;;  %p3588_p8 = scmp.lt.s32.totalorder %s143_s28, %s143_s28 }
  0x52   :  { %p3584_p7 = scmp.ne.s32.totalorder %s143_s28, %s3583_s7  ;;  %p3589_p9 = scmp.lt.s32.totalorder %s3583_s7, %s3583_s7 }
  0x54   :  { %p3590_p10 = por %p3589_p9, %p3588_p8 }
  0x56   :  { %p3591_p11 = pnand %p3590_p10, %p3584_p7 }
  0x58   :  { %3594 = shalt.err (!%p3591_p11)
}
  0x59   :  { %148 = dma.hbm_to_vmem [thread:$0]  %s4926_s9, 128, %s143_s28, [#allocation18], %s3857_s30, %s3857_s30, %s3858_s16  }
  0x5a   :  { %s3595_s17 = scalar_lea.hbm %s4928_s11, 256 }
  0x5b   :  { %p3596_p12 = scmp.ne.s32.totalorder %s4928_s11, %s3595_s17  ;;  %p3599_p13 = scmp.lt.u32.totalorder %s3595_s17, %s4928_s11 }
  0x5d   :  { %p3601_p0 = pnand %p3599_p13, %p3596_p12 }
  0x5f   :  { %3604 = shalt.err (!%p3601_p0)
}
  0x60   :  { %s3605_s29 = scalar_lea.vmem %s4031_s21, 256  ;;  %p3610_p2 = scmp.lt.s32.totalorder %s4031_s21, %s4031_s21 }
  0x61   :  { %p3606_p1 = scmp.ne.s32.totalorder %s4031_s21, %s3605_s29  ;;  %p3611_p3 = scmp.lt.s32.totalorder %s3605_s29, %s3605_s29 }
  0x63   :  { %p3612_p4 = por %p3611_p3, %p3610_p2 }
  0x65   :  { %p3613_p5 = pnand %p3612_p4, %p3606_p1 }
  0x67   :  { %3616 = shalt.err (!%p3613_p5)
}
  0x68   :  { %172 = dma.hbm_to_vmem [thread:$0]  %s4928_s11, 256, %s4031_s21, [#allocation21], %s3857_s30, %s3857_s30, %s3858_s16  }
  0x69   :  { %s3863_s18 = smov [#allocation23]   ;;  %s3864_s23 = smov [#allocation2]  }
  0x6a   :  { %s190_s22 = sshll.u32 %s3863_s18, 4  ;;  %s34_s24 = sshll.u32 %s3864_s23, 4  ;;  %s191_s22 = int_to_ptr.vmem [resolvable:$true] %s190_s22  ;;  %s4068_s24 = int_to_ptr.vmem [resolvable:$true] %s34_s24 }
  0x6b   :  { %s3617_s25 = scalar_lea.hbm %s4930_s13, 512 }
  0x6c   :  { %p3618_p6 = scmp.ne.s32.totalorder %s4930_s13, %s3617_s25  ;;  %p3621_p7 = scmp.lt.u32.totalorder %s3617_s25, %s4930_s13 }
  0x6e   :  { %p3623_p8 = pnand %p3621_p7, %p3618_p6 }
  0x70   :  { %3626 = shalt.err (!%p3623_p8)
}
  0x71   :  { %s3627_s11 = scalar_lea.vmem %s191_s22, 512  ;;  %p3632_p10 = scmp.lt.s32.totalorder %s191_s22, %s191_s22 }
  0x72   :  { %p3628_p9 = scmp.ne.s32.totalorder %s191_s22, %s3627_s11  ;;  %p3633_p11 = scmp.lt.s32.totalorder %s3627_s11, %s3627_s11 }
  0x74   :  { %p3634_p12 = por %p3633_p11, %p3632_p10 }
  0x76   :  { %p3635_p13 = pnand %p3634_p12, %p3628_p9 }
  0x78   :  { %3638 = shalt.err (!%p3635_p13)
}
  0x79   :  { %196 = dma.hbm_to_vmem [thread:$0]  %s4930_s13, 512, %s191_s22, [#allocation24], %s3857_s30, %s3857_s30, %s3858_s16  }
  0x7a   :  { %s3639_s29 = scalar_lea.hbm %s4917_s0, 1024 }
  0x7b   :  { %p3640_p0 = scmp.ne.s32.totalorder %s4917_s0, %s3639_s29  ;;  %p3643_p1 = scmp.lt.u32.totalorder %s3639_s29, %s4917_s0 }
  0x7d   :  { %p3645_p2 = pnand %p3643_p1, %p3640_p0 }
  0x7f   :  { %3648 = shalt.err (!%p3645_p2)
}
  0x80   :  { %s3649_s7 = scalar_lea.vmem %s4068_s24, 1024  ;;  %p3654_p4 = scmp.lt.s32.totalorder %s4068_s24, %s4068_s24 }
  0x81   :  { %p3650_p3 = scmp.ne.s32.totalorder %s4068_s24, %s3649_s7  ;;  %p3655_p5 = scmp.lt.s32.totalorder %s3649_s7, %s3649_s7 }
  0x83   :  { %p3656_p6 = por %p3655_p5, %p3654_p4 }
  0x85   :  { %p3657_p7 = pnand %p3656_p6, %p3650_p3 }
  0x87   :  { %3660 = shalt.err (!%p3657_p7)
}
  0x88   :  { %40 = dma.hbm_to_vmem [thread:$0]  %s4917_s0, 1024, %s4068_s24, [#allocation3], %s3857_s30, %s3857_s30, %s3858_s16  }
  0x89   :  { %s3865_s20 = smov [#allocation7]   ;;  %s3866_s26 = smov [#allocation10]  }
  0x8a   :  { %s58_s25 = sshll.u32 %s3865_s20, 4  ;;  %s82_s5 = sshll.u32 %s3866_s26, 4  ;;  %s59_s25 = int_to_ptr.vmem [resolvable:$true] %s58_s25  ;;  %s4105_s5 = int_to_ptr.vmem [resolvable:$true] %s82_s5 }
  0x8b   :  { %s3661_s11 = scalar_lea.hbm %s4919_s2, 128 }
  0x8c   :  { %p3662_p8 = scmp.ne.s32.totalorder %s4919_s2, %s3661_s11  ;;  %p3665_p9 = scmp.lt.u32.totalorder %s3661_s11, %s4919_s2 }
  0x8e   :  { %p3667_p10 = pnand %p3665_p9, %p3662_p8 }
  0x90   :  { %3670 = shalt.err (!%p3667_p10)
}
  0x91   :  { %s3671_s0 = scalar_lea.vmem %s59_s25, 128  ;;  %p3676_p12 = scmp.lt.s32.totalorder %s59_s25, %s59_s25 }
  0x92   :  { %p3672_p11 = scmp.ne.s32.totalorder %s59_s25, %s3671_s0  ;;  %p3677_p13 = scmp.lt.s32.totalorder %s3671_s0, %s3671_s0 }
  0x94   :  { %p3678_p0 = por %p3677_p13, %p3676_p12 }
  0x96   :  { %p3679_p1 = pnand %p3678_p0, %p3672_p11 }
  0x98   :  { %3682 = shalt.err (!%p3679_p1)
}
  0x99   :  { %64 = dma.hbm_to_vmem [thread:$0]  %s4919_s2, 128, %s59_s25, [#allocation6], %s3857_s30, %s3857_s30, %s3858_s16  }
  0x9a   :  { %s3683_s18 = scalar_lea.hbm %s4921_s4, 256 }
  0x9b   :  { %p3684_p2 = scmp.ne.s32.totalorder %s4921_s4, %s3683_s18  ;;  %p3687_p3 = scmp.lt.u32.totalorder %s3683_s18, %s4921_s4 }
  0x9d   :  { %p3689_p4 = pnand %p3687_p3, %p3684_p2 }
  0x9f   :  { %3692 = shalt.err (!%p3689_p4)
}
  0xa0   :  { %s3693_s20 = scalar_lea.vmem %s4105_s5, 256  ;;  %p3698_p6 = scmp.lt.s32.totalorder %s4105_s5, %s4105_s5 }
  0xa1   :  { %p3694_p5 = scmp.ne.s32.totalorder %s4105_s5, %s3693_s20  ;;  %p3699_p7 = scmp.lt.s32.totalorder %s3693_s20, %s3693_s20 }
  0xa3   :  { %p3700_p8 = por %p3699_p7, %p3698_p6 }
  0xa5   :  { %p3701_p9 = pnand %p3700_p8, %p3694_p5 }
  0xa7   :  { %3704 = shalt.err (!%p3701_p9)
}
  0xa8   :  { %88 = dma.hbm_to_vmem [thread:$0]  %s4921_s4, 256, %s4105_s5, [#allocation9], %s3857_s30, %s3857_s30, %s3858_s16  }
  0xa9   :  { %s3867_s26 = smov [#allocation13]   ;;  %s3868_s27 = smov [#allocation16]  }
  0xaa   :  { %s106_s17 = sshll.u32 %s3867_s26, 4  ;;  %s130_s11 = sshll.u32 %s3868_s27, 4  ;;  %s107_s17 = int_to_ptr.vmem [resolvable:$true] %s106_s17  ;;  %s4142_s11 = int_to_ptr.vmem [resolvable:$true] %s130_s11 }
  0xab   :  { %s3705_s1 = scalar_lea.hbm %s4923_s6, 256 }
  0xac   :  { %p3706_p10 = scmp.ne.s32.totalorder %s4923_s6, %s3705_s1  ;;  %p3709_p11 = scmp.lt.u32.totalorder %s3705_s1, %s4923_s6 }
  0xae   :  { %p3711_p12 = pnand %p3709_p11, %p3706_p10 }
  0xb0   :  { %3714 = shalt.err (!%p3711_p12)
}
  0xb1   :  { %s3715_s4 = scalar_lea.vmem %s107_s17, 256  ;;  %p3720_p0 = scmp.lt.s32.totalorder %s107_s17, %s107_s17 }
  0xb2   :  { %p3716_p13 = scmp.ne.s32.totalorder %s107_s17, %s3715_s4  ;;  %p3721_p1 = scmp.lt.s32.totalorder %s3715_s4, %s3715_s4 }
  0xb4   :  { %p3722_p2 = por %p3721_p1, %p3720_p0 }
  0xb6   :  { %p3723_p3 = pnand %p3722_p2, %p3716_p13 }
  0xb8   :  { %3726 = shalt.err (!%p3723_p3)
}
  0xb9   :  { %112 = dma.hbm_to_vmem [thread:$0]  %s4923_s6, 256, %s107_s17, [#allocation12], %s3857_s30, %s3857_s30, %s3858_s16  }
  0xba   :  { %s3727_s23 = scalar_lea.hbm %s4925_s8, 768 }
  0xbb   :  { %p3728_p4 = scmp.ne.s32.totalorder %s4925_s8, %s3727_s23  ;;  %p3731_p5 = scmp.lt.u32.totalorder %s3727_s23, %s4925_s8 }
  0xbd   :  { %p3733_p6 = pnand %p3731_p5, %p3728_p4 }
  0xbf   :  { %3736 = shalt.err (!%p3733_p6)
}
  0xc0   :  { %s3737_s2 = scalar_lea.vmem %s4142_s11, 768  ;;  %p3742_p8 = scmp.lt.s32.totalorder %s4142_s11, %s4142_s11 }
  0xc1   :  { %p3738_p7 = scmp.ne.s32.totalorder %s4142_s11, %s3737_s2  ;;  %p3743_p9 = scmp.lt.s32.totalorder %s3737_s2, %s3737_s2 }
  0xc3   :  { %p3744_p10 = por %p3743_p9, %p3742_p8 }
  0xc5   :  { %p3745_p11 = pnand %p3744_p10, %p3738_p7 }
  0xc7   :  { %3748 = shalt.err (!%p3745_p11)
}
  0xc8   :  { %136 = dma.hbm_to_vmem [thread:$0]  %s4925_s8, 768, %s4142_s11, [#allocation15], %s3857_s30, %s3857_s30, %s3858_s16  }
  0xc9   :  { %s3869_s26 = smov [#allocation19]   ;;  %s3870_s27 = smov [#allocation22]  }
  0xca   :  { %s154_s17 = sshll.u32 %s3869_s26, 4  ;;  %s178_s21 = sshll.u32 %s3870_s27, 4  ;;  %s155_s17 = int_to_ptr.vmem [resolvable:$true] %s154_s17  ;;  %s4179_s21 = int_to_ptr.vmem [resolvable:$true] %s178_s21 }
  0xcb   :  { %s3749_s19 = scalar_lea.hbm %s4927_s10, 512 }
  0xcc   :  { %p3750_p12 = scmp.ne.s32.totalorder %s4927_s10, %s3749_s19  ;;  %p3753_p13 = scmp.lt.u32.totalorder %s3749_s19, %s4927_s10 }
  0xce   :  { %p3755_p0 = pnand %p3753_p13, %p3750_p12 }
  0xd0   :  { %3758 = shalt.err (!%p3755_p0)
}
  0xd1   :  { %s3759_s8 = scalar_lea.vmem %s155_s17, 512  ;;  %p3764_p2 = scmp.lt.s32.totalorder %s155_s17, %s155_s17 }
  0xd2   :  { %p3760_p1 = scmp.ne.s32.totalorder %s155_s17, %s3759_s8  ;;  %p3765_p3 = scmp.lt.s32.totalorder %s3759_s8, %s3759_s8 }
  0xd4   :  { %p3766_p4 = por %p3765_p3, %p3764_p2 }
  0xd6   :  { %p3767_p5 = pnand %p3766_p4, %p3760_p1 }
  0xd8   :  { %3770 = shalt.err (!%p3767_p5)
}
  0xd9   :  { %160 = dma.hbm_to_vmem [thread:$0]  %s4927_s10, 512, %s155_s17, [#allocation18], %s3857_s30, %s3857_s30, %s3858_s16  }
  0xda   :  { %s3771_s18 = scalar_lea.hbm %s4929_s12, 128 }
  0xdb   :  { %p3772_p6 = scmp.ne.s32.totalorder %s4929_s12, %s3771_s18  ;;  %p3775_p7 = scmp.lt.u32.totalorder %s3771_s18, %s4929_s12 }
  0xdd   :  { %p3777_p8 = pnand %p3775_p7, %p3772_p6 }
  0xdf   :  { %3780 = shalt.err (!%p3777_p8)
}
  0xe0   :  { %s3781_s20 = scalar_lea.vmem %s4179_s21, 128  ;;  %p3786_p10 = scmp.lt.s32.totalorder %s4179_s21, %s4179_s21 }
  0xe1   :  { %p3782_p9 = scmp.ne.s32.totalorder %s4179_s21, %s3781_s20  ;;  %p3787_p11 = scmp.lt.s32.totalorder %s3781_s20, %s3781_s20 }
  0xe3   :  { %p3788_p12 = por %p3787_p11, %p3786_p10 }
  0xe5   :  { %p3789_p13 = pnand %p3788_p12, %p3782_p9 }
  0xe7   :  { %3792 = shalt.err (!%p3789_p13)
}
  0xe8   :  { %184 = dma.hbm_to_vmem [thread:$0]  %s4929_s12, 128, %s4179_s21, [#allocation21], %s3857_s30, %s3857_s30, %s3858_s16  }
  0xe9   :  { %s3871_s6 = smov [#allocation25]   ;;  %s3793_s27 = scalar_lea.hbm %s4931_s14, 128 }
  0xea   :  { %s203_s25 = sshll.u32 %s3871_s6, 4  ;;  %p3794_p0 = scmp.ne.s32.totalorder %s4931_s14, %s3793_s27  ;;  %s204_s25 = int_to_ptr.vmem [resolvable:$true] %s203_s25 }
  0xeb   :  { %p3797_p1 = scmp.lt.u32.totalorder %s3793_s27, %s4931_s14 }
  0xed   :  { %p3799_p2 = pnand %p3797_p1, %p3794_p0 }
  0xef   :  { %3802 = shalt.err (!%p3799_p2)
}
  0xf0   :  { %s3803_s24 = scalar_lea.vmem %s204_s25, 128  ;;  %p3808_p4 = scmp.lt.s32.totalorder %s204_s25, %s204_s25 }
  0xf1   :  { %p3804_p3 = scmp.ne.s32.totalorder %s204_s25, %s3803_s24  ;;  %p3809_p5 = scmp.lt.s32.totalorder %s3803_s24, %s3803_s24 }
  0xf3   :  { %p3810_p6 = por %p3809_p5, %p3808_p4 }
  0xf5   :  { %p3811_p7 = pnand %p3810_p6, %p3804_p3 }
  0xf7   :  { %3814 = shalt.err (!%p3811_p7)
}
  0xf8   :  { %206 = dma.hbm_to_vmem [thread:$0]  %s4931_s14, 128, %s204_s25, [#allocation24]  }
  0xf9   :  { %3837 = dma.done.wait [#allocation3], 1024  }
  0xfa   :  { %3838 = vsyncadd [#allocation3], 4294966272 }
  0xfb   :  { %3839 = dma.done.wait [#allocation6], 2176  }
  0xfc   :  { %3840 = vsyncadd [#allocation6], 4294965120 }
  0xfd   :  { %3841 = dma.done.wait [#allocation9], 512  }
  0xfe   :  { %3842 = vsyncadd [#allocation9], 4294966784 }
  0xff   :  { %3843 = dma.done.wait [#allocation12], 512  }
 0x100   :  { %3844 = vsyncadd [#allocation12], 4294966784 }
 0x101   :  { %3845 = dma.done.wait [#allocation15], 1536  }
 0x102   :  { %3846 = vsyncadd [#allocation15], 4294965760 }
 0x103   :  { %3847 = dma.done.wait [#allocation18], 640  }
 0x104   :  { %3848 = vsyncadd [#allocation18], 4294966656 }
 0x105   :  { %3849 = dma.done.wait [#allocation21], 384  }
 0x106   :  { %3850 = vsyncadd [#allocation21], 4294966912 }
 0x107   :  { %3851 = dma.done.wait [#allocation24], 640  }
 0x108   :  { %3852 = vsyncadd [#allocation24], 4294966656  ;;  %v3427_v0 = vld [vmem:[#allocation10] sm:$0xff]   ;;  %v3428_v1 = vld [vmem:[#allocation8] sm:$0xff]   ;;  %vm330_vm0 = vcmask 261120   ;;  %v4933_v44 = vmov 0.0   ;;  %v627_v45 = vlaneseq }
 0x109   :  { %3161 = vmatprep.subr.bf16.mxu0 %v3427_v0  ;;  %v3429_v2 = vld [vmem:[#allocation10 + $0x8] sm:$0xff]   ;;  %3181 = vmatprep.subr.bf16.mxu1 %v3428_v1  ;;  %v3431_v4 = vld [vmem:[#allocation8 + $0x8] sm:$0xff]   ;;  %v3432_v5 = vld [vmem:[#allocation2 + $0x8] sm:$0xff]   ;;  %vm468_vm1 = vcmask 1046528   ;;  %vm682_vm3 = vcmask 523264   ;;  %vm2539_vm4 = vcmask 1041409  }
 0x10a   :  { %3162 = vmatpush3.bf16.msra.mxu0 %v3427_v0  ;;  %v3430_v3 = vld [vmem:[#allocation2] sm:$0xff]   ;;  %3182 = vmatpush3.bf16.msra.mxu1 %v3428_v1  ;;  %v3433_v6 = vld [vmem:[#allocation13] sm:$0xff]   ;;  %v3434_v7 = vld [vmem:[#allocation2 + $0x10] sm:$0xff]   ;;  %v4278_v46 = vshrl.u32 %v627_v45, 7  ;;  %vm2541_vm5 = vcmask 1042434   ;;  %vm2543_vm6 = vcmask 1043459  }
 0x10b   :  { %3163 = vmatprep.subr.bf16.mxu0 %v3429_v2  ;;  %3165 = vmatprep.mubr.msk.bf16.mxu0 %vm330_vm0, %v3430_v3  ;;  %v3436_v8 = vld [vmem:[#allocation11] sm:$0xff]   ;;  %v3439_v9 = vld [vmem:[#allocation13 + $0x8] sm:$0xff]   ;;  %v3435_v10 = vld [vmem:[#allocation2 + $0x18] sm:$0xff]   ;;  %vm2545_vm7 = vcmask 1044484   ;;  %vm2547_vm8 = vcmask 1045509   ;;  %vm1598_vm9 = vcmask 785408  }
 0x10c   :  { %3185 = vmatprep.mubr.msk.bf16.mxu1 %vm330_vm0, %v3430_v3  ;;  %3183 = vmatprep.subr.bf16.mxu1 %v3431_v4  ;;  %v3437_v11 = vld [vmem:[#allocation2 + $0x20] sm:$0xff]   ;;  %v3442_v12 = vld [vmem:[#allocation11 + $0x8] sm:$0xff]   ;;  %v3438_v13 = vld [vmem:[#allocation2 + $0x28] sm:$0xff]   ;;  %4940 = vst [vmem:[#allocation36_spill] sm:$0xff] %v4278_v46  ;;  %v629_v48 = vsub.s32 0, %v4278_v46  ;;  %vm665_vm2 = vcmp.lt.s32.totalorder %v4278_v46, 7 }
 0x10d   :  { %v3440_v14 = vld [vmem:[#allocation2 + $0x30] sm:$0xff]   ;;  %v3441_v15 = vld [vmem:[#allocation2 + $0x38] sm:$0xff]   ;;  %v3443_v16 = vld [vmem:[#allocation5] sm:$0xff]   ;;  %vm2549_vm10 = vcmask 1046534   ;;  %vm2551_vm11 = vcmask 1047559   ;;  %vm3873_vm12 = vmmov 0  }
 0x10e   :  { %3164 = vmatpush3.bf16.msra.mxu0 %v3429_v2  ;;  %3184 = vmatpush3.bf16.msra.mxu1 %v3431_v4  ;;  %v3459_v17 = vld [vmem:[#allocation16] sm:$0xff]   ;;  %v3460_v18 = vld [vmem:[#allocation14] sm:$0xff]   ;;  %v3445_v20 = vld [vmem:[#allocation5 + $0x10] sm:$0xff]   ;;  %vm2416_vm13 = vcmask 130048   ;;  %s3874_s14 = smov [#allocation26]  }
 0x10f   :  { %3201 = vmatprep.subr.bf16.mxu0 %v3433_v6  ;;  %3237 = vmatprep.subr.bf16.mxu1 %v3436_v8  ;;  %v3444_v19 = vld [vmem:[#allocation5 + $0x8] sm:$0xff]   ;;  %v3446_v21 = vld [vmem:[#allocation5 + $0x18] sm:$0xff]   ;;  %v3447_v22 = vld [vmem:[#allocation5 + $0x20] sm:$0xff]   ;;  %s2883_s16 = sshll.u32 %s3874_s14, 4  ;;  %s2884_s16 = int_to_ptr.vmem [resolvable:$true] %s2883_s16 }
 0x110   :  { %v3448_v23 = vld [vmem:[#allocation5 + $0x28] sm:$0xff]   ;;  %v3449_v24 = vld [vmem:[#allocation5 + $0x30] sm:$0xff]   ;;  %v3450_v25 = vld [vmem:[#allocation5 + $0x38] sm:$0xff]   ;;  %s3815_s21 = scalar_lea.vmem %s2884_s16, 256  ;;  %p3820_p9 = scmp.lt.s32.totalorder %s2884_s16, %s2884_s16 }
 0x111   :  { %3166 = vmatmul.mubr.msk.bf16.vlgmr.msra.gmra.mrb[0].mxu0 %vm330_vm0, %v3432_v5  ;;  %3186 = vmatmul.mubr.msk.bf16.vlgmr.msra.gmra.mrb[0].mxu1 %vm330_vm0, %v3432_v5  ;;  %v3451_v26 = vld [vmem:[#allocation5 + $0x40] sm:$0xff]   ;;  %v3452_v27 = vld [vmem:[#allocation5 + $0x48] sm:$0xff]   ;;  %v3453_v28 = vld [vmem:[#allocation5 + $0x50] sm:$0xff]   ;;  %p3816_p8 = scmp.ne.s32.totalorder %s2884_s16, %s3815_s21  ;;  %p3821_p10 = scmp.lt.s32.totalorder %s3815_s21, %s3815_s21 }
 0x112   :  { %3202 = vmatpush3.bf16.msra.mxu0 %v3433_v6  ;;  %3169 = vmatprep.mubr.msk.bf16.mxu0 %vm330_vm0, %v3434_v7  ;;  %v3454_v29 = vld [vmem:[#allocation5 + $0x58] sm:$0xff]   ;;  %v3455_v30 = vld [vmem:[#allocation5 + $0x60] sm:$0xff]   ;;  %v3456_v31 = vld [vmem:[#allocation5 + $0x68] sm:$0xff]  }
 0x113   :  { %3238 = vmatpush3.bf16.msra.mxu1 %v3436_v8  ;;  %3189 = vmatprep.mubr.msk.bf16.mxu1 %vm330_vm0, %v3434_v7  ;;  %v3457_v32 = vld [vmem:[#allocation5 + $0x70] sm:$0xff]   ;;  %v3458_v33 = vld [vmem:[#allocation5 + $0x78] sm:$0xff]   ;;  %v3461_v34 = vld [vmem:[#allocation16 + $0x8] sm:$0xff]   ;;  %p3822_p11 = por %p3821_p10, %p3820_p9 }
 0x114   :  { %3203 = vmatprep.subr.bf16.mxu0 %v3439_v9  ;;  %3239 = vmatprep.subr.bf16.mxu1 %v3442_v12  ;;  %v3462_v35 = vld [vmem:[#allocation14 + $0x8] sm:$0xff]   ;;  %v3463_v36 = vld [vmem:[#allocation16 + $0x10] sm:$0xff]   ;;  %v3464_v37 = vld [vmem:[#allocation14 + $0x10] sm:$0xff]  }
 0x115   :  { %v3465_v38 = vld [vmem:[#allocation16 + $0x18] sm:$0xff]   ;;  %v3466_v39 = vld [vmem:[#allocation14 + $0x18] sm:$0xff]   ;;  %v3467_v40 = vld [vmem:[#allocation16 + $0x20] sm:$0xff]   ;;  %p3823_p12 = pnand %p3822_p11, %p3816_p8 }
 0x116   :  { %3204 = vmatpush3.bf16.msra.mxu0 %v3439_v9  ;;  %v3468_v41 = vld [vmem:[#allocation14 + $0x20] sm:$0xff]   ;;  %v3469_v42 = vld [vmem:[#allocation16 + $0x28] sm:$0xff]   ;;  %v3470_v43 = vld [vmem:[#allocation14 + $0x28] sm:$0xff]  }
 0x117   :  { %3240 = vmatpush3.bf16.msra.mxu1 %v3442_v12  ;;  %3273 = vmatprep.subr.bf16.mxu0 %v3459_v17  ;;  %v253_v50 = vld [vmem:[#allocation25] sm:$0xff] }
 0x118   :  { %3317 = vmatprep.subr.bf16.mxu1 %v3460_v18  ;;  %v4284_v60 = vrot.slane %v253_v50, %v629_v48 }
 0x119   :  { %3170 = vmatmul.mubr.msk.bf16.gmra.mrb[4].mxu0 %vm330_vm0, %v3435_v10  ;;  %3190 = vmatmul.mubr.msk.bf16.gmra.mrb[4].mxu1 %vm330_vm0, %v3435_v10 }
 0x11a   :  { %3173 = vmatprep.mubr.msk.bf16.mxu0 %vm330_vm0, %v3437_v11  ;;  %3193 = vmatprep.mubr.msk.bf16.mxu1 %vm330_vm0, %v3437_v11 }
 0x121   :  { %3174 = vmatmul.mubr.msk.bf16.gmra.mrb[8].mxu0 %vm330_vm0, %v3438_v13  ;;  %3194 = vmatmul.mubr.msk.bf16.gmra.mrb[8].mxu1 %vm330_vm0, %v3438_v13 }
 0x122   :  { %3177 = vmatprep.mubr.msk.bf16.mxu0 %vm330_vm0, %v3440_v14  ;;  %3197 = vmatprep.mubr.msk.bf16.mxu1 %vm330_vm0, %v3440_v14  ;;  %v1456_v14 = vsub.s32 1, %v4278_v46 }
 0x129   :  { %3178 = vmatmul.mubr.msk.bf16.gmra.mrb[12].mxu0 %vm330_vm0, %v3441_v15  ;;  %3198 = vmatmul.mubr.msk.bf16.gmra.mrb[12].mxu1 %vm330_vm0, %v3441_v15 }
 0x12a   :  { %3205 = vmatprep.mubr.msk.bf16.mxu0 %vm330_vm0, %v3443_v16  ;;  %3241 = vmatprep.mubr.msk.bf16.mxu1 %vm330_vm0, %v3443_v16 }
 0x131   :  { %3206 = vmatmul.mubr.msk.bf16.vlgmr.msra.gmra.mrb[16].mxu0 %vm330_vm0, %v3444_v19  ;;  %3242 = vmatmul.mubr.msk.bf16.vlgmr.msra.gmra.mrb[16].mxu1 %vm330_vm0, %v3444_v19 }
 0x132   :  { %3209 = vmatprep.mubr.msk.bf16.mxu0 %vm330_vm0, %v3445_v20  ;;  %3245 = vmatprep.mubr.msk.bf16.mxu1 %vm330_vm0, %v3445_v20 }
 0x133   :  { %3274 = vmatpush3.bf16.msra.mxu0 %v3459_v17  ;;  %3318 = vmatpush3.bf16.msra.mxu1 %v3460_v18 }
 0x134   :  { %3275 = vmatprep.subr.bf16.mxu0 %v3461_v34  ;;  %3319 = vmatprep.subr.bf16.mxu1 %v3462_v35 }
 0x137   :  { %3276 = vmatpush3.bf16.msra.mxu0 %v3461_v34  ;;  %3320 = vmatpush3.bf16.msra.mxu1 %v3462_v35 }
 0x138   :  { %3277 = vmatprep.subr.bf16.mxu0 %v3463_v36  ;;  %3321 = vmatprep.subr.bf16.mxu1 %v3464_v37 }
 0x139   :  { %3210 = vmatmul.mubr.msk.bf16.gmra.mrb[20].mxu0 %vm330_vm0, %v3446_v21  ;;  %3246 = vmatmul.mubr.msk.bf16.gmra.mrb[20].mxu1 %vm330_vm0, %v3446_v21 }
 0x13a   :  { %3213 = vmatprep.mubr.msk.bf16.mxu0 %vm330_vm0, %v3447_v22  ;;  %3249 = vmatprep.mubr.msk.bf16.mxu1 %vm330_vm0, %v3447_v22 }
 0x13b   :  { %3278 = vmatpush3.bf16.msra.mxu0 %v3463_v36  ;;  %3322 = vmatpush3.bf16.msra.mxu1 %v3464_v37 }
 0x13c   :  { %3279 = vmatprep.subr.bf16.mxu0 %v3465_v38  ;;  %3323 = vmatprep.subr.bf16.mxu1 %v3466_v39 }
 0x13f   :  { %3280 = vmatpush3.bf16.msra.mxu0 %v3465_v38  ;;  %3324 = vmatpush3.bf16.msra.mxu1 %v3466_v39  ;;  %v4315_v38 = vrot.slane %v253_v50, %v1456_v14 }
 0x140   :  { %3281 = vmatprep.subr.bf16.mxu0 %v3467_v40  ;;  %3325 = vmatprep.subr.bf16.mxu1 %v3468_v41 }
 0x141   :  { %3214 = vmatmul.mubr.msk.bf16.gmra.mrb[24].mxu0 %vm330_vm0, %v3448_v23  ;;  %3250 = vmatmul.mubr.msk.bf16.gmra.mrb[24].mxu1 %vm330_vm0, %v3448_v23 }
 0x142   :  { %3217 = vmatprep.mubr.msk.bf16.mxu0 %vm330_vm0, %v3449_v24  ;;  %3253 = vmatprep.mubr.msk.bf16.mxu1 %vm330_vm0, %v3449_v24 }
 0x143   :  { %3282 = vmatpush3.bf16.msra.mxu0 %v3467_v40  ;;  %3326 = vmatpush3.bf16.msra.mxu1 %v3468_v41 }
 0x144   :  { %3283 = vmatprep.subr.bf16.mxu0 %v3469_v42  ;;  %3327 = vmatprep.subr.bf16.mxu1 %v3470_v43 }
 0x147   :  { %3284 = vmatpush3.bf16.msra.mxu0 %v3469_v42  ;;  %3328 = vmatpush3.bf16.msra.mxu1 %v3470_v43 }
 0x148   :  { %3361 = vmatprep.subr.bf16.mxu0 %v4933_v44  ;;  %3367 = vmatprep.subr.bf16.mxu1 %v4933_v44 }
 0x149   :  { %3218 = vmatmul.mubr.msk.bf16.gmra.mrb[28].mxu0 %vm330_vm0, %v3450_v25  ;;  %3254 = vmatmul.mubr.msk.bf16.gmra.mrb[28].mxu1 %vm330_vm0, %v3450_v25 }
 0x14a   :  { %3221 = vmatprep.mubr.msk.bf16.mxu0 %vm330_vm0, %v3451_v26  ;;  %3257 = vmatprep.mubr.msk.bf16.mxu1 %vm330_vm0, %v3451_v26 }
 0x151   :  { %3222 = vmatmul.mubr.msk.bf16.gmra.mrb[32].mxu0 %vm330_vm0, %v3452_v27  ;;  %3258 = vmatmul.mubr.msk.bf16.gmra.mrb[32].mxu1 %vm330_vm0, %v3452_v27 }
 0x152   :  { %3225 = vmatprep.mubr.msk.bf16.mxu0 %vm330_vm0, %v3453_v28  ;;  %3261 = vmatprep.mubr.msk.bf16.mxu1 %vm330_vm0, %v3453_v28 }
 0x159   :  { %3226 = vmatmul.mubr.msk.bf16.gmra.mrb[36].mxu0 %vm330_vm0, %v3454_v29  ;;  %3262 = vmatmul.mubr.msk.bf16.gmra.mrb[36].mxu1 %vm330_vm0, %v3454_v29 }
 0x15a   :  { %3229 = vmatprep.mubr.msk.bf16.mxu0 %vm330_vm0, %v3455_v30  ;;  %3265 = vmatprep.mubr.msk.bf16.mxu1 %vm330_vm0, %v3455_v30 }
 0x161   :  { %3230 = vmatmul.mubr.msk.bf16.gmra.mrb[40].mxu0 %vm330_vm0, %v3456_v31  ;;  %3266 = vmatmul.mubr.msk.bf16.gmra.mrb[40].mxu1 %vm330_vm0, %v3456_v31 }
 0x162   :  { %3233 = vmatprep.mubr.msk.bf16.mxu0 %vm330_vm0, %v3457_v32  ;;  %3269 = vmatprep.mubr.msk.bf16.mxu1 %vm330_vm0, %v3457_v32 }
 0x169   :  { %3234 = vmatmul.mubr.msk.bf16.gmra.mrb[44].mxu0 %vm330_vm0, %v3458_v33  ;;  %3270 = vmatmul.mubr.msk.bf16.gmra.mrb[44].mxu1 %vm330_vm0, %v3458_v33 }
 0x1e4   :  { %v3167_v47 = vpop.f32.mrb[0].mxu0  ;;  %v3187_v51 = vpop.f32.mrb[0].mxu1 }
 0x1e5   :  { %v4281_v49 = vpop.f32.mrb[1].mxu0  ;;  %v564_v53 = vpop.f32.mrb[1].mxu1  ;;  %v472_v54 = vrot.slane %v3167_v47, 1 }
 0x1e6   :  { %v3168_v52 = vpop.f32.mrb[2].mxu0  ;;  %v3188_v57 = vpop.f32.mrb[2].mxu1  ;;  %v469_v58 = vrot.slane %v4281_v49, 1 }
 0x1e7   :  { %v474_v55 = vrot.slane %v3168_v52, 1  ;;  %v392_v56 = vpop.f32.mrb[3].mxu0  ;;  %v567_v61 = vpop.f32.mrb[3].mxu1 }
 0x1e8   :  { %v470_v59 = vrot.slane %v392_v56, 1 }
 0x1e9   :  { %v475_v62 = vsel %vm468_vm1, %v472_v54, %v474_v55 }
 0x1ea   :  { %v573_v63 = vadd.f32 %v3187_v51, %v475_v62  ;;  %v471_v0 = vsel %vm468_vm1, %v469_v58, %v470_v59  ;;  %v473_v1 = vsel %vm468_vm1, %v470_v59, %v472_v54 }
 0x1eb   :  { %v565_v2 = vadd.f32 %v564_v53, %v471_v0  ;;  %v568_v3 = vadd.f32 %v567_v61, %v473_v1 }
 0x1ec   :  { %v633_v4 = vadd.f32 %v4284_v60, %v573_v63  ;;  %v3171_v5 = vpop.f32.mrb[4].mxu0  ;;  %v3191_v9 = vpop.f32.mrb[4].mxu1 }
 0x1ed   :  { %v631_v6 = vadd.f32 %v4284_v60, %v565_v2  ;;  %v632_v7 = vadd.f32 %v4284_v60, %v568_v3  ;;  %v405_v8 = vpop.f32.mrb[5].mxu0  ;;  %v580_v13 = vpop.f32.mrb[5].mxu1  ;;  %v480_v21 = vrot.slane %v3171_v5, 1 }
 0x1ee   :  { %v649_v10 = vmax.f32 %v633_v4, 0.0  ;;  %v476_v11 = vrot.slane %v405_v8, 1  ;;  %v4295_v12 = vpop.f32.mrb[6].mxu0  ;;  %v4299_v19 = vpop.f32.mrb[6].mxu1 }
 0x1ef   :  { %v647_v15 = vmax.f32 %v631_v6, 0.0  ;;  %v648_v16 = vmax.f32 %v632_v7, 0.0  ;;  %v482_v17 = vrot.slane %v4295_v12, 1  ;;  %v408_v18 = vpop.f32.mrb[7].mxu0  ;;  %v583_v24 = vpop.f32.mrb[7].mxu1 }
 0x1f0   :  { %v668_v20 = vsel %vm665_vm2, %v649_v10, 0.0  ;;  %v477_v22 = vsel %vm468_vm1, %v474_v55, %v476_v11  ;;  %v478_v23 = vrot.slane %v408_v18, 1 }
 0x1f1   :  { %v697_v25 = vsel %vm682_vm3, %v668_v20, 0.0  ;;  %v666_v26 = vsel %vm665_vm2, %v647_v15, 0.0  ;;  %v667_v27 = vsel %vm665_vm2, %v648_v16, 0.0  ;;  %v576_v28 = vadd.f32 %v3188_v57, %v477_v22 }
 0x1f2   :  { %v698_v29 = vrot.slane %v697_v25, 4  ;;  %v683_v30 = vsel %vm682_vm3, %v666_v26, 0.0  ;;  %v690_v31 = vsel %vm682_vm3, %v667_v27, 0.0  ;;  %v483_v32 = vsel %vm468_vm1, %v480_v21, %v482_v17 }
 0x1f3   :  { %v684_v33 = vrot.slane %v683_v30, 4  ;;  %v691_v34 = vrot.slane %v690_v31, 4  ;;  %v634_v35 = vadd.f32 %v4284_v60, %v576_v28  ;;  %v589_v36 = vadd.f32 %v3191_v9, %v483_v32 }
 0x1f4   :  { %v699_v37 = vadd.f32 %v698_v29, %v697_v25  ;;  %v479_v39 = vsel %vm468_vm1, %v476_v11, %v478_v23  ;;  %v481_v40 = vsel %vm468_vm1, %v478_v23, %v480_v21  ;;  %v4319_v41 = vpop.f32.mrb[8].mxu0  ;;  %v4324_v51 = vpop.f32.mrb[8].mxu1 }
 0x1f5   :  { %v685_v42 = vadd.f32 %v684_v33, %v683_v30  ;;  %v692_v43 = vadd.f32 %v691_v34, %v690_v31  ;;  %v650_v45 = vmax.f32 %v634_v35, 0.0  ;;  %v637_v47 = vadd.f32 %v4284_v60, %v589_v36  ;;  %v4322_v48 = vpop.f32.mrb[9].mxu0  ;;  %v4329_v56 = vpop.f32.mrb[9].mxu1 }
 0x1f6   :  { %v700_v52 = vrot.slane %v699_v37, 2  ;;  %v581_v53 = vadd.f32 %v580_v13, %v479_v39  ;;  %v584_v54 = vadd.f32 %v583_v24, %v481_v40  ;;  %v488_v50 = vrot.slane %v4319_v41, 1  ;;  %v4327_v55 = vpop.f32.mrb[10].mxu0  ;;  %v4335_v0 = vpop.f32.mrb[10].mxu1 }
 0x1f7   :  { %v686_v57 = vrot.slane %v685_v42, 2  ;;  %v693_v59 = vrot.slane %v692_v43, 2  ;;  %v669_v61 = vsel %vm665_vm2, %v650_v45, 0.0  ;;  %v653_v62 = vmax.f32 %v637_v47, 0.0  ;;  %v4333_v63 = vpop.f32.mrb[11].mxu0  ;;  %v4340_v5 = vpop.f32.mrb[11].mxu1 }
 0x1f8   :  { %v701_v1 = vadd.f32 %v700_v52, %v699_v37  ;;  %v704_v2 = vsel %vm682_vm3, %v669_v61, 0.0  ;;  %v635_v3 = vadd.f32 %v4284_v60, %v581_v53  ;;  %v636_v4 = vadd.f32 %v4284_v60, %v584_v54 }
 0x1f9   :  { %v687_v6 = vadd.f32 %v686_v57, %v685_v42  ;;  %v694_v7 = vadd.f32 %v693_v59, %v692_v43  ;;  %v705_v8 = vrot.slane %v704_v2, 4  ;;  %v672_v9 = vsel %vm665_vm2, %v653_v62, 0.0 }
 0x1fa   :  { %v702_v10 = vrot.slane %v701_v1, 1  ;;  %v725_v11 = vsel %vm682_vm3, %v672_v9, 0.0  ;;  %v651_v13 = vmax.f32 %v635_v3, 0.0  ;;  %v652_v14 = vmax.f32 %v636_v4, 0.0 }
 0x1fb   :  { %v688_v15 = vrot.slane %v687_v6, 1  ;;  %v695_v16 = vrot.slane %v694_v7, 1  ;;  %v706_v18 = vadd.f32 %v705_v8, %v704_v2  ;;  %v726_v20 = vrot.slane %v725_v11, 4 }
 0x1fc   :  { %v703_v21 = vadd.f32 %v702_v10, %v701_v1  ;;  %v670_v22 = vsel %vm665_vm2, %v651_v13, 0.0  ;;  %v671_v23 = vsel %vm665_vm2, %v652_v14, 0.0  ;;  %v484_v24 = vrot.slane %v4322_v48, 1  ;;  %v4350_v25 = vpop.f32.mrb[12].mxu0  ;;  %v4354_v31 = vpop.f32.mrb[12].mxu1 }
 0x1fd   :  { %v689_v26 = vadd.f32 %v688_v15, %v687_v6  ;;  %v696_v27 = vadd.f32 %v695_v16, %v694_v7  ;;  %v707_v28 = vrot.slane %v706_v18, 2  ;;  %v727_v29 = vadd.f32 %v726_v20, %v725_v11  ;;  %v4352_v30 = vpop.f32.mrb[13].mxu0  ;;  %v4365_v37 = vpop.f32.mrb[13].mxu1 }
 0x1fe   :  { %v797_v32 = vmul.f32 0.14285715, %v703_v21  ;;  %v711_v33 = vsel %vm682_vm3, %v670_v22, 0.0  ;;  %v718_v34 = vsel %vm682_vm3, %v671_v23, 0.0  ;;  %v485_v35 = vsel %vm468_vm1, %v482_v17, %v484_v24  ;;  %v4363_v36 = vpop.f32.mrb[14].mxu0  ;;  %v4370_v57 = vpop.f32.mrb[14].mxu1 }
 0x1ff   :  { %v795_v39 = vmul.f32 0.14285715, %v689_v26  ;;  %v796_v40 = vmul.f32 0.14285715, %v696_v27  ;;  %v708_v42 = vadd.f32 %v707_v28, %v706_v18  ;;  %v728_v43 = vrot.slane %v727_v29, 2  ;;  %v4367_v45 = vpop.f32.mrb[15].mxu0 }
 0x200   :  { %v2465_v47 = vpack.c.bf16 %v797_v32, %v797_v32  ;;  %v712_v52 = vrot.slane %v711_v33, 4  ;;  %v719_v53 = vrot.slane %v718_v34, 4  ;;  %v592_v54 = vadd.f32 %v4299_v19, %v485_v35  ;;  %v4372_v62 = vpop.f32.mrb[15].mxu1 }
 0x201   :  { %v2463_v12 = vpack.c.bf16 %v795_v39, %v795_v39  ;;  %v2464_v17 = vpack.c.bf16 %v796_v40, %v796_v40  ;;  %v709_v59 = vrot.slane %v708_v42, 1  ;;  %v729_v61 = vadd.f32 %v728_v43, %v727_v29 }
 0x202   :  { %v2635_v1 = vunpack.c.l.b16 %v2465_v47  ;;  %v713_v2 = vadd.f32 %v712_v52, %v711_v33  ;;  %v720_v3 = vadd.f32 %v719_v53, %v718_v34  ;;  %v638_v4 = vadd.f32 %v4284_v60, %v592_v54 }
 0x203   :  { %v2633_v6 = vunpack.c.l.b16 %v2463_v12  ;;  %v2634_v7 = vunpack.c.l.b16 %v2464_v17  ;;  %v710_v8 = vadd.f32 %v709_v59, %v708_v42  ;;  %v730_v9 = vrot.slane %v729_v61, 1 }
 0x204   :  { %v714_v10 = vrot.slane %v713_v2, 2  ;;  %v721_v11 = vrot.slane %v720_v3, 2  ;;  %v654_v19 = vmax.f32 %v638_v4, 0.0  ;;  %v490_v13 = vrot.slane %v4327_v55, 1  ;;  %v4376_v14 = vpop.f32.mrb[16].mxu0  ;;  %v4382_v22 = vpop.f32.mrb[16].mxu1 }
 0x205   :  { %v2649_v15 = vsel %vm2539_vm4, %v2634_v7, %v2633_v6  ;;  %v798_v16 = vmul.f32 0.14285715, %v710_v8  ;;  %v731_v18 = vadd.f32 %v730_v9, %v729_v61  ;;  %v486_v20 = vrot.slane %v4333_v63, 1  ;;  %v4380_v21 = vpop.f32.mrb[17].mxu0  ;;  %v4389_v29 = vpop.f32.mrb[17].mxu1 }
 0x206   :  { %4941 = vst [vmem:[#allocation37_spill] sm:$0xff] %v4380_v21  ;;  %v2650_v23 = vsel %vm2541_vm5, %v2635_v1, %v2649_v15  ;;  %v715_v26 = vadd.f32 %v714_v10, %v713_v2  ;;  %v722_v27 = vadd.f32 %v721_v11, %v720_v3  ;;  %v673_v28 = vsel %vm665_vm2, %v654_v19, 0.0  ;;  %v4387_v55 = vpop.f32.mrb[18].mxu0  ;;  %v4399_v39 = vpop.f32.mrb[18].mxu1 }
 0x207   :  { %v2466_v32 = vpack.c.bf16 %v798_v16, %v798_v16  ;;  %v4391_v33 = vmul.f32 0.14285715, %v731_v18  ;;  %v732_v63 = vsel %vm682_vm3, %v673_v28, 0.0  ;;  %v491_v34 = vsel %vm468_vm1, %v488_v50, %v490_v13  ;;  %v4397_v35 = vpop.f32.mrb[19].mxu0  ;;  %v4402_v52 = vpop.f32.mrb[19].mxu1 }
 0x208   :  { %v716_v40 = vrot.slane %v715_v26, 1  ;;  %v723_v42 = vrot.slane %v722_v27, 1  ;;  %v733_v43 = vrot.slane %v732_v63, 4  ;;  %v605_v47 = vadd.f32 %v4324_v51, %v491_v34 }
 0x209   :  { %v2636_v53 = vunpack.c.l.b16 %v2466_v32  ;;  %v487_v54 = vsel %vm468_vm1, %v484_v24, %v486_v20  ;;  %v489_v12 = vsel %vm468_vm1, %v486_v20, %v488_v50  ;;  %v2469_v51 = vpack.c.bf16 %v4391_v33, %v4391_v33 }
 0x20a   :  { %v717_v17 = vadd.f32 %v716_v40, %v715_v26  ;;  %v724_v59 = vadd.f32 %v723_v42, %v722_v27  ;;  %v734_v61 = vadd.f32 %v733_v43, %v732_v63  ;;  %v641_v1 = vadd.f32 %v4284_v60, %v605_v47 }
 0x20b   :  { %v2651_v2 = vsel %vm2543_vm6, %v2636_v53, %v2650_v23  ;;  %v597_v3 = vadd.f32 %v4329_v56, %v487_v54  ;;  %v600_v48 = vadd.f32 %v4340_v5, %v489_v12  ;;  %v496_v8 = vrot.slane %v4350_v25, 1 }
 0x20c   :  { %v799_v4 = vmul.f32 0.14285715, %v717_v17  ;;  %v800_v24 = vmul.f32 0.14285715, %v724_v59  ;;  %v735_v6 = vrot.slane %v734_v61, 2  ;;  %v657_v41 = vmax.f32 %v641_v1, 0.0 }
 0x20d   :  { %v639_v50 = vadd.f32 %v4284_v60, %v597_v3  ;;  %v640_v7 = vadd.f32 %v4284_v60, %v600_v48  ;;  %v492_v9 = vrot.slane %v4352_v30, 1  ;;  %v4420_v10 = vpop.f32.mrb[20].mxu0  ;;  %v4422_v11 = vpop.f32.mrb[20].mxu1  ;;  %v498_v53 = vrot.slane %v4363_v36, 1 }
 0x20e   :  { %v2467_v19 = vpack.c.bf16 %v799_v4, %v799_v4  ;;  %v2468_v56 = vpack.c.bf16 %v800_v24, %v800_v24  ;;  %v736_v15 = vadd.f32 %v735_v6, %v734_v61  ;;  %v676_v5 = vsel %vm665_vm2, %v657_v41, 0.0  ;;  %v4426_v16 = vpop.f32.mrb[21].mxu0  ;;  %v4428_v18 = vpop.f32.mrb[21].mxu1 }
 0x20f   :  { %v753_v20 = vsel %vm682_vm3, %v676_v5, 0.0  ;;  %v655_v23 = vmax.f32 %v639_v50, 0.0  ;;  %v656_v26 = vmax.f32 %v640_v7, 0.0  ;;  %v493_v30 = vsel %vm468_vm1, %v490_v13, %v492_v9  ;;  %v4432_v27 = vpop.f32.mrb[22].mxu0  ;;  %v4434_v28 = vpop.f32.mrb[22].mxu1 }
 0x210   :  { %v2637_v32 = vunpack.c.l.b16 %v2467_v19  ;;  %v2638_v33 = vunpack.c.l.b16 %v2468_v56  ;;  %v737_v63 = vrot.slane %v736_v15, 1  ;;  %v754_v34 = vrot.slane %v753_v20, 4  ;;  %v4436_v40 = vpop.f32.mrb[23].mxu0  ;;  %v4438_v42 = vpop.f32.mrb[23].mxu1 }
 0x211   :  { %v674_v43 = vsel %vm665_vm2, %v655_v23, 0.0  ;;  %v675_v47 = vsel %vm665_vm2, %v656_v26, 0.0  ;;  %v608_v13 = vadd.f32 %v4335_v0, %v493_v30  ;;  %v4453_v4 = vunpack.c.l.b16 %v2469_v51 }
 0x212   :  { %v2652_v54 = vsel %vm2545_vm7, %v2637_v32, %v2651_v2  ;;  %v738_v12 = vadd.f32 %v737_v63, %v736_v15  ;;  %v755_v17 = vadd.f32 %v754_v34, %v753_v20  ;;  %v739_v59 = vsel %vm682_vm3, %v674_v43, 0.0 }
 0x213   :  { %v4449_v61 = vsel %vm2547_vm8, %v2638_v33, %v2652_v54  ;;  %v740_v1 = vrot.slane %v739_v59, 4  ;;  %v746_v3 = vsel %vm682_vm3, %v675_v47, 0.0  ;;  %v642_v48 = vadd.f32 %v4284_v60, %v608_v13  ;;  %4943 = vst [vmem:[#allocation39_spill] sm:$0xff] %v4453_v4 }
 0x214   :  { %4942 = vst [vmem:[#allocation38_spill] sm:$0xff] %v4449_v61  ;;  %v756_v24 = vrot.slane %v755_v17, 2  ;;  %v747_v0 = vrot.slane %v746_v3, 4  ;;  %v494_v36 = vrot.slane %v4367_v45, 1  ;;  %v4456_v6 = vpop.f32.mrb[24].mxu0  ;;  %v499_v50 = vsel %vm468_vm1, %v496_v8, %v498_v53  ;;  %v4466_v51 = vpop.f32.mrb[24].mxu1 }
 0x215   :  { %v741_v2 = vadd.f32 %v740_v1, %v739_v59  ;;  %v658_v41 = vmax.f32 %v642_v48, 0.0  ;;  %v517_v7 = vsel %vm468_vm1, %v498_v53, %v469_v58  ;;  %v4464_v19 = vpop.f32.mrb[25].mxu0  ;;  %v4468_v56 = vmul.f32 0.14285715, %v738_v12  ;;  %v4473_v23 = vpop.f32.mrb[25].mxu1 }
 0x216   :  { %v757_v15 = vadd.f32 %v756_v24, %v755_v17  ;;  %v748_v45 = vadd.f32 %v747_v0, %v746_v3  ;;  %v621_v5 = vadd.f32 %v4354_v31, %v499_v50  ;;  %v4471_v20 = vpop.f32.mrb[26].mxu0  ;;  %v495_v58 = vsel %vm468_vm1, %v492_v9, %v494_v36  ;;  %v4481_v33 = vpop.f32.mrb[26].mxu1 }
 0x217   :  { %v742_v26 = vrot.slane %v741_v2, 2  ;;  %v677_v49 = vsel %vm665_vm2, %v658_v41, 0.0  ;;  %v624_v30 = vadd.f32 %v4370_v57, %v517_v7  ;;  %v4479_v32 = vpop.f32.mrb[27].mxu0  ;;  %v4485_v47 = vpop.f32.mrb[27].mxu1  ;;  %v613_v54 = vadd.f32 %v4365_v37, %v495_v58 }
 0x218   :  { %v758_v63 = vrot.slane %v757_v15, 1  ;;  %v749_v34 = vrot.slane %v748_v45, 2  ;;  %v760_v31 = vsel %vm682_vm3, %v677_v49, 0.0  ;;  %v645_v43 = vadd.f32 %v4284_v60, %v621_v5 }
 0x219   :  { %v743_v13 = vadd.f32 %v742_v26, %v741_v2  ;;  %v761_v53 = vrot.slane %v760_v31, 4  ;;  %v646_v9 = vadd.f32 %v4284_v60, %v624_v30  ;;  %v497_v59 = vsel %vm468_vm1, %v494_v36, %v496_v8 }
 0x21a   :  { %v759_v12 = vadd.f32 %v758_v63, %v757_v15  ;;  %v750_v57 = vadd.f32 %v749_v34, %v748_v45  ;;  %v661_v17 = vmax.f32 %v645_v43, 0.0  ;;  %v643_v48 = vadd.f32 %v4284_v60, %v613_v54 }
 0x21b   :  { %v744_v1 = vrot.slane %v743_v13, 1  ;;  %v762_v3 = vadd.f32 %v761_v53, %v760_v31  ;;  %v662_v24 = vmax.f32 %v646_v9, 0.0  ;;  %v616_v37 = vadd.f32 %v4372_v62, %v497_v59 }
 0x21c   :  { %v805_v0 = vmul.f32 0.14285715, %v759_v12  ;;  %v751_v41 = vrot.slane %v750_v57, 1  ;;  %v680_v2 = vsel %vm665_vm2, %v661_v17, 0.0  ;;  %v4496_v50 = vpop.f32.mrb[28].mxu0  ;;  %v659_v45 = vmax.f32 %v643_v48, 0.0 }
 0x21d   :  { %v745_v7 = vadd.f32 %v744_v1, %v743_v13  ;;  %v763_v15 = vrot.slane %v762_v3, 2  ;;  %v781_v25 = vsel %vm682_vm3, %v680_v2, 0.0  ;;  %v4499_v8 = vpop.f32.mrb[29].mxu0  ;;  %v4501_v36 = vpop.f32.mrb[28].mxu1  ;;  %v681_v58 = vsel %vm665_vm2, %v662_v24, 0.0 }
 0x21e   :  { %v2473_v5 = vpack.c.bf16 %v805_v0, %v805_v0  ;;  %v752_v26 = vadd.f32 %v751_v41, %v750_v57  ;;  %v782_v49 = vrot.slane %v781_v25, 4  ;;  %v4505_v30 = vpop.f32.mrb[30].mxu0  ;;  %v4507_v62 = vpop.f32.mrb[29].mxu1  ;;  %v678_v31 = vsel %vm665_vm2, %v659_v45, 0.0 }
 0x21f   :  { %v803_v63 = vmul.f32 0.14285715, %v745_v7  ;;  %v764_v34 = vadd.f32 %v763_v15, %v762_v3  ;;  %v788_v43 = vsel %vm682_vm3, %v681_v58, 0.0  ;;  %v4512_v13 = vpop.f32.mrb[31].mxu0  ;;  %v4514_v53 = vpop.f32.mrb[30].mxu1  ;;  %v767_v57 = vsel %vm682_vm3, %v678_v31, 0.0 }
 0x220   :  { %v2643_v54 = vunpack.c.l.b16 %v2473_v5  ;;  %v804_v9 = vmul.f32 0.14285715, %v752_v26  ;;  %v783_v12 = vadd.f32 %v782_v49, %v781_v25  ;;  %v4517_v17 = vpop.f32.mrb[31].mxu1  ;;  %v768_v48 = vrot.slane %v767_v57, 4 }
 0x221   :  { %v2471_v59 = vpack.c.bf16 %v803_v63, %v803_v63  ;;  %v765_v1 = vrot.slane %v764_v34, 1  ;;  %v789_v3 = vrot.slane %v788_v43, 4  ;;  %v644_v41 = vadd.f32 %v4284_v60, %v616_v37 }
 0x222   :  { %v2472_v24 = vpack.c.bf16 %v804_v9, %v804_v9  ;;  %v784_v0 = vrot.slane %v783_v12, 2  ;;  %v1187_v2 = vrot.slane %v4376_v14, 1  ;;  %v769_v45 = vadd.f32 %v768_v48, %v767_v57 }
 0x223   :  { %v2641_v7 = vunpack.c.l.b16 %v2471_v59  ;;  %v766_v15 = vadd.f32 %v765_v1, %v764_v34  ;;  %v790_v5 = vadd.f32 %v789_v3, %v788_v43  ;;  %v660_v49 = vmax.f32 %v644_v41, 0.0 }
 0x224   :  { %v2642_v26 = vunpack.c.l.b16 %v2472_v24  ;;  %v785_v25 = vadd.f32 %v784_v0, %v783_v12  ;;  %v4935_v58 = vrot.slane %v4380_v21, 1  ;;  %v4522_v31 = vpop.f32.mrb[32].mxu0  ;;  %v770_v44 = vrot.slane %v769_v45, 2  ;;  %v4533_v12 = vpop.f32.mrb[32].mxu1 }
 0x225   :  { %v806_v63 = vmul.f32 0.14285715, %v766_v15  ;;  %v791_v4 = vrot.slane %v790_v5, 2  ;;  %v4936_v9 = vrot.slane %v4387_v55, 1  ;;  %v4525_v61 = vpop.f32.mrb[33].mxu0  ;;  %v679_v37 = vsel %vm665_vm2, %v660_v49, 0.0 }
 0x226   :  { %v2656_v60 = vsel %vm2539_vm4, %v2642_v26, %v2641_v7  ;;  %v786_v14 = vrot.slane %v785_v25, 1  ;;  %v1185_v34 = vrot.slane %v4397_v35, 1  ;;  %v4531_v43 = vpop.f32.mrb[34].mxu0  ;;  %v771_v1 = vadd.f32 %v770_v44, %v769_v45  ;;  %v4538_v24 = vpop.f32.mrb[33].mxu1 }
 0x227   :  { %v2657_v57 = vsel %vm2541_vm5, %v2643_v54, %v2656_v60  ;;  %v2474_v59 = vpack.c.bf16 %v806_v63, %v806_v63  ;;  %v792_v48 = vadd.f32 %v791_v4, %v790_v5  ;;  %v4536_v3 = vpop.f32.mrb[35].mxu0  ;;  %v774_v41 = vsel %vm682_vm3, %v679_v37, 0.0  ;;  %v4547_v15 = vpop.f32.mrb[34].mxu1 }
 0x228   :  { %v787_v0 = vadd.f32 %v786_v14, %v785_v25  ;;  %v1190_v35 = vsel %vm468_vm1, %v1187_v2, %v4936_v9  ;;  %v1186_v7 = vsel %vm468_vm1, %v4935_v58, %v1185_v34  ;;  %v772_v44 = vrot.slane %v771_v1, 1  ;;  %v4549_v5 = vpop.f32.mrb[35].mxu1 }
 0x229   :  { %v2644_v54 = vunpack.c.l.b16 %v2474_v59  ;;  %v793_v4 = vrot.slane %v792_v48, 1  ;;  %v775_v45 = vrot.slane %v774_v41, 4  ;;  %v1336_v25 = vadd.f32 %v4382_v22, %v1190_v35 }
 0x22a   :  { %v809_v26 = vmul.f32 0.14285715, %v787_v0  ;;  %v1328_v49 = vadd.f32 %v4389_v29, %v1186_v7  ;;  %v1188_v63 = vsel %vm468_vm1, %v1185_v34, %v1187_v2  ;;  %v773_v60 = vadd.f32 %v772_v44, %v771_v1 }
 0x22b   :  { %v2658_v14 = vsel %vm2543_vm6, %v2644_v54, %v2657_v57  ;;  %v794_v37 = vadd.f32 %v793_v4, %v792_v48  ;;  %v776_v58 = vadd.f32 %v775_v45, %v774_v41  ;;  %v4556_v59 = vadd.f32 %v4315_v38, %v1336_v25 }
 0x22c   :  { %v2477_v9 = vpack.c.bf16 %v809_v26, %v809_v26  ;;  %v1458_v46 = vadd.f32 %v4315_v38, %v1328_v49  ;;  %v1331_v21 = vadd.f32 %v4402_v52, %v1188_v63  ;;  %v4560_v0 = vpop.f32.mrb[36].mxu0  ;;  %v807_v29 = vmul.f32 0.14285715, %v773_v60  ;;  %v4572_v7 = vpop.f32.mrb[36].mxu1 }
 0x22d   :  { %v4564_v2 = vmul.f32 0.14285715, %v794_v37  ;;  %v777_v34 = vrot.slane %v776_v58, 2  ;;  %v1195_v41 = vrot.slane %v4420_v10, 1  ;;  %v4570_v35 = vpop.f32.mrb[37].mxu0  ;;  %v1492_v44 = vmax.f32 %v4556_v59, 0.0 }
 0x22e   :  { %v4566_v57 = vunpack.c.l.b16 %v2477_v9  ;;  %v1490_v1 = vmax.f32 %v1458_v46, 0.0  ;;  %v1459_v48 = vadd.f32 %v4315_v38, %v1331_v21  ;;  %v2475_v52 = vpack.c.bf16 %v807_v29, %v807_v29  ;;  %v4576_v45 = vpop.f32.mrb[38].mxu0  ;;  %v4578_v26 = vpop.f32.mrb[37].mxu1 }
 0x22f   :  { %v778_v54 = vadd.f32 %v777_v34, %v776_v58  ;;  %v1191_v4 = vrot.slane %v4426_v16, 1  ;;  %v1197_v10 = vrot.slane %v4432_v27, 1  ;;  %v1193_v9 = vrot.slane %v4436_v40, 1  ;;  %v4584_v25 = vpop.f32.mrb[39].mxu0  ;;  %v4586_v49 = vpop.f32.mrb[38].mxu1 }
 0x230   :  { %4944 = vst [vmem:[#allocation40_spill] sm:$0xff] %v4566_v57  ;;  %v1491_v21 = vmax.f32 %v1459_v48, 0.0  ;;  %v2645_v58 = vunpack.c.l.b16 %v2475_v52  ;;  %v4945_v16 = vrot.slane %v4387_v55, 1  ;;  %v1203_v37 = vrot.slane %v4456_v6, 1  ;;  %v4592_v59 = vpop.f32.mrb[39].mxu1 }
 0x231   :  { %v779_v63 = vrot.slane %v778_v54, 1  ;;  %v1198_v27 = vsel %vm468_vm1, %v1195_v41, %v1197_v10  ;;  %v1194_v40 = vsel %vm468_vm1, %v1191_v4, %v1193_v9  ;;  %v1196_v6 = vsel %vm468_vm1, %v1193_v9, %v1195_v41 }
 0x232   :  { %v1192_v60 = vsel %vm468_vm1, %v4945_v16, %v1191_v4  ;;  %v1522_v29 = vpack.c.bf16 %v1491_v21, %v1490_v1  ;;  %v2659_v48 = vsel %vm2545_vm7, %v2645_v58, %v2658_v14  ;;  %v1352_v52 = vadd.f32 %v4422_v11, %v1198_v27  ;;  %v3471_v27 = vld [vmem:[#allocation17] sm:$0xff]  }
 0x233   :  { %v1339_v34 = vadd.f32 %v4399_v39, %v1192_v60  ;;  %v780_v22 = vadd.f32 %v779_v63, %v778_v54  ;;  %v1344_v55 = vadd.f32 %v4428_v18, %v1194_v40  ;;  %v1199_v39 = vrot.slane %v4464_v19, 1 }
 0x234   :  { %3285 = vmatprep.mubr.msk.bf16.mxu0 %vm1598_vm9, %v1522_v29  ;;  %3329 = vmatprep.mubr.msk.bf16.mxu1 %vm1598_vm9, %v1522_v29  ;;  %v1205_v1 = vrot.slane %v4471_v20, 1  ;;  %v4606_v4 = vpop.f32.mrb[40].mxu0  ;;  %v1464_v54 = vadd.f32 %v4315_v38, %v1352_v52  ;;  %v1347_v18 = vadd.f32 %v4438_v42, %v1196_v6  ;;  %v4613_v41 = vpop.f32.mrb[40].mxu1  ;;  %v1201_v19 = vrot.slane %v4479_v32, 1 }
 0x235   :  { %v1461_v16 = vadd.f32 %v4315_v38, %v1339_v34  ;;  %v808_v14 = vmul.f32 0.14285715, %v780_v22  ;;  %v1462_v11 = vadd.f32 %v4315_v38, %v1344_v55  ;;  %v4611_v21 = vpop.f32.mrb[41].mxu0  ;;  %v1200_v58 = vsel %vm468_vm1, %v1197_v10, %v1199_v39  ;;  %v4620_v22 = vpop.f32.mrb[41].mxu1 }
 0x236   :  { %v1206_v20 = vsel %vm468_vm1, %v1203_v37, %v1205_v1  ;;  %v4618_v63 = vpop.f32.mrb[42].mxu0  ;;  %v1496_v29 = vmax.f32 %v1464_v54, 0.0  ;;  %v1463_v42 = vadd.f32 %v4315_v38, %v1347_v18  ;;  %v4625_v52 = vpop.f32.mrb[42].mxu1  ;;  %v1355_v10 = vadd.f32 %v4434_v28, %v1200_v58 }
 0x237   :  { %v1493_v9 = vmax.f32 %v1461_v16, 0.0  ;;  %v2476_v60 = vpack.c.bf16 %v808_v14, %v808_v14  ;;  %v1494_v34 = vmax.f32 %v1462_v11, 0.0  ;;  %v4623_v40 = vpop.f32.mrb[43].mxu0  ;;  %v1368_v32 = vadd.f32 %v4466_v51, %v1206_v20  ;;  %v4630_v6 = vpop.f32.mrb[43].mxu1 }
 0x238   :  { %v1202_v16 = vsel %vm468_vm1, %v1199_v39, %v1201_v19  ;;  %v1495_v14 = vmax.f32 %v1463_v42, 0.0  ;;  %v1204_v11 = vsel %vm468_vm1, %v1201_v19, %v1203_v37  ;;  %v1465_v18 = vadd.f32 %v4315_v38, %v1355_v10 }
 0x239   :  { %v1523_v55 = vpack.c.bf16 %v1493_v9, %v1492_v44  ;;  %v2646_v46 = vunpack.c.l.b16 %v2476_v60  ;;  %v1360_v54 = vadd.f32 %v4473_v23, %v1202_v16  ;;  %v4636_v57 = vadd.f32 %v4315_v38, %v1368_v32 }
 0x23a   :  { %v1363_v28 = vadd.f32 %v4485_v47, %v1204_v11  ;;  %v1211_v51 = vrot.slane %v4496_v50, 1  ;;  %v1524_v39 = vpack.c.bf16 %v1495_v14, %v1494_v34  ;;  %v1207_v37 = vrot.slane %v4499_v8, 1 }
 0x23b   :  { %3286 = vmatmul.mubr.msk.bf16.vlgmr.msra.gmra.mrb[48].mxu0 %vm1598_vm9, %v1523_v55  ;;  %3330 = vmatmul.mubr.msk.bf16.vlgmr.msra.gmra.mrb[48].mxu1 %vm1598_vm9, %v1523_v55  ;;  %v4643_v44 = vsel %vm2547_vm8, %v2646_v46, %v2659_v48  ;;  %v1466_v23 = vadd.f32 %v4315_v38, %v1360_v54  ;;  %v1497_v9 = vmax.f32 %v1465_v18, 0.0  ;;  %v1500_v58 = vmax.f32 %v4636_v57, 0.0 }
 0x23c   :  { %3362 = vmatpush3.bf16.msra.mxu0 %v3471_v27  ;;  %v1467_v19 = vadd.f32 %v4315_v38, %v1363_v28  ;;  %v1213_v20 = vrot.slane %v4505_v30, 1  ;;  %v4650_v60 = vpop.f32.mrb[44].mxu0  ;;  %v4946_v47 = vmov 0.0   ;;  %3289 = vmatprep.mubr.msk.bf16.mxu0 %vm1598_vm9, %v1524_v39  ;;  %v1208_v46 = vsel %vm468_vm1, %v1205_v1, %v1207_v37  ;;  %v4660_v34 = vpop.f32.mrb[44].mxu1 }
 0x23d   :  { %3375 = vmatprep.subr.bf16.mxu0 %v4946_v47  ;;  %v1498_v50 = vmax.f32 %v1466_v23, 0.0  ;;  %3333 = vmatprep.mubr.msk.bf16.mxu1 %vm1598_vm9, %v1524_v39  ;;  %v1209_v8 = vrot.slane %v4512_v13, 1  ;;  %v1219_v48 = vrot.slane %v4522_v31, 1  ;;  %v4658_v57 = vpop.f32.mrb[45].mxu0  ;;  %v1371_v42 = vadd.f32 %v4481_v33, %v1208_v46  ;;  %v4666_v32 = vpop.f32.mrb[45].mxu1 }
 0x23e   :  { %v1499_v30 = vmax.f32 %v1467_v19, 0.0  ;;  %v1214_v27 = vsel %vm468_vm1, %v1211_v51, %v1213_v20  ;;  %v1525_v55 = vpack.c.bf16 %v1497_v9, %v1496_v29  ;;  %v4664_v10 = vpop.f32.mrb[46].mxu0  ;;  %v1215_v16 = vrot.slane %v4525_v61, 1  ;;  %v4674_v54 = vpop.f32.mrb[46].mxu1 }
 0x23f   :  { %v1384_v1 = vadd.f32 %v4501_v36, %v1214_v27  ;;  %v1210_v13 = vsel %vm468_vm1, %v1207_v37, %v1209_v8  ;;  %v1212_v31 = vsel %vm468_vm1, %v1209_v8, %v1211_v51  ;;  %v4672_v14 = vpop.f32.mrb[47].mxu0  ;;  %v1469_v11 = vadd.f32 %v4315_v38, %v1371_v42  ;;  %v4679_v28 = vpop.f32.mrb[47].mxu1 }
 0x240   :  { %v1526_v33 = vpack.c.bf16 %v1499_v30, %v1498_v50  ;;  %v1376_v29 = vadd.f32 %v4507_v62, %v1210_v13  ;;  %v1379_v18 = vadd.f32 %v4517_v17, %v1212_v31  ;;  %v1216_v39 = vsel %vm468_vm1, %v1213_v20, %v1215_v16 }
 0x241   :  { %v1472_v36 = vadd.f32 %v4315_v38, %v1384_v1  ;;  %v1221_v51 = vrot.slane %v4531_v43, 1  ;;  %v1217_v61 = vrot.slane %v4536_v3, 1  ;;  %v1501_v23 = vmax.f32 %v1469_v11, 0.0 }
 0x242   :  { %v1470_v37 = vadd.f32 %v4315_v38, %v1376_v29  ;;  %v1471_v62 = vadd.f32 %v4315_v38, %v1379_v18  ;;  %v1387_v17 = vadd.f32 %v4514_v53, %v1216_v39  ;;  %v1227_v27 = vrot.slane %v4560_v0, 1 }
 0x243   :  { %3290 = vmatmul.mubr.msk.bf16.gmra.mrb[52].mxu0 %vm1598_vm9, %v1525_v55  ;;  %3334 = vmatmul.mubr.msk.bf16.gmra.mrb[52].mxu1 %vm1598_vm9, %v1525_v55  ;;  %v1504_v9 = vmax.f32 %v1472_v36, 0.0  ;;  %v1222_v43 = vsel %vm468_vm1, %v1219_v48, %v1221_v51  ;;  %v1218_v3 = vsel %vm468_vm1, %v1215_v16, %v1217_v61  ;;  %v1220_v19 = vsel %vm468_vm1, %v1217_v61, %v1219_v48 }
 0x244   :  { %3293 = vmatprep.mubr.msk.bf16.mxu0 %vm1598_vm9, %v1526_v33  ;;  %3337 = vmatprep.mubr.msk.bf16.mxu1 %vm1598_vm9, %v1526_v33  ;;  %v1502_v20 = vmax.f32 %v1470_v37, 0.0  ;;  %v1503_v50 = vmax.f32 %v1471_v62, 0.0  ;;  %v1473_v46 = vadd.f32 %v4315_v38, %v1387_v17  ;;  %v1400_v8 = vadd.f32 %v4533_v12, %v1222_v43 }
 0x245   :  { %v1392_v30 = vadd.f32 %v4538_v24, %v1218_v3  ;;  %v1527_v53 = vpack.c.bf16 %v1501_v23, %v1500_v58  ;;  %v1395_v42 = vadd.f32 %v4549_v5, %v1220_v19  ;;  %v1223_v31 = vrot.slane %v4570_v35, 1 }
 0x246   :  { %v1528_v55 = vpack.c.bf16 %v1503_v50, %v1502_v20  ;;  %v1505_v1 = vmax.f32 %v1473_v46, 0.0  ;;  %v1476_v13 = vadd.f32 %v4315_v38, %v1400_v8  ;;  %v1229_v33 = vrot.slane %v4576_v45, 1 }
 0x247   :  { %v1474_v48 = vadd.f32 %v4315_v38, %v1392_v30  ;;  %v1475_v16 = vadd.f32 %v4315_v38, %v1395_v42  ;;  %v1225_v12 = vrot.slane %v4584_v25, 1  ;;  %v1224_v58 = vsel %vm468_vm1, %v1221_v51, %v1223_v31 }
 0x248   :  { %v1508_v24 = vmax.f32 %v1476_v13, 0.0  ;;  %v1529_v5 = vpack.c.bf16 %v1505_v1, %v1504_v9  ;;  %v1235_v0 = vrot.slane %v4606_v4, 1  ;;  %v1403_v18 = vadd.f32 %v4547_v15, %v1224_v58 }
 0x249   :  { %v1506_v11 = vmax.f32 %v1474_v48, 0.0  ;;  %v1507_v29 = vmax.f32 %v1475_v16, 0.0  ;;  %v1230_v35 = vsel %vm468_vm1, %v1227_v27, %v1229_v33  ;;  %v1226_v25 = vsel %vm468_vm1, %v1223_v31, %v1225_v12 }
 0x24a   :  { %v1416_v45 = vadd.f32 %v4572_v7, %v1230_v35  ;;  %v1228_v36 = vsel %vm468_vm1, %v1225_v12, %v1227_v27  ;;  %v1231_v39 = vrot.slane %v4611_v21, 1  ;;  %v1477_v15 = vadd.f32 %v4315_v38, %v1403_v18  ;;  %v4948_v12 = vld [vmem:[#allocation37_spill] sm:$0xff] }
 0x24b   :  { %3294 = vmatmul.mubr.msk.bf16.gmra.mrb[56].mxu0 %vm1598_vm9, %v1527_v53  ;;  %3338 = vmatmul.mubr.msk.bf16.gmra.mrb[56].mxu1 %vm1598_vm9, %v1527_v53  ;;  %v1530_v51 = vpack.c.bf16 %v1507_v29, %v1506_v11  ;;  %v1408_v4 = vadd.f32 %v4578_v26, %v1226_v25  ;;  %v1237_v61 = vrot.slane %v4618_v63, 1  ;;  %v1411_v7 = vadd.f32 %v4592_v59, %v1228_v36 }
 0x24c   :  { %3297 = vmatprep.mubr.msk.bf16.mxu0 %vm1598_vm9, %v1528_v55  ;;  %3341 = vmatprep.mubr.msk.bf16.mxu1 %vm1598_vm9, %v1528_v55  ;;  %v1480_v23 = vadd.f32 %v4315_v38, %v1416_v45  ;;  %v1232_v37 = vsel %vm468_vm1, %v1229_v33, %v1231_v39  ;;  %v1233_v62 = vrot.slane %v4623_v40, 1  ;;  %v1509_v21 = vmax.f32 %v1477_v15, 0.0 }
 0x24d   :  { %v1478_v17 = vadd.f32 %v4315_v38, %v1408_v4  ;;  %v1419_v9 = vadd.f32 %v4586_v49, %v1232_v37  ;;  %v1238_v43 = vsel %vm468_vm1, %v1235_v0, %v1237_v61  ;;  %v4947_v26 = vpack.c.bf16 %v4564_v2, %v4564_v2  ;;  %v4953_v4 = vld [vmem:[#allocation40_spill] sm:$0xff] }
 0x24e   :  { %v1479_v3 = vadd.f32 %v4315_v38, %v1411_v7  ;;  %v1432_v59 = vadd.f32 %v4613_v41, %v1238_v43  ;;  %v1234_v19 = vsel %vm468_vm1, %v1231_v39, %v1233_v62  ;;  %v1531_v49 = vpack.c.bf16 %v1509_v21, %v1508_v24 }
 0x24f   :  { %v2648_v63 = vunpack.c.l.b16 %v4947_v26  ;;  %v1510_v40 = vmax.f32 %v1478_v17, 0.0  ;;  %v1481_v20 = vadd.f32 %v4315_v38, %v1419_v9  ;;  %v1424_v50 = vadd.f32 %v4620_v22, %v1234_v19  ;;  %v3473_v26 = vld [vmem:[#allocation19] sm:$0xff]  }
 0x250   :  { %v1512_v46 = vmax.f32 %v1480_v23, 0.0  ;;  %v1511_v8 = vmax.f32 %v1479_v3, 0.0  ;;  %v1484_v30 = vadd.f32 %v4315_v38, %v1432_v59  ;;  %v1236_v2 = vsel %vm468_vm1, %v1233_v62, %v1235_v0  ;;  %v3475_v3 = vld [vmem:[#allocation19 + $0x10] sm:$0xff]   ;;  %v3476_v59 = vld [vmem:[#allocation19 + $0x18] sm:$0xff]   ;;  %v3477_v19 = vld [vmem:[#allocation20] sm:$0xff]  }
 0x251   :  { %v1513_v53 = vmax.f32 %v1481_v20, 0.0  ;;  %v1482_v42 = vadd.f32 %v4315_v38, %v1424_v50  ;;  %v1427_v41 = vadd.f32 %v4630_v6, %v1236_v2  ;;  %v1239_v27 = vrot.slane %v4658_v57, 1  ;;  %3368 = vmatpush3.bf16.msra.mxu1 %v3477_v19 }
 0x252   :  { %v1532_v55 = vpack.c.bf16 %v1511_v8, %v1510_v40  ;;  %v1243_v22 = vrot.slane %v4650_v60, 1  ;;  %v1245_v1 = vrot.slane %v4664_v10, 1  ;;  %v1241_v13 = vrot.slane %v4672_v14, 1  ;;  %3369 = vmatprep.subr.bf16.mxu1 %v4946_v47  ;;  %v3478_v40 = vld [vmem:[#allocation20 + $0x8] sm:$0xff]  }
 0x253   :  { %3298 = vmatmul.mubr.msk.bf16.gmra.mrb[60].mxu0 %vm1598_vm9, %v1529_v5  ;;  %3342 = vmatmul.mubr.msk.bf16.gmra.mrb[60].mxu1 %vm1598_vm9, %v1529_v5  ;;  %v1514_v31 = vmax.f32 %v1482_v42, 0.0  ;;  %v1483_v6 = vadd.f32 %v4315_v38, %v1427_v41  ;;  %v1240_v57 = vsel %vm468_vm1, %v1237_v61, %v1239_v27  ;;  %v1533_v48 = vpack.c.bf16 %v1513_v53, %v1512_v46 }
 0x254   :  { %3301 = vmatprep.mubr.msk.bf16.mxu0 %vm1598_vm9, %v1530_v51  ;;  %3345 = vmatprep.mubr.msk.bf16.mxu1 %vm1598_vm9, %v1530_v51  ;;  %v1435_v16 = vadd.f32 %v4625_v52, %v1240_v57  ;;  %v1246_v33 = vsel %vm468_vm1, %v1243_v22, %v1245_v1  ;;  %v1242_v60 = vsel %vm468_vm1, %v1239_v27, %v1241_v13  ;;  %v4949_v10 = vrot.slane %v4948_v12, 1  ;;  %v4952_v51 = vld [vmem:[#allocation39_spill] sm:$0xff] }
 0x255   :  { %v1515_v24 = vmax.f32 %v1483_v6, 0.0  ;;  %v1448_v58 = vadd.f32 %v4660_v34, %v1246_v33  ;;  %v1440_v5 = vadd.f32 %v4666_v32, %v1242_v60  ;;  %v1516_v11 = vmax.f32 %v1484_v30, 0.0  ;;  %3370 = vmatpush3.bf16.msra.mxu1 %v3478_v40 }
 0x256   :  { %v1280_v14 = vsel %vm468_vm1, %v1245_v1, %v4949_v10  ;;  %v1485_v29 = vadd.f32 %v4315_v38, %v1435_v16  ;;  %v1244_v52 = vsel %vm468_vm1, %v1241_v13, %v1243_v22  ;;  %v4950_v18 = vpack.c.bf16 %v4468_v56, %v4468_v56  ;;  %3387 = vmatprep.subr.bf16.mxu1 %v4946_v47  ;;  %v4805_v1 = vld [vmem:[#allocation25] sm:$0xff] }
 0x257   :  { %v1451_v0 = vadd.f32 %v4674_v54, %v1280_v14  ;;  %v1534_v45 = vpack.c.bf16 %v1515_v24, %v1514_v31  ;;  %v1488_v25 = vadd.f32 %v4315_v38, %v1448_v58  ;;  %v1486_v36 = vadd.f32 %v4315_v38, %v1440_v5  ;;  %v4951_v54 = vld [vmem:[#allocation38_spill] sm:$0xff] }
 0x258   :  { %v2640_v35 = vunpack.c.l.b16 %v4950_v18  ;;  %v1517_v39 = vmax.f32 %v1485_v29, 0.0  ;;  %v1443_v32 = vadd.f32 %v4679_v28, %v1244_v52  ;;  %v2654_v15 = vsel %vm2549_vm10, %v4952_v51, %v4951_v54 }
 0x259   :  { %v1489_v34 = vadd.f32 %v4315_v38, %v1451_v0  ;;  %v2661_v61 = vsel %vm2549_vm10, %v4953_v4, %v4643_v44  ;;  %v1520_v56 = vmax.f32 %v1488_v25, 0.0  ;;  %v1518_v37 = vmax.f32 %v1486_v36, 0.0 }
 0x25a   :  { %v2655_v7 = vsel %vm2551_vm11, %v2640_v35, %v2654_v15  ;;  %v1487_v62 = vadd.f32 %v4315_v38, %v1443_v32  ;;  %v1535_v28 = vpack.c.bf16 %v1517_v39, %v1516_v11  ;;  %v2662_v21 = vsel %vm2551_vm11, %v2648_v63, %v2661_v61  ;;  %v3472_v38 = vld [vmem:[#allocation7] sm:$0xff]   ;;  %v3474_v63 = vld [vmem:[#allocation19 + $0x8] sm:$0xff]  }
 0x25b   :  { %v1521_v23 = vmax.f32 %v1489_v34, 0.0  ;;  %3302 = vmatmul.mubr.msk.bf16.gmra.mrb[64].mxu0 %vm1598_vm9, %v1531_v49  ;;  %3346 = vmatmul.mubr.msk.bf16.gmra.mrb[64].mxu1 %vm1598_vm9, %v1531_v49  ;;  %v2663_v44 = vpack.c.b16 %v2662_v21, %v2655_v7  ;;  %v4954_v49 = vld [vmem:[#allocation36_spill] sm:$0xff] }
 0x25c   :  { %3305 = vmatprep.mubr.msk.bf16.mxu0 %vm1598_vm9, %v1532_v55  ;;  %3349 = vmatprep.mubr.msk.bf16.mxu1 %vm1598_vm9, %v1532_v55  ;;  %v1519_v9 = vmax.f32 %v1487_v62, 0.0  ;;  %v2136_v46 = vsub.s32 2, %v4954_v49 }
 0x25d   :  { %v1537_v17 = vpack.c.bf16 %v1521_v23, %v1520_v56 }
 0x25e   :  { %v1536_v43 = vpack.c.bf16 %v1519_v9, %v1518_v37  ;;  %v4808_v13 = vrot.slane %v4805_v1, %v2136_v46 }
 0x263   :  { %3306 = vmatmul.mubr.msk.bf16.gmra.mrb[68].mxu0 %vm1598_vm9, %v1533_v48  ;;  %3350 = vmatmul.mubr.msk.bf16.gmra.mrb[68].mxu1 %vm1598_vm9, %v1533_v48 }
 0x264   :  { %3309 = vmatprep.mubr.msk.bf16.mxu0 %vm1598_vm9, %v1534_v45  ;;  %3353 = vmatprep.mubr.msk.bf16.mxu1 %vm1598_vm9, %v1534_v45 }
 0x26b   :  { %3310 = vmatmul.mubr.msk.bf16.gmra.mrb[72].mxu0 %vm1598_vm9, %v1535_v28  ;;  %3354 = vmatmul.mubr.msk.bf16.gmra.mrb[72].mxu1 %vm1598_vm9, %v1535_v28 }
 0x26c   :  { %3313 = vmatprep.mubr.msk.bf16.mxu0 %vm1598_vm9, %v1536_v43  ;;  %3357 = vmatprep.mubr.msk.bf16.mxu1 %vm1598_vm9, %v1536_v43 }
 0x273   :  { %3314 = vmatmul.mubr.msk.bf16.gmra.mrb[76].mxu0 %vm1598_vm9, %v1537_v17  ;;  %3358 = vmatmul.mubr.msk.bf16.gmra.mrb[76].mxu1 %vm1598_vm9, %v1537_v17 }
 0x274   :  { %3363 = vmatprep.mubr.msk.bf16.mxu0 %vm3873_vm12, %v4946_v47  ;;  %3371 = vmatprep.mubr.msk.bf16.mxu1 %vm3873_vm12, %v4946_v47 }
 0x27b   :  { %3364 = vmatmul.mubr.msk.bf16.vlgmr.msra.gmra.mrb[80].mxu0 %vm2416_vm13, %v3472_v38 }
 0x27c   :  { %3376 = vmatpush3.bf16.msra.mxu0 %v3473_v26  ;;  %3383 = vmatprep.mubr.msk.bf16.mxu0 %vm3873_vm12, %v4946_v47  ;;  %v2403_v26 = vsub.s32 3, %v4954_v49 }
 0x27d   :  { %3377 = vmatprep.subr.bf16.mxu0 %v4946_v47 }
 0x280   :  { %3378 = vmatpush3.bf16.msra.mxu0 %v3474_v63 }
 0x281   :  { %3379 = vmatprep.subr.bf16.mxu0 %v4946_v47 }
 0x284   :  { %3380 = vmatpush3.bf16.msra.mxu0 %v3475_v3 }
 0x285   :  { %3381 = vmatprep.subr.bf16.mxu0 %v4946_v47 }
 0x288   :  { %3382 = vmatpush3.bf16.msra.mxu0 %v3476_v59 }
 0x28b   :  { %3384 = vmatmul.mubr.msk.bf16.vlgmr.msra.gmra.mrb[84].mxu0 %vm682_vm3, %v2663_v44 }
 0x30e   :  { %v3287_v20 = vpop.f32.mrb[48].mxu0  ;;  %v3331_v50 = vpop.f32.mrb[48].mxu1 }
 0x30f   :  { %v1681_v8 = vpop.f32.mrb[49].mxu0  ;;  %v2007_v30 = vpop.f32.mrb[49].mxu1  ;;  %v1843_v42 = vrot.slane %v3287_v20, 1 }
 0x310   :  { %v3288_v2 = vpop.f32.mrb[50].mxu0  ;;  %v3332_v53 = vpop.f32.mrb[50].mxu1  ;;  %v1840_v22 = vrot.slane %v1681_v8, 1 }
 0x311   :  { %v1845_v41 = vrot.slane %v3288_v2, 1  ;;  %v1684_v27 = vpop.f32.mrb[51].mxu0  ;;  %v2010_v55 = vpop.f32.mrb[51].mxu1 }
 0x312   :  { %v1841_v31 = vrot.slane %v1684_v27, 1 }
 0x313   :  { %v1846_v6 = vsel %vm468_vm1, %v1843_v42, %v1845_v41 }
 0x314   :  { %v2016_v57 = vadd.f32 %v3331_v50, %v1846_v6  ;;  %v1842_v48 = vsel %vm468_vm1, %v1840_v22, %v1841_v31 }
 0x315   :  { %v2008_v16 = vadd.f32 %v2007_v30, %v1842_v48 }
 0x316   :  { %v2140_v33 = vadd.f32 %v4808_v13, %v2016_v57  ;;  %v3291_v60 = vpop.f32.mrb[52].mxu0  ;;  %v3335_v12 = vpop.f32.mrb[52].mxu1 }
 0x317   :  { %v2138_v10 = vadd.f32 %v4808_v13, %v2008_v16  ;;  %v1697_v14 = vpop.f32.mrb[53].mxu0  ;;  %v2023_v24 = vpop.f32.mrb[53].mxu1  ;;  %v1851_v29 = vrot.slane %v3291_v60, 1 }
 0x318   :  { %v2172_v58 = vmax.f32 %v2140_v33, 0.0  ;;  %v3292_v5 = vpop.f32.mrb[54].mxu0  ;;  %v3336_v0 = vpop.f32.mrb[54].mxu1  ;;  %v1847_v25 = vrot.slane %v1697_v14, 1  ;;  %v4827_v14 = vrot.slane %v4805_v1, %v2403_v26 }
 0x319   :  { %v2170_v11 = vmax.f32 %v2138_v10, 0.0  ;;  %v1853_v52 = vrot.slane %v3292_v5, 1  ;;  %v1700_v18 = vpop.f32.mrb[55].mxu0  ;;  %v2026_v35 = vpop.f32.mrb[55].mxu1 }
 0x31a   :  { %v2246_v45 = vsel %vm330_vm0, %v2172_v58, 0.0  ;;  %v1849_v36 = vrot.slane %v1700_v18, 1 }
 0x31b   :  { %v2249_v34 = vrot.slane %v2246_v45, 4  ;;  %v2237_v39 = vsel %vm330_vm0, %v2170_v11, 0.0  ;;  %v1854_v32 = vsel %vm468_vm1, %v1851_v29, %v1853_v52 }
 0x31c   :  { %v2240_v54 = vrot.slane %v2237_v39, 4  ;;  %v2032_v51 = vadd.f32 %v3335_v12, %v1854_v32  ;;  %v1850_v15 = vsel %vm468_vm1, %v1847_v25, %v1849_v36 }
 0x31d   :  { %v2250_v4 = vadd.f32 %v2249_v34, %v2246_v45  ;;  %v2024_v61 = vadd.f32 %v2023_v24, %v1850_v15 }
 0x31e   :  { %v2241_v56 = vadd.f32 %v2240_v54, %v2237_v39  ;;  %v2144_v23 = vadd.f32 %v4808_v13, %v2032_v51  ;;  %v3295_v7 = vpop.f32.mrb[56].mxu0  ;;  %v3339_v37 = vpop.f32.mrb[56].mxu1 }
 0x31f   :  { %v2251_v62 = vrot.slane %v2250_v4, 2  ;;  %v2142_v28 = vadd.f32 %v4808_v13, %v2024_v61  ;;  %v1713_v21 = vpop.f32.mrb[57].mxu0  ;;  %v2039_v17 = vpop.f32.mrb[57].mxu1  ;;  %v1859_v59 = vrot.slane %v3295_v7, 1 }
 0x320   :  { %v2242_v44 = vrot.slane %v2241_v56, 2  ;;  %v2176_v9 = vmax.f32 %v2144_v23, 0.0  ;;  %v3296_v43 = vpop.f32.mrb[58].mxu0  ;;  %v3340_v38 = vpop.f32.mrb[58].mxu1  ;;  %v1855_v8 = vrot.slane %v1713_v21, 1 }
 0x321   :  { %v2252_v63 = vadd.f32 %v2251_v62, %v2250_v4  ;;  %v2174_v3 = vmax.f32 %v2142_v28, 0.0  ;;  %v1861_v19 = vrot.slane %v3296_v43, 1  ;;  %v1716_v40 = vpop.f32.mrb[59].mxu0  ;;  %v2042_v20 = vpop.f32.mrb[59].mxu1 }
 0x322   :  { %v2243_v50 = vadd.f32 %v2242_v44, %v2241_v56  ;;  %v2264_v46 = vsel %vm330_vm0, %v2176_v9, 0.0  ;;  %v1857_v30 = vrot.slane %v1716_v40, 1 }
 0x323   :  { %v2253_v2 = vrot.slane %v2252_v63, 1  ;;  %v2267_v53 = vrot.slane %v2264_v46, 4  ;;  %v2255_v42 = vsel %vm330_vm0, %v2174_v3, 0.0  ;;  %v1862_v41 = vsel %vm468_vm1, %v1859_v59, %v1861_v19 }
 0x324   :  { %v2244_v27 = vrot.slane %v2243_v50, 1  ;;  %v2258_v55 = vrot.slane %v2255_v42, 4  ;;  %v2048_v22 = vadd.f32 %v3339_v37, %v1862_v41  ;;  %v1858_v31 = vsel %vm468_vm1, %v1855_v8, %v1857_v30 }
 0x325   :  { %v2254_v6 = vadd.f32 %v2253_v2, %v2252_v63  ;;  %v2268_v57 = vadd.f32 %v2267_v53, %v2264_v46  ;;  %v2040_v48 = vadd.f32 %v2039_v17, %v1858_v31 }
 0x326   :  { %v2245_v16 = vadd.f32 %v2244_v27, %v2243_v50  ;;  %v2259_v33 = vadd.f32 %v2258_v55, %v2255_v42  ;;  %v2148_v60 = vadd.f32 %v4808_v13, %v2048_v22  ;;  %v3299_v12 = vpop.f32.mrb[60].mxu0  ;;  %v3343_v10 = vpop.f32.mrb[60].mxu1 }
 0x327   :  { %v2382_v24 = vmul.f32 0.125, %v2254_v6  ;;  %v2269_v58 = vrot.slane %v2268_v57, 2  ;;  %v2146_v5 = vadd.f32 %v4808_v13, %v2040_v48  ;;  %v1867_v0 = vrot.slane %v3299_v12, 1  ;;  %v1729_v11 = vpop.f32.mrb[61].mxu0  ;;  %v2055_v29 = vpop.f32.mrb[61].mxu1 }
 0x328   :  { %v2381_v52 = vmul.f32 0.125, %v2245_v16  ;;  %v2260_v18 = vrot.slane %v2259_v33, 2  ;;  %v2180_v35 = vmax.f32 %v2148_v60, 0.0  ;;  %v1863_v45 = vrot.slane %v1729_v11, 1  ;;  %v3300_v25 = vpop.f32.mrb[62].mxu0  ;;  %v3344_v36 = vpop.f32.mrb[62].mxu1 }
 0x329   :  { %v2488_v34 = vpack.c.bf16 %v2382_v24, %v2382_v24  ;;  %v2270_v39 = vadd.f32 %v2269_v58, %v2268_v57  ;;  %v2178_v32 = vmax.f32 %v2146_v5, 0.0  ;;  %v1869_v54 = vrot.slane %v3300_v25, 1  ;;  %v1732_v51 = vpop.f32.mrb[63].mxu0  ;;  %v2058_v15 = vpop.f32.mrb[63].mxu1 }
 0x32a   :  { %v2487_v4 = vpack.c.bf16 %v2381_v52, %v2381_v52  ;;  %v2261_v61 = vadd.f32 %v2260_v18, %v2259_v33  ;;  %v2282_v56 = vsel %vm330_vm0, %v2180_v35, 0.0  ;;  %v1865_v23 = vrot.slane %v1732_v51, 1 }
 0x32b   :  { %v2524_v7 = vunpack.c.l.b16 %v2488_v34  ;;  %v2271_v37 = vrot.slane %v2270_v39, 1  ;;  %v2285_v62 = vrot.slane %v2282_v56, 4  ;;  %v2273_v28 = vsel %vm330_vm0, %v2178_v32, 0.0 }
 0x32c   :  { %v2523_v21 = vunpack.c.l.b16 %v2487_v4  ;;  %v2262_v17 = vrot.slane %v2261_v61, 1  ;;  %v2276_v44 = vrot.slane %v2273_v28, 4  ;;  %v1870_v9 = vsel %vm468_vm1, %v1867_v0, %v1869_v54 }
 0x32d   :  { %v2272_v43 = vadd.f32 %v2271_v37, %v2270_v39  ;;  %v2286_v38 = vadd.f32 %v2285_v62, %v2282_v56  ;;  %v2064_v26 = vadd.f32 %v3343_v10, %v1870_v9  ;;  %v1866_v63 = vsel %vm468_vm1, %v1863_v45, %v1865_v23 }
 0x32e   :  { %v2540_v3 = vsel %vm2539_vm4, %v2524_v7, %v2523_v21  ;;  %v2263_v59 = vadd.f32 %v2262_v17, %v2261_v61  ;;  %v2277_v19 = vadd.f32 %v2276_v44, %v2273_v28  ;;  %v2056_v40 = vadd.f32 %v2055_v29, %v1866_v63  ;;  %v3303_v20 = vpop.f32.mrb[64].mxu0  ;;  %v3347_v50 = vpop.f32.mrb[64].mxu1 }
 0x32f   :  { %v2384_v46 = vmul.f32 0.125, %v2272_v43  ;;  %v2287_v8 = vrot.slane %v2286_v38, 2  ;;  %v2152_v30 = vadd.f32 %v4808_v13, %v2064_v26  ;;  %v1875_v2 = vrot.slane %v3303_v20, 1  ;;  %v1745_v53 = vpop.f32.mrb[65].mxu0  ;;  %v2071_v42 = vpop.f32.mrb[65].mxu1 }
 0x330   :  { %v2383_v41 = vmul.f32 0.125, %v2263_v59  ;;  %v2278_v27 = vrot.slane %v2277_v19, 2  ;;  %v2150_v55 = vadd.f32 %v4808_v13, %v2056_v40  ;;  %v1871_v22 = vrot.slane %v1745_v53, 1  ;;  %v3304_v31 = vpop.f32.mrb[66].mxu0  ;;  %v3348_v6 = vpop.f32.mrb[66].mxu1 }
 0x331   :  { %v2490_v57 = vpack.c.bf16 %v2384_v46, %v2384_v46  ;;  %v2288_v48 = vadd.f32 %v2287_v8, %v2286_v38  ;;  %v2184_v16 = vmax.f32 %v2152_v30, 0.0  ;;  %v1877_v33 = vrot.slane %v3304_v31, 1  ;;  %v1748_v60 = vpop.f32.mrb[67].mxu0  ;;  %v2074_v12 = vpop.f32.mrb[67].mxu1 }
 0x332   :  { %v2489_v10 = vpack.c.bf16 %v2383_v41, %v2383_v41  ;;  %v2279_v24 = vadd.f32 %v2278_v27, %v2277_v19  ;;  %v2182_v58 = vmax.f32 %v2150_v55, 0.0  ;;  %v1873_v5 = vrot.slane %v1748_v60, 1 }
 0x333   :  { %v2526_v0 = vunpack.c.l.b16 %v2490_v57  ;;  %v2289_v11 = vrot.slane %v2288_v48, 1  ;;  %v2300_v29 = vsel %vm330_vm0, %v2184_v16, 0.0  ;;  %v1878_v52 = vsel %vm468_vm1, %v1875_v2, %v1877_v33 }
 0x334   :  { %v2525_v18 = vunpack.c.l.b16 %v2489_v10  ;;  %v2280_v35 = vrot.slane %v2279_v24, 1  ;;  %v2303_v45 = vrot.slane %v2300_v29, 4  ;;  %v2291_v25 = vsel %vm330_vm0, %v2182_v58, 0.0 }
 0x335   :  { %v2290_v36 = vadd.f32 %v2289_v11, %v2288_v48  ;;  %v2294_v34 = vrot.slane %v2291_v25, 4  ;;  %v2080_v39 = vadd.f32 %v3347_v50, %v1878_v52  ;;  %v1874_v32 = vsel %vm468_vm1, %v1871_v22, %v1873_v5 }
 0x336   :  { %v2542_v54 = vsel %vm2541_vm5, %v2525_v18, %v2540_v3  ;;  %v2281_v51 = vadd.f32 %v2280_v35, %v2279_v24  ;;  %v2304_v15 = vadd.f32 %v2303_v45, %v2300_v29  ;;  %v2072_v4 = vadd.f32 %v2071_v42, %v1874_v32  ;;  %v3307_v61 = vpop.f32.mrb[68].mxu0  ;;  %v3351_v56 = vpop.f32.mrb[68].mxu1 }
 0x337   :  { %v2386_v23 = vmul.f32 0.125, %v2290_v36  ;;  %v2544_v7 = vsel %vm2543_vm6, %v2526_v0, %v2542_v54  ;;  %v2295_v37 = vadd.f32 %v2294_v34, %v2291_v25  ;;  %v2156_v62 = vadd.f32 %v4808_v13, %v2080_v39  ;;  %v1761_v28 = vpop.f32.mrb[69].mxu0  ;;  %v2087_v21 = vpop.f32.mrb[69].mxu1 }
 0x338   :  { %v2385_v17 = vmul.f32 0.125, %v2281_v51  ;;  %v2305_v44 = vrot.slane %v2304_v15, 2  ;;  %v2154_v9 = vadd.f32 %v4808_v13, %v2072_v4  ;;  %v1883_v43 = vrot.slane %v3307_v61, 1  ;;  %v3308_v38 = vpop.f32.mrb[70].mxu0  ;;  %v3352_v26 = vpop.f32.mrb[70].mxu1 }
 0x339   :  { %v2492_v63 = vpack.c.bf16 %v2386_v23, %v2386_v23  ;;  %v2296_v3 = vrot.slane %v2295_v37, 2  ;;  %v2188_v59 = vmax.f32 %v2156_v62, 0.0  ;;  %v1879_v19 = vrot.slane %v1761_v28, 1  ;;  %v1764_v40 = vpop.f32.mrb[71].mxu0  ;;  %v2090_v20 = vpop.f32.mrb[71].mxu1 }
 0x33a   :  { %v2491_v50 = vpack.c.bf16 %v2385_v17, %v2385_v17  ;;  %v2306_v46 = vadd.f32 %v2305_v44, %v2304_v15  ;;  %v2186_v8 = vmax.f32 %v2154_v9, 0.0  ;;  %v1885_v30 = vrot.slane %v3308_v38, 1 }
 0x33b   :  { %v4845_v2 = vunpack.c.l.b16 %v2492_v63  ;;  %v2297_v53 = vadd.f32 %v2296_v3, %v2295_v37  ;;  %v2318_v42 = vsel %vm330_vm0, %v2188_v59, 0.0  ;;  %v1881_v41 = vrot.slane %v1764_v40, 1 }
 0x33c   :  { %v2527_v27 = vunpack.c.l.b16 %v2491_v50  ;;  %v2307_v55 = vrot.slane %v2306_v46, 1  ;;  %v2321_v22 = vrot.slane %v2318_v42, 4  ;;  %v2309_v31 = vsel %vm330_vm0, %v2186_v8, 0.0 }
 0x33d   :  { %v2298_v6 = vrot.slane %v2297_v53, 1  ;;  %v2312_v57 = vrot.slane %v2309_v31, 4  ;;  %v1886_v48 = vsel %vm468_vm1, %v1883_v43, %v1885_v30  ;;  %v1882_v16 = vsel %vm468_vm1, %v1879_v19, %v1881_v41 }
 0x33e   :  { %v4852_v33 = vsel %vm2545_vm7, %v2527_v27, %v2544_v7  ;;  %v2308_v60 = vadd.f32 %v2307_v55, %v2306_v46  ;;  %v2322_v12 = vadd.f32 %v2321_v22, %v2318_v42  ;;  %v2096_v10 = vadd.f32 %v3351_v56, %v1886_v48  ;;  %v3311_v24 = vpop.f32.mrb[72].mxu0  ;;  %v3355_v58 = vpop.f32.mrb[72].mxu1 }
 0x33f   :  { %v2299_v5 = vadd.f32 %v2298_v6, %v2297_v53  ;;  %v2313_v0 = vadd.f32 %v2312_v57, %v2309_v31  ;;  %v2088_v11 = vadd.f32 %v2087_v21, %v1882_v16  ;;  %v1891_v29 = vrot.slane %v3311_v24, 1  ;;  %v1777_v52 = vpop.f32.mrb[73].mxu0  ;;  %v2103_v18 = vpop.f32.mrb[73].mxu1 }
 0x340   :  { %v2388_v35 = vmul.f32 0.125, %v2308_v60  ;;  %v2323_v45 = vrot.slane %v2322_v12, 2  ;;  %v2160_v25 = vadd.f32 %v4808_v13, %v2096_v10  ;;  %v1887_v36 = vrot.slane %v1777_v52, 1  ;;  %v3312_v34 = vpop.f32.mrb[74].mxu0  ;;  %v3356_v39 = vpop.f32.mrb[74].mxu1 }
 0x341   :  { %v2387_v32 = vmul.f32 0.125, %v2299_v5  ;;  %v2314_v54 = vrot.slane %v2313_v0, 2  ;;  %v2158_v51 = vadd.f32 %v4808_v13, %v2088_v11  ;;  %v1893_v15 = vrot.slane %v3312_v34, 1  ;;  %v1780_v4 = vpop.f32.mrb[75].mxu0  ;;  %v2106_v61 = vpop.f32.mrb[75].mxu1 }
 0x342   :  { %v2494_v56 = vpack.c.bf16 %v2388_v35, %v2388_v35  ;;  %v2324_v23 = vadd.f32 %v2323_v45, %v2322_v12  ;;  %v2192_v7 = vmax.f32 %v2160_v25, 0.0  ;;  %v1889_v37 = vrot.slane %v1780_v4, 1 }
 0x343   :  { %v2493_v62 = vpack.c.bf16 %v2387_v32, %v2387_v32  ;;  %v2315_v28 = vadd.f32 %v2314_v54, %v2313_v0  ;;  %v2190_v21 = vmax.f32 %v2158_v51, 0.0  ;;  %v1894_v17 = vsel %vm468_vm1, %v1891_v29, %v1893_v15 }
 0x344   :  { %v4857_v44 = vunpack.c.l.b16 %v2494_v56  ;;  %v2325_v9 = vrot.slane %v2324_v23, 1  ;;  %v2336_v43 = vsel %vm330_vm0, %v2192_v7, 0.0  ;;  %v2112_v38 = vadd.f32 %v3355_v58, %v1894_v17 }
 0x345   :  { %v4860_v26 = vunpack.c.l.b16 %v2493_v62  ;;  %v2316_v63 = vrot.slane %v2315_v28, 1  ;;  %v2339_v3 = vrot.slane %v2336_v43, 4  ;;  %v2327_v59 = vsel %vm330_vm0, %v2190_v21, 0.0 }
 0x346   :  { %v2326_v19 = vadd.f32 %v2325_v9, %v2324_v23  ;;  %v2330_v40 = vrot.slane %v2327_v59, 4  ;;  %v2164_v20 = vadd.f32 %v4808_v13, %v2112_v38  ;;  %v1890_v50 = vsel %vm468_vm1, %v1887_v36, %v1889_v37  ;;  %v3315_v46 = vpop.f32.mrb[76].mxu0  ;;  %v3359_v8 = vpop.f32.mrb[76].mxu1 }
 0x347   :  { %v2317_v30 = vadd.f32 %v2316_v63, %v2315_v28  ;;  %v2340_v53 = vadd.f32 %v2339_v3, %v2336_v43  ;;  %v2104_v42 = vadd.f32 %v2103_v18, %v1890_v50  ;;  %v1899_v41 = vrot.slane %v3315_v46, 1  ;;  %v1793_v27 = vpop.f32.mrb[77].mxu0  ;;  %v2119_v55 = vpop.f32.mrb[77].mxu1 }
 0x348   :  { %v2390_v22 = vmul.f32 0.125, %v2326_v19  ;;  %v2331_v31 = vadd.f32 %v2330_v40, %v2327_v59  ;;  %v2196_v6 = vmax.f32 %v2164_v20, 0.0  ;;  %v1895_v57 = vrot.slane %v1793_v27, 1  ;;  %v3316_v48 = vpop.f32.mrb[78].mxu0  ;;  %v3360_v16 = vpop.f32.mrb[78].mxu1 }
 0x349   :  { %v2389_v60 = vmul.f32 0.125, %v2317_v30  ;;  %v2341_v12 = vrot.slane %v2340_v53, 2  ;;  %v2162_v10 = vadd.f32 %v4808_v13, %v2104_v42  ;;  %v1901_v24 = vrot.slane %v3316_v48, 1  ;;  %v1796_v58 = vpop.f32.mrb[79].mxu0  ;;  %v2122_v5 = vpop.f32.mrb[79].mxu1 }
 0x34a   :  { %v2496_v0 = vpack.c.bf16 %v2390_v22, %v2390_v22  ;;  %v2332_v11 = vrot.slane %v2331_v31, 2  ;;  %v2354_v29 = vsel %vm330_vm0, %v2196_v6, 0.0  ;;  %v1897_v52 = vrot.slane %v1796_v58, 1 }
 0x34b   :  { %v2495_v18 = vpack.c.bf16 %v2389_v60, %v2389_v60  ;;  %v2342_v35 = vadd.f32 %v2341_v12, %v2340_v53  ;;  %v2357_v45 = vrot.slane %v2354_v29, 4  ;;  %v2194_v25 = vmax.f32 %v2162_v10, 0.0 }
 0x34c   :  { %v2532_v36 = vunpack.c.l.b16 %v2496_v0  ;;  %v2333_v34 = vadd.f32 %v2332_v11, %v2331_v31  ;;  %v1902_v39 = vsel %vm468_vm1, %v1899_v41, %v1901_v24  ;;  %v1898_v32 = vsel %vm468_vm1, %v1895_v57, %v1897_v52 }
 0x34d   :  { %v2531_v54 = vunpack.c.l.b16 %v2495_v18  ;;  %v2343_v51 = vrot.slane %v2342_v35, 1  ;;  %v2358_v15 = vadd.f32 %v2357_v45, %v2354_v29  ;;  %v2345_v4 = vsel %vm330_vm0, %v2194_v25, 0.0 }
 0x34e   :  { %v2334_v61 = vrot.slane %v2333_v34, 1  ;;  %v2348_v56 = vrot.slane %v2345_v4, 4  ;;  %v2128_v23 = vadd.f32 %v3359_v8, %v1902_v39  ;;  %v2120_v7 = vadd.f32 %v2119_v55, %v1898_v32  ;;  %v2454_v37 = vpop.f32.mrb[80].mxu0 }
 0x34f   :  { %v2553_v62 = vsel %vm2539_vm4, %v2532_v36, %v2531_v54  ;;  %v2344_v28 = vadd.f32 %v2343_v51, %v2342_v35  ;;  %v2359_v21 = vrot.slane %v2358_v15, 2  ;;  %v2455_v17 = vadd.f32 %v2454_v37, %v4827_v14  ;;  %v3365_v9 = vpop.f32.mrb[81].mxu0 }
 0x350   :  { %v2335_v43 = vadd.f32 %v2334_v61, %v2333_v34  ;;  %v2349_v38 = vadd.f32 %v2348_v56, %v2345_v4  ;;  %v2168_v63 = vadd.f32 %v4808_v13, %v2128_v23  ;;  %v2166_v3 = vadd.f32 %v4808_v13, %v2120_v7  ;;  %v2457_v59 = vpop.f32.mrb[82].mxu0 }
 0x351   :  { %v2392_v19 = vmul.f32 0.125, %v2344_v28  ;;  %v2360_v40 = vadd.f32 %v2359_v21, %v2358_v15  ;;  %v2461_v20 = vmax.f32 %v2455_v17, 0.0  ;;  %v2458_v50 = vadd.f32 %v2457_v59, %v4827_v14  ;;  %v3366_v46 = vpop.f32.mrb[83].mxu0 }
 0x352   :  { %v2391_v8 = vmul.f32 0.125, %v2335_v43  ;;  %v2350_v30 = vrot.slane %v2349_v38, 2  ;;  %v2200_v53 = vmax.f32 %v2168_v63, 0.0  ;;  %v2198_v42 = vmax.f32 %v2166_v3, 0.0  ;;  %v3479_v3 = vld [vmem:[#allocation22] sm:$0xff]  }
 0x353   :  { %v2498_v41 = vpack.c.bf16 %v2392_v19, %v2392_v19  ;;  %v2361_v27 = vrot.slane %v2360_v40, 1  ;;  %v2462_v55 = vmax.f32 %v2458_v50, 0.0  ;;  %v2548_v22 = vsel %vm2547_vm8, %v4845_v2, %v4852_v33  ;;  %v3480_v19 = vld [vmem:[#allocation23] sm:$0xff]   ;;  %v3483_v50 = vld [vmem:[#allocation23 + $0x18] sm:$0xff]  }
 0x354   :  { %v2497_v31 = vpack.c.bf16 %v2391_v8, %v2391_v8  ;;  %v2351_v13 = vadd.f32 %v2350_v30, %v2349_v38  ;;  %v2372_v6 = vsel %vm330_vm0, %v2200_v53, 0.0  ;;  %v2363_v57 = vsel %vm330_vm0, %v2198_v42, 0.0 }
 0x355   :  { %v2534_v48 = vunpack.c.l.b16 %v2498_v41  ;;  %v2362_v14 = vadd.f32 %v2361_v27, %v2360_v40  ;;  %v2375_v16 = vrot.slane %v2372_v6, 4  ;;  %v2366_v60 = vrot.slane %v2363_v57, 4  ;;  %v3481_v40 = vld [vmem:[#allocation23 + $0x8] sm:$0xff]  }
 0x356   :  { %v2533_v12 = vunpack.c.l.b16 %v2497_v31  ;;  %v2352_v10 = vrot.slane %v2351_v13, 1  ;;  %v2732_v24 = vpack.c.bf16 %v2462_v55, %v2461_v20  ;;  %v2550_v58 = vsel %vm2549_vm10, %v4860_v26, %v2548_v22  ;;  %v3482_v20 = vld [vmem:[#allocation23 + $0x10] sm:$0xff]  }
 0x357   :  { %v2394_v5 = vmul.f32 0.125, %v2362_v14  ;;  %v2376_v0 = vadd.f32 %v2375_v16, %v2372_v6  ;;  %v2367_v11 = vadd.f32 %v2366_v60, %v2363_v57  ;;  %v2552_v2 = vsel %vm2551_vm11, %v4857_v44, %v2550_v58 }
 0x358   :  { %v2554_v33 = vsel %vm2541_vm5, %v2533_v12, %v2553_v62  ;;  %v2353_v29 = vadd.f32 %v2352_v10, %v2351_v13  ;;  %v2789_v27 = vsub.s32 4, %v4954_v49  ;;  %v2806_v10 = vsub.s32 5, %v4954_v49 }
 0x359   :  { %v2555_v52 = vsel %vm2543_vm6, %v2534_v48, %v2554_v33  ;;  %v2377_v18 = vrot.slane %v2376_v0, 2  ;;  %v2368_v35 = vrot.slane %v2367_v11, 2  ;;  %v2500_v25 = vpack.c.bf16 %v2394_v5, %v2394_v5 }
 0x35a   :  { %v2393_v45 = vmul.f32 0.125, %v2353_v29  ;;  %v2790_v55 = vrot.slane %v4805_v1, %v2789_v27 }
 0x35b   :  { %v2378_v36 = vadd.f32 %v2377_v18, %v2376_v0  ;;  %v2369_v34 = vadd.f32 %v2368_v35, %v2367_v11  ;;  %v2536_v15 = vunpack.c.l.b16 %v2500_v25 }
 0x35c   :  { %v2499_v39 = vpack.c.bf16 %v2393_v45, %v2393_v45 }
 0x35d   :  { %v2379_v32 = vrot.slane %v2378_v36, 1  ;;  %v2370_v26 = vrot.slane %v2369_v34, 1 }
 0x35e   :  { %v2535_v54 = vunpack.c.l.b16 %v2499_v39  ;;  %v2725_v51 = vpop.f32.mrb[84].mxu0 }
 0x35f   :  { %v2380_v4 = vadd.f32 %v2379_v32, %v2378_v36  ;;  %v2371_v61 = vadd.f32 %v2370_v26, %v2369_v34  ;;  %v3385_v44 = vpop.f32.mrb[85].mxu0 }
 0x360   :  { %v2556_v56 = vsel %vm2545_vm7, %v2535_v54, %v2555_v52  ;;  %v2728_v23 = vpop.f32.mrb[86].mxu0 }
 0x361   :  { %v2396_v7 = vmul.f32 0.125, %v2380_v4  ;;  %v2395_v37 = vmul.f32 0.125, %v2371_v61  ;;  %v3386_v62 = vpop.f32.mrb[87].mxu0  ;;  %v2557_v28 = vsel %vm2547_vm8, %v2536_v15, %v2556_v56 }
 0x363   :  { %v2502_v21 = vpack.c.bf16 %v2396_v7, %v2396_v7  ;;  %v2501_v17 = vpack.c.bf16 %v2395_v37, %v2395_v37 }
 0x365   :  { %v2537_v9 = vunpack.c.l.b16 %v2501_v17  ;;  %v2538_v43 = vunpack.c.l.b16 %v2502_v21 }
 0x367   :  { %v2558_v38 = vsel %vm2549_vm10, %v2537_v9, %v2557_v28 }
 0x368   :  { %v2559_v63 = vsel %vm2551_vm11, %v2538_v43, %v2558_v38 }
 0x369   :  { %v2560_v59 = vpack.c.b16 %v2559_v63, %v2552_v2 }
 0x36b   :  { %3372 = vmatmul.mubr.msk.bf16.vlgmr.msra.gmra.mrb[80].mxu1 %vm330_vm0, %v2560_v59 }
 0x36c   :  { %3388 = vmatpush3.bf16.msra.mxu1 %v3479_v3  ;;  %3389 = vmatprep.mubr.msk.bf16.mxu1 %vm3873_vm12, %v4946_v47 }
 0x36d   :  { %3393 = vmatprep.subr.bf16.mxu1 %v4946_v47 }
 0x373   :  { %3390 = vmatmul.mubr.msk.bf16.vlgmr.msra.gmra.mrb[84].mxu1 %vm2416_vm13, %v2732_v24  ;;  %v2807_v24 = vrot.slane %v4805_v1, %v2806_v10 }
 0x374   :  { %3401 = vmatprep.mubr.msk.bf16.mxu1 %vm3873_vm12, %v4946_v47  ;;  %3394 = vmatpush3.bf16.msra.mxu1 %v3480_v19 }
 0x375   :  { %3395 = vmatprep.subr.bf16.mxu1 %v4946_v47 }
 0x378   :  { %3396 = vmatpush3.bf16.msra.mxu1 %v3481_v40 }
 0x379   :  { %3397 = vmatprep.subr.bf16.mxu1 %v4946_v47 }
 0x37c   :  { %3398 = vmatpush3.bf16.msra.mxu1 %v3482_v20 }
 0x37d   :  { %3399 = vmatprep.subr.bf16.mxu1 %v4946_v47 }
 0x380   :  { %3400 = vmatpush3.bf16.msra.mxu1 %v3483_v50 }
 0x43e   :  { %v2610_v46 = vpop.f32.mrb[80].mxu1 }
 0x43f   :  { %v2726_v8 = vadd.f32 %v2725_v51, %v2610_v46  ;;  %v3373_v30 = vpop.f32.mrb[81].mxu1 }
 0x440   :  { %v2613_v53 = vpop.f32.mrb[82].mxu1 }
 0x441   :  { %v2729_v42 = vadd.f32 %v2728_v23, %v2613_v53  ;;  %v3374_v41 = vpop.f32.mrb[83].mxu1 }
 0x446   :  { %v2778_v22 = vpop.f32.mrb[84].mxu1 }
 0x447   :  { %v2785_v31 = vadd.f32 %v2778_v22, %v2726_v8  ;;  %v3391_v13 = vpop.f32.mrb[85].mxu1 }
 0x448   :  { %v2781_v6 = vpop.f32.mrb[86].mxu1 }
 0x449   :  { %v2791_v57 = vadd.f32 %v2790_v55, %v2785_v31  ;;  %v2786_v48 = vadd.f32 %v2781_v6, %v2729_v42  ;;  %v3392_v14 = vpop.f32.mrb[87].mxu1 }
 0x44b   :  { %v2792_v16 = vadd.f32 %v2790_v55, %v2786_v48  ;;  %v2793_v47 = vmax.f32 %v2791_v57, 0.0 }
 0x44d   :  { %v2794_v60 = vmax.f32 %v2792_v16, 0.0 }
 0x44f   :  { %v2795_v12 = vpack.c.bf16 %v2794_v60, %v2793_v47 }
 0x451   :  { %3402 = vmatmul.mubr.msk.bf16.vlgmr.msra.gmra.mrb[88].mxu1 %vm682_vm3, %v2795_v12 }
 0x524   :  { %v2869_v58 = vpop.f32.mrb[88].mxu1 }
 0x525   :  { %v2870_v5 = vadd.f32 %v2869_v58, %v2807_v24  ;;  %v3403_v0 = vpop.f32.mrb[89].mxu1 }
 0x526   :  { %v2872_v11 = vpop.f32.mrb[90].mxu1 }
 0x527   :  { %2876 = vst [vmem:[#allocation26] sm:$0xff] %v2870_v5  ;;  %v2873_v2 = vadd.f32 %v2872_v11, %v2807_v24  ;;  %v3404_v33 = vpop.f32.mrb[91].mxu1 }
 0x529   :  { %2877 = vst [vmem:[#allocation26 + $0x8] sm:$0xff] %v2873_v2 }
 0x52a   :  { %3826 = shalt.err (!%p3823_p12)
}
 0x52b   :  { %s3827_s8 = scalar_lea.hbm %s4932_s15, 256 }
 0x52c   :  { %p3828_p13 = scmp.ne.s32.totalorder %s4932_s15, %s3827_s8  ;;  %p3831_p0 = scmp.lt.u32.totalorder %s3827_s8, %s4932_s15 }
 0x52e   :  { %p3833_p1 = pnand %p3831_p0, %p3828_p13 }
 0x530   :  { %3836 = shalt.err (!%p3833_p1)
}
 0x531   :  { %s3875_s18 = smov 128   ;;  %s3876_s23 = smov 8  }
 0x532   :  { %2889 = dma.vmem_to_hbm [thread:$0]  %s2884_s16, 256, %s4932_s15, [#allocation4], %s3875_s18, %s3875_s18, %s3876_s23  }
 0x533   :  { %3853 = dma.done.wait [#allocation4], 256  }
 0x534   :  { %3854 = vsyncadd [#allocation4], 4294967040 }
 0x535   :  { %2893 = vsyncpa [#allocation3], 1 }
 0x536   :  { %2894 = vsyncpa [#allocation6], 1 }
 0x537   :  { %2895 = vsyncpa [#allocation9], 1 }
 0x538   :  { %2896 = vsyncpa [#allocation12], 1 }
 0x539   :  { %2897 = vsyncpa [#allocation15], 1 }
 0x53a   :  { %2898 = vsyncpa [#allocation18], 1 }
 0x53b   :  { %2899 = vsyncpa [#allocation21], 1 }
 0x53c   :  { %2900 = vsyncpa [#allocation24], 1 }
 0x53d   :  { %2901 = vsyncpa [#allocation4], 1 }

</bundles_post_ra>
